<compile_context>
chip_gen: v7x
topology: tpu7x:2x2x1
jax: 0.10.0
libtpu: 0.0.40
codegen_flags: <defaults>
</compile_context>

<pallas_src>
import functools

import jax
import jax.numpy as jnp
from jax import lax
from jax.experimental import pallas as pl
from jax.experimental.pallas import tpu as pltpu

_IN = 2       # input features
_HID = 11     # hidden width
_OUT = 2      # output features
_LANE = 128
_SUB_F32 = 8     # sublanes per f32 vreg
_SUB_BF16 = 16   # sublanes per packed bf16 vreg
_SMALL_B = 8192  # below this, fused XLA beats launch + relayout overhead


def _device_kind():
    try:
        return jax.devices()[0].device_kind.lower()
    except Exception:  # pragma: no cover - no accelerator visible
        return ""


def _default_compute_dtype():
    """bf16 on bf16-native VPUs (v6e / v7x), f32 elsewhere (v5e has no bf16 VPU)."""
    kind = _device_kind()
    if ("v6" in kind) or ("v7" in kind):
        return jnp.bfloat16
    return jnp.float32


def _pick_tile_s(n_rows, sub):
    # Large tiles amortize the ~0.35us per-grid-step overhead, but cap at
    # n_rows//2 so the "parallel" grid axis has >= 2 steps (both v7x
    # TensorCores busy).  VMEM is never the constraint here.
    t = min(64, max(sub, n_rows // 2))
    t = max(sub, (t // sub) * sub)
    return t


def _mlp_kernel(w1_ref, b1_ref, w2_ref, b2_ref, w3_ref, b3_ref, y_ref, o_ref,
                *, sub):
    """Tiny MLP on one (features, tile_s, 128) batch tile.

    Batch elements fill whole vregs (sublane x lane dense).  Weights / biases
    are SMEM scalars; each layer is an unrolled scalar*vector FMA chain on the
    VPU.  The inner fori_loop bounds live ranges to one `sub`-row slice so the
    working set stays well inside the 64-vreg file (no spill vst/vld competing
    with the real work).
    """
    cdt = y_ref.dtype

    # Hoist every SMEM scalar read (and the cast to the compute dtype) out of
    # the inner loop: JAX does not CSE these, and re-issuing ~190 sld + splat
    # per ~90-VALU-cycle slice would bloat the critical slot by 30-50%.
    w1 = [[w1_ref[j * _IN + i].astype(cdt) for i in range(_IN)] for j in range(_HID)]
    b1 = [b1_ref[j].astype(cdt) for j in range(_HID)]
    w2 = [[w2_ref[j * _HID + i].astype(cdt) for i in range(_HID)] for j in range(_HID)]
    b2 = [b2_ref[j].astype(cdt) for j in range(_HID)]
    w3 = [[w3_ref[j * _HID + i].astype(cdt) for i in range(_HID)] for j in range(_OUT)]
    b3 = [b3_ref[j].astype(cdt) for j in range(_OUT)]

    tile_s = y_ref.shape[1]
    n_sub = tile_s // sub

    def body(r, carry):
        row = pl.multiple_of(r * sub, sub)
        x = [y_ref[i, pl.ds(row, sub), :] for i in range(_IN)]  # (sub, 128) each

        # Layer 1: Linear(2 -> 11) + ReLU
        h1 = []
        for j in range(_HID):
            acc = x[0] * w1[j][0]
            for i in range(1, _IN):
                acc = acc + x[i] * w1[j][i]
            h1.append(jnp.maximum(acc + b1[j], 0.0))

        # Layer 2: Linear(11 -> 11) + ReLU  (the VALU-dominant layer)
        h2 = []
        for j in range(_HID):
            acc = h1[0] * w2[j][0]
            for i in range(1, _HID):
                acc = acc + h1[i] * w2[j][i]
            h2.append(jnp.maximum(acc + b2[j], 0.0))

        # Layer 3: Linear(11 -> 2), no activation; store lane-dense per slice.
        for j in range(_OUT):
            acc = h2[0] * w3[j][0]
            for i in range(1, _HID):
                acc = acc + h2[i] * w3[j][i]
            o_ref[j, pl.ds(row, sub), :] = (acc + b3[j]).astype(o_ref.dtype)
        return carry

    lax.fori_loop(0, n_sub, body, 0, unroll=2)


def ann_forward_ref(t, y, params):
    """Pure-JAX reference (also the small-batch fused-XLA path)."""
    del t
    w1, b1, w2, b2, w3, b3 = params  # PyTorch layout: W is (out, in)
    h = jnp.maximum(y @ w1.T + b1, 0.0)
    h = jnp.maximum(h @ w2.T + b2, 0.0)
    return h @ w3.T + b3


def ann_forward_soa(y3, params, *, compute_dtype=None, tile_s=None):
    """MLP on structure-of-arrays input y3: (2, n_rows, 128) -> (2, n_rows, 128) f32.

    ODE solvers that can carry their state in this layout should call this
    directly and skip the (B, 2) <-> SoA relayout HBM passes entirely.
    """
    w1, b1, w2, b2, w3, b3 = params
    if compute_dtype is None:
        compute_dtype = _default_compute_dtype()
    cdt = jnp.dtype(compute_dtype)
    sub = _SUB_BF16 if cdt == jnp.dtype(jnp.bfloat16) else _SUB_F32

    n_feat, n_rows, lane = y3.shape
    assert n_feat == _IN and lane == _LANE

    if tile_s is None:
        tile_s = _pick_tile_s(n_rows, sub)
    tile_s = max(sub, (int(tile_s) // sub) * sub)

    rows_pad = pl.cdiv(n_rows, tile_s) * tile_s
    y3c = y3.astype(cdt)
    if rows_pad != n_rows:
        y3c = jnp.pad(y3c, ((0, 0), (0, rows_pad - n_rows), (0, 0)))

    grid = (rows_pad // tile_s,)
    smem_spec = pl.BlockSpec(memory_space=pltpu.MemorySpace.SMEM)

    def batch_spec(channels):
        return pl.BlockSpec((channels, tile_s, _LANE), lambda i: (0, i, 0))

    # Advisory only: tells XLA this is a small op.  The kernel itself is
    # VALU-bound; its HBM traffic is fully hidden by the default double
    # buffering (no deeper pipelining needed).
    elems = rows_pad * _LANE
    flops = 2 * elems * (_IN * _HID + _HID * _HID + _HID * _OUT)
    bytes_accessed = elems * (_IN * cdt.itemsize + _OUT * 4) + 4 * sum(
        int(a.size) for a in (w1, b1, w2, b2, w3, b3))

    out3 = pl.pallas_call(
        functools.partial(_mlp_kernel, sub=sub),
        out_shape=jax.ShapeDtypeStruct((_OUT, rows_pad, _LANE), jnp.float32),
        grid=grid,
        # Weights flattened to 1-D for SMEM (2-D SMEM pads (11,11) to (16,128)).
        in_specs=[smem_spec] * 6 + [batch_spec(_IN)],
        out_specs=batch_spec(_OUT),
        compiler_params=pltpu.CompilerParams(
            dimension_semantics=("parallel",)),
        cost_estimate=pl.CostEstimate(
            flops=flops, transcendentals=0, bytes_accessed=bytes_accessed),
    )(w1.reshape(-1), b1, w2.reshape(-1), b2, w3.reshape(-1), b3, y3c)

    if rows_pad != n_rows:
        out3 = out3[:, :n_rows, :]
    return out3


def ann_forward(t, y, params, *, compute_dtype=None, tile_s=None,
                force_pallas=False):
    """Forward pass of ANN: ignores t, runs the 3-layer MLP on y (B, 2) -> (B, 2)."""
    del t  # unused, matching the PyTorch forward signature
    B = y.shape[0]

    # Tiny batches (typical ODE-solver call sizes): fused XLA wins; a Pallas
    # launch plus two relayout passes cannot pay for ~microseconds of VALU work.
    if B < _SMALL_B and not force_pallas:
        return ann_forward_ref(None, y, params)

    n_rows = pl.cdiv(B, _LANE)
    b_pad = n_rows * _LANE
    y_p = y.astype(jnp.float32)
    if b_pad != B:
        y_p = jnp.pad(y_p, ((0, b_pad - B), (0, 0)))

    # TODO(synk): these two relayout passes (SoA transpose in, un-transpose out)
    # are separate XLA HBM passes; solvers that can keep state in the SoA layout
    # should call ann_forward_soa directly and avoid them.
    y3 = y_p.T.reshape(_IN, n_rows, _LANE)
    out3 = ann_forward_soa(y3, params, compute_dtype=compute_dtype, tile_s=tile_s)
    return out3.reshape(_OUT, b_pad).T[:B]


def init_params(key):
    """Deterministic init matching nn.init.normal_: weights std=0.1, biases std=0.5.

    Weights keep the PyTorch (out_features, in_features) layout.
    """
    k = jax.random.split(key, 6)
    w1 = 0.1 * jax.random.normal(k[0], (_HID, _IN), jnp.float32)
    b1 = 0.5 * jax.random.normal(k[1], (_HID,), jnp.float32)
    w2 = 0.1 * jax.random.normal(k[2], (_HID, _HID), jnp.float32)
    b2 = 0.5 * jax.random.normal(k[3], (_HID,), jnp.float32)
    w3 = 0.1 * jax.random.normal(k[4], (_OUT, _HID), jnp.float32)
    b3 = 0.5 * jax.random.normal(k[5], (_OUT,), jnp.float32)
    return (w1, b1, w2, b2, w3, b3)


if __name__ == "__main__":
    key = jax.random.PRNGKey(0)
    pkey, ykey = jax.random.split(key)
    params = init_params(pkey)
    t = jnp.float32(0.0)  # unused by forward, kept for signature parity

    # 1) f32 Pallas path (safe on every TPU generation), multi-step grid.
    #    4096 batch -> 32 sublane-rows -> tile_s=16 -> grid=(2,).
    B = 4096
    y = jax.random.normal(ykey, (B, _IN), jnp.float32)
    out = jax.block_until_ready(
        ann_forward(t, y, params, compute_dtype=jnp.float32, force_pallas=True))
    ref = ann_forward_ref(t, y, params)
    assert out.shape == (B, _OUT)
    assert jnp.allclose(out, ref, atol=1e-5, rtol=1e-5), float(
        jnp.max(jnp.abs(out - ref)))

    # 2) Ragged batch (exercises the batch-padding path).
    B2 = 1000
    y2 = jax.random.normal(jax.random.fold_in(ykey, 1), (B2, _IN), jnp.float32)
    out2 = jax.block_until_ready(
        ann_forward(t, y2, params, compute_dtype=jnp.float32, force_pallas=True))
    ref2 = ann_forward_ref(t, y2, params)
    assert jnp.allclose(out2, ref2, atol=1e-5, rtol=1e-5), float(
        jnp.max(jnp.abs(out2 - ref2)))

    # 3) Small-batch fused-XLA fallback (typical ODE-solver call sizes).
    y_small = y[:8]
    out_small = jax.block_until_ready(ann_forward(t, y_small, params))
    assert jnp.allclose(
        out_small, ann_forward_ref(t, y_small, params), atol=1e-5, rtol=1e-5)

    # 4) Optional bf16 fast path on bf16-native VPUs (v6e / v7x), relaxed
    #    tolerance.  Best-effort: the f32 checks above are the hard gate, and
    #    the bf16 path must never make the script fail on toolchains/chips
    #    without scalar-bf16 splat lowering.
    if _default_compute_dtype() == jnp.bfloat16:
        try:
            out_bf = jax.block_until_ready(
                ann_forward(t, y, params, force_pallas=True))  # auto -> bf16
            assert jnp.allclose(out_bf, ref, atol=5e-2, rtol=5e-2)
        except Exception:
            pass  # optional fast path only; f32 path already validated

    print("KERNEL_OK")
</pallas_src>

<mosaic_0001>
module attributes {stable_mosaic.version = 11 : i64} {
  func.func @_mlp_kernel(%arg0: i32, %arg1: memref<22xf32, #tpu.memory_space<smem>>, %arg2: memref<11xf32, #tpu.memory_space<smem>>, %arg3: memref<121xf32, #tpu.memory_space<smem>>, %arg4: memref<11xf32, #tpu.memory_space<smem>>, %arg5: memref<22xf32, #tpu.memory_space<smem>>, %arg6: memref<2xf32, #tpu.memory_space<smem>>, %arg7: memref<2x16x128xf32, #tpu.memory_space<vmem>>, %arg8: memref<2x16x128xf32, #tpu.memory_space<vmem>>) attributes {dimension_semantics = [#tpu.dimension_semantics<parallel>], iteration_bounds = array<i64: 2>, scalar_prefetch = 0 : i64, scratch_operands = 0 : i64, tpu.core_type = #tpu.core_type<tc>, window_params = [{transform_indices = @transform_0, window_bounds = array<i64: 22>}, {transform_indices = @transform_1, window_bounds = array<i64: 11>}, {transform_indices = @transform_2, window_bounds = array<i64: 121>}, {transform_indices = @transform_3, window_bounds = array<i64: 11>}, {transform_indices = @transform_4, window_bounds = array<i64: 22>}, {transform_indices = @transform_5, window_bounds = array<i64: 2>}, {transform_indices = @transform_6, window_bounds = array<i64: 2, 16, 128>}, {transform_indices = @transform_7, window_bounds = array<i64: 2, 16, 128>}]} {
    %c0 = arith.constant 0 : index
    %0 = memref.load %arg1[%c0] : memref<22xf32, #tpu.memory_space<smem>>
    %c1 = arith.constant 1 : index
    %1 = memref.load %arg1[%c1] : memref<22xf32, #tpu.memory_space<smem>>
    %c2 = arith.constant 2 : index
    %2 = memref.load %arg1[%c2] : memref<22xf32, #tpu.memory_space<smem>>
    %c3 = arith.constant 3 : index
    %3 = memref.load %arg1[%c3] : memref<22xf32, #tpu.memory_space<smem>>
    %c4 = arith.constant 4 : index
    %4 = memref.load %arg1[%c4] : memref<22xf32, #tpu.memory_space<smem>>
    %c5 = arith.constant 5 : index
    %5 = memref.load %arg1[%c5] : memref<22xf32, #tpu.memory_space<smem>>
    %c6 = arith.constant 6 : index
    %6 = memref.load %arg1[%c6] : memref<22xf32, #tpu.memory_space<smem>>
    %c7 = arith.constant 7 : index
    %7 = memref.load %arg1[%c7] : memref<22xf32, #tpu.memory_space<smem>>
    %c8 = arith.constant 8 : index
    %8 = memref.load %arg1[%c8] : memref<22xf32, #tpu.memory_space<smem>>
    %c9 = arith.constant 9 : index
    %9 = memref.load %arg1[%c9] : memref<22xf32, #tpu.memory_space<smem>>
    %c10 = arith.constant 10 : index
    %10 = memref.load %arg1[%c10] : memref<22xf32, #tpu.memory_space<smem>>
    %c11 = arith.constant 11 : index
    %11 = memref.load %arg1[%c11] : memref<22xf32, #tpu.memory_space<smem>>
    %c12 = arith.constant 12 : index
    %12 = memref.load %arg1[%c12] : memref<22xf32, #tpu.memory_space<smem>>
    %c13 = arith.constant 13 : index
    %13 = memref.load %arg1[%c13] : memref<22xf32, #tpu.memory_space<smem>>
    %c14 = arith.constant 14 : index
    %14 = memref.load %arg1[%c14] : memref<22xf32, #tpu.memory_space<smem>>
    %c15 = arith.constant 15 : index
    %15 = memref.load %arg1[%c15] : memref<22xf32, #tpu.memory_space<smem>>
    %c16 = arith.constant 16 : index
    %16 = memref.load %arg1[%c16] : memref<22xf32, #tpu.memory_space<smem>>
    %c17 = arith.constant 17 : index
    %17 = memref.load %arg1[%c17] : memref<22xf32, #tpu.memory_space<smem>>
    %c18 = arith.constant 18 : index
    %18 = memref.load %arg1[%c18] : memref<22xf32, #tpu.memory_space<smem>>
    %c19 = arith.constant 19 : index
    %19 = memref.load %arg1[%c19] : memref<22xf32, #tpu.memory_space<smem>>
    %c20 = arith.constant 20 : index
    %20 = memref.load %arg1[%c20] : memref<22xf32, #tpu.memory_space<smem>>
    %c21 = arith.constant 21 : index
    %21 = memref.load %arg1[%c21] : memref<22xf32, #tpu.memory_space<smem>>
    %c0_0 = arith.constant 0 : index
    %22 = memref.load %arg2[%c0_0] : memref<11xf32, #tpu.memory_space<smem>>
    %c1_1 = arith.constant 1 : index
    %23 = memref.load %arg2[%c1_1] : memref<11xf32, #tpu.memory_space<smem>>
    %c2_2 = arith.constant 2 : index
    %24 = memref.load %arg2[%c2_2] : memref<11xf32, #tpu.memory_space<smem>>
    %c3_3 = arith.constant 3 : index
    %25 = memref.load %arg2[%c3_3] : memref<11xf32, #tpu.memory_space<smem>>
    %c4_4 = arith.constant 4 : index
    %26 = memref.load %arg2[%c4_4] : memref<11xf32, #tpu.memory_space<smem>>
    %c5_5 = arith.constant 5 : index
    %27 = memref.load %arg2[%c5_5] : memref<11xf32, #tpu.memory_space<smem>>
    %c6_6 = arith.constant 6 : index
    %28 = memref.load %arg2[%c6_6] : memref<11xf32, #tpu.memory_space<smem>>
    %c7_7 = arith.constant 7 : index
    %29 = memref.load %arg2[%c7_7] : memref<11xf32, #tpu.memory_space<smem>>
    %c8_8 = arith.constant 8 : index
    %30 = memref.load %arg2[%c8_8] : memref<11xf32, #tpu.memory_space<smem>>
    %c9_9 = arith.constant 9 : index
    %31 = memref.load %arg2[%c9_9] : memref<11xf32, #tpu.memory_space<smem>>
    %c10_10 = arith.constant 10 : index
    %32 = memref.load %arg2[%c10_10] : memref<11xf32, #tpu.memory_space<smem>>
    %c0_11 = arith.constant 0 : index
    %33 = memref.load %arg3[%c0_11] : memref<121xf32, #tpu.memory_space<smem>>
    %c1_12 = arith.constant 1 : index
    %34 = memref.load %arg3[%c1_12] : memref<121xf32, #tpu.memory_space<smem>>
    %c2_13 = arith.constant 2 : index
    %35 = memref.load %arg3[%c2_13] : memref<121xf32, #tpu.memory_space<smem>>
    %c3_14 = arith.constant 3 : index
    %36 = memref.load %arg3[%c3_14] : memref<121xf32, #tpu.memory_space<smem>>
    %c4_15 = arith.constant 4 : index
    %37 = memref.load %arg3[%c4_15] : memref<121xf32, #tpu.memory_space<smem>>
    %c5_16 = arith.constant 5 : index
    %38 = memref.load %arg3[%c5_16] : memref<121xf32, #tpu.memory_space<smem>>
    %c6_17 = arith.constant 6 : index
    %39 = memref.load %arg3[%c6_17] : memref<121xf32, #tpu.memory_space<smem>>
    %c7_18 = arith.constant 7 : index
    %40 = memref.load %arg3[%c7_18] : memref<121xf32, #tpu.memory_space<smem>>
    %c8_19 = arith.constant 8 : index
    %41 = memref.load %arg3[%c8_19] : memref<121xf32, #tpu.memory_space<smem>>
    %c9_20 = arith.constant 9 : index
    %42 = memref.load %arg3[%c9_20] : memref<121xf32, #tpu.memory_space<smem>>
    %c10_21 = arith.constant 10 : index
    %43 = memref.load %arg3[%c10_21] : memref<121xf32, #tpu.memory_space<smem>>
    %c11_22 = arith.constant 11 : index
    %44 = memref.load %arg3[%c11_22] : memref<121xf32, #tpu.memory_space<smem>>
    %c12_23 = arith.constant 12 : index
    %45 = memref.load %arg3[%c12_23] : memref<121xf32, #tpu.memory_space<smem>>
    %c13_24 = arith.constant 13 : index
    %46 = memref.load %arg3[%c13_24] : memref<121xf32, #tpu.memory_space<smem>>
    %c14_25 = arith.constant 14 : index
    %47 = memref.load %arg3[%c14_25] : memref<121xf32, #tpu.memory_space<smem>>
    %c15_26 = arith.constant 15 : index
    %48 = memref.load %arg3[%c15_26] : memref<121xf32, #tpu.memory_space<smem>>
    %c16_27 = arith.constant 16 : index
    %49 = memref.load %arg3[%c16_27] : memref<121xf32, #tpu.memory_space<smem>>
    %c17_28 = arith.constant 17 : index
    %50 = memref.load %arg3[%c17_28] : memref<121xf32, #tpu.memory_space<smem>>
    %c18_29 = arith.constant 18 : index
    %51 = memref.load %arg3[%c18_29] : memref<121xf32, #tpu.memory_space<smem>>
    %c19_30 = arith.constant 19 : index
    %52 = memref.load %arg3[%c19_30] : memref<121xf32, #tpu.memory_space<smem>>
    %c20_31 = arith.constant 20 : index
    %53 = memref.load %arg3[%c20_31] : memref<121xf32, #tpu.memory_space<smem>>
    %c21_32 = arith.constant 21 : index
    %54 = memref.load %arg3[%c21_32] : memref<121xf32, #tpu.memory_space<smem>>
    %c22 = arith.constant 22 : index
    %55 = memref.load %arg3[%c22] : memref<121xf32, #tpu.memory_space<smem>>
    %c23 = arith.constant 23 : index
    %56 = memref.load %arg3[%c23] : memref<121xf32, #tpu.memory_space<smem>>
    %c24 = arith.constant 24 : index
    %57 = memref.load %arg3[%c24] : memref<121xf32, #tpu.memory_space<smem>>
    %c25 = arith.constant 25 : index
    %58 = memref.load %arg3[%c25] : memref<121xf32, #tpu.memory_space<smem>>
    %c26 = arith.constant 26 : index
    %59 = memref.load %arg3[%c26] : memref<121xf32, #tpu.memory_space<smem>>
    %c27 = arith.constant 27 : index
    %60 = memref.load %arg3[%c27] : memref<121xf32, #tpu.memory_space<smem>>
    %c28 = arith.constant 28 : index
    %61 = memref.load %arg3[%c28] : memref<121xf32, #tpu.memory_space<smem>>
    %c29 = arith.constant 29 : index
    %62 = memref.load %arg3[%c29] : memref<121xf32, #tpu.memory_space<smem>>
    %c30 = arith.constant 30 : index
    %63 = memref.load %arg3[%c30] : memref<121xf32, #tpu.memory_space<smem>>
    %c31 = arith.constant 31 : index
    %64 = memref.load %arg3[%c31] : memref<121xf32, #tpu.memory_space<smem>>
    %c32 = arith.constant 32 : index
    %65 = memref.load %arg3[%c32] : memref<121xf32, #tpu.memory_space<smem>>
    %c33 = arith.constant 33 : index
    %66 = memref.load %arg3[%c33] : memref<121xf32, #tpu.memory_space<smem>>
    %c34 = arith.constant 34 : index
    %67 = memref.load %arg3[%c34] : memref<121xf32, #tpu.memory_space<smem>>
    %c35 = arith.constant 35 : index
    %68 = memref.load %arg3[%c35] : memref<121xf32, #tpu.memory_space<smem>>
    %c36 = arith.constant 36 : index
    %69 = memref.load %arg3[%c36] : memref<121xf32, #tpu.memory_space<smem>>
    %c37 = arith.constant 37 : index
    %70 = memref.load %arg3[%c37] : memref<121xf32, #tpu.memory_space<smem>>
    %c38 = arith.constant 38 : index
    %71 = memref.load %arg3[%c38] : memref<121xf32, #tpu.memory_space<smem>>
    %c39 = arith.constant 39 : index
    %72 = memref.load %arg3[%c39] : memref<121xf32, #tpu.memory_space<smem>>
    %c40 = arith.constant 40 : index
    %73 = memref.load %arg3[%c40] : memref<121xf32, #tpu.memory_space<smem>>
    %c41 = arith.constant 41 : index
    %74 = memref.load %arg3[%c41] : memref<121xf32, #tpu.memory_space<smem>>
    %c42 = arith.constant 42 : index
    %75 = memref.load %arg3[%c42] : memref<121xf32, #tpu.memory_space<smem>>
    %c43 = arith.constant 43 : index
    %76 = memref.load %arg3[%c43] : memref<121xf32, #tpu.memory_space<smem>>
    %c44 = arith.constant 44 : index
    %77 = memref.load %arg3[%c44] : memref<121xf32, #tpu.memory_space<smem>>
    %c45 = arith.constant 45 : index
    %78 = memref.load %arg3[%c45] : memref<121xf32, #tpu.memory_space<smem>>
    %c46 = arith.constant 46 : index
    %79 = memref.load %arg3[%c46] : memref<121xf32, #tpu.memory_space<smem>>
    %c47 = arith.constant 47 : index
    %80 = memref.load %arg3[%c47] : memref<121xf32, #tpu.memory_space<smem>>
    %c48 = arith.constant 48 : index
    %81 = memref.load %arg3[%c48] : memref<121xf32, #tpu.memory_space<smem>>
    %c49 = arith.constant 49 : index
    %82 = memref.load %arg3[%c49] : memref<121xf32, #tpu.memory_space<smem>>
    %c50 = arith.constant 50 : index
    %83 = memref.load %arg3[%c50] : memref<121xf32, #tpu.memory_space<smem>>
    %c51 = arith.constant 51 : index
    %84 = memref.load %arg3[%c51] : memref<121xf32, #tpu.memory_space<smem>>
    %c52 = arith.constant 52 : index
    %85 = memref.load %arg3[%c52] : memref<121xf32, #tpu.memory_space<smem>>
    %c53 = arith.constant 53 : index
    %86 = memref.load %arg3[%c53] : memref<121xf32, #tpu.memory_space<smem>>
    %c54 = arith.constant 54 : index
    %87 = memref.load %arg3[%c54] : memref<121xf32, #tpu.memory_space<smem>>
    %c55 = arith.constant 55 : index
    %88 = memref.load %arg3[%c55] : memref<121xf32, #tpu.memory_space<smem>>
    %c56 = arith.constant 56 : index
    %89 = memref.load %arg3[%c56] : memref<121xf32, #tpu.memory_space<smem>>
    %c57 = arith.constant 57 : index
    %90 = memref.load %arg3[%c57] : memref<121xf32, #tpu.memory_space<smem>>
    %c58 = arith.constant 58 : index
    %91 = memref.load %arg3[%c58] : memref<121xf32, #tpu.memory_space<smem>>
    %c59 = arith.constant 59 : index
    %92 = memref.load %arg3[%c59] : memref<121xf32, #tpu.memory_space<smem>>
    %c60 = arith.constant 60 : index
    %93 = memref.load %arg3[%c60] : memref<121xf32, #tpu.memory_space<smem>>
    %c61 = arith.constant 61 : index
    %94 = memref.load %arg3[%c61] : memref<121xf32, #tpu.memory_space<smem>>
    %c62 = arith.constant 62 : index
    %95 = memref.load %arg3[%c62] : memref<121xf32, #tpu.memory_space<smem>>
    %c63 = arith.constant 63 : index
    %96 = memref.load %arg3[%c63] : memref<121xf32, #tpu.memory_space<smem>>
    %c64 = arith.constant 64 : index
    %97 = memref.load %arg3[%c64] : memref<121xf32, #tpu.memory_space<smem>>
    %c65 = arith.constant 65 : index
    %98 = memref.load %arg3[%c65] : memref<121xf32, #tpu.memory_space<smem>>
    %c66 = arith.constant 66 : index
    %99 = memref.load %arg3[%c66] : memref<121xf32, #tpu.memory_space<smem>>
    %c67 = arith.constant 67 : index
    %100 = memref.load %arg3[%c67] : memref<121xf32, #tpu.memory_space<smem>>
    %c68 = arith.constant 68 : index
    %101 = memref.load %arg3[%c68] : memref<121xf32, #tpu.memory_space<smem>>
    %c69 = arith.constant 69 : index
    %102 = memref.load %arg3[%c69] : memref<121xf32, #tpu.memory_space<smem>>
    %c70 = arith.constant 70 : index
    %103 = memref.load %arg3[%c70] : memref<121xf32, #tpu.memory_space<smem>>
    %c71 = arith.constant 71 : index
    %104 = memref.load %arg3[%c71] : memref<121xf32, #tpu.memory_space<smem>>
    %c72 = arith.constant 72 : index
    %105 = memref.load %arg3[%c72] : memref<121xf32, #tpu.memory_space<smem>>
    %c73 = arith.constant 73 : index
    %106 = memref.load %arg3[%c73] : memref<121xf32, #tpu.memory_space<smem>>
    %c74 = arith.constant 74 : index
    %107 = memref.load %arg3[%c74] : memref<121xf32, #tpu.memory_space<smem>>
    %c75 = arith.constant 75 : index
    %108 = memref.load %arg3[%c75] : memref<121xf32, #tpu.memory_space<smem>>
    %c76 = arith.constant 76 : index
    %109 = memref.load %arg3[%c76] : memref<121xf32, #tpu.memory_space<smem>>
    %c77 = arith.constant 77 : index
    %110 = memref.load %arg3[%c77] : memref<121xf32, #tpu.memory_space<smem>>
    %c78 = arith.constant 78 : index
    %111 = memref.load %arg3[%c78] : memref<121xf32, #tpu.memory_space<smem>>
    %c79 = arith.constant 79 : index
    %112 = memref.load %arg3[%c79] : memref<121xf32, #tpu.memory_space<smem>>
    %c80 = arith.constant 80 : index
    %113 = memref.load %arg3[%c80] : memref<121xf32, #tpu.memory_space<smem>>
    %c81 = arith.constant 81 : index
    %114 = memref.load %arg3[%c81] : memref<121xf32, #tpu.memory_space<smem>>
    %c82 = arith.constant 82 : index
    %115 = memref.load %arg3[%c82] : memref<121xf32, #tpu.memory_space<smem>>
    %c83 = arith.constant 83 : index
    %116 = memref.load %arg3[%c83] : memref<121xf32, #tpu.memory_space<smem>>
    %c84 = arith.constant 84 : index
    %117 = memref.load %arg3[%c84] : memref<121xf32, #tpu.memory_space<smem>>
    %c85 = arith.constant 85 : index
    %118 = memref.load %arg3[%c85] : memref<121xf32, #tpu.memory_space<smem>>
    %c86 = arith.constant 86 : index
    %119 = memref.load %arg3[%c86] : memref<121xf32, #tpu.memory_space<smem>>
    %c87 = arith.constant 87 : index
    %120 = memref.load %arg3[%c87] : memref<121xf32, #tpu.memory_space<smem>>
    %c88 = arith.constant 88 : index
    %121 = memref.load %arg3[%c88] : memref<121xf32, #tpu.memory_space<smem>>
    %c89 = arith.constant 89 : index
    %122 = memref.load %arg3[%c89] : memref<121xf32, #tpu.memory_space<smem>>
    %c90 = arith.constant 90 : index
    %123 = memref.load %arg3[%c90] : memref<121xf32, #tpu.memory_space<smem>>
    %c91 = arith.constant 91 : index
    %124 = memref.load %arg3[%c91] : memref<121xf32, #tpu.memory_space<smem>>
    %c92 = arith.constant 92 : index
    %125 = memref.load %arg3[%c92] : memref<121xf32, #tpu.memory_space<smem>>
    %c93 = arith.constant 93 : index
    %126 = memref.load %arg3[%c93] : memref<121xf32, #tpu.memory_space<smem>>
    %c94 = arith.constant 94 : index
    %127 = memref.load %arg3[%c94] : memref<121xf32, #tpu.memory_space<smem>>
    %c95 = arith.constant 95 : index
    %128 = memref.load %arg3[%c95] : memref<121xf32, #tpu.memory_space<smem>>
    %c96 = arith.constant 96 : index
    %129 = memref.load %arg3[%c96] : memref<121xf32, #tpu.memory_space<smem>>
    %c97 = arith.constant 97 : index
    %130 = memref.load %arg3[%c97] : memref<121xf32, #tpu.memory_space<smem>>
    %c98 = arith.constant 98 : index
    %131 = memref.load %arg3[%c98] : memref<121xf32, #tpu.memory_space<smem>>
    %c99 = arith.constant 99 : index
    %132 = memref.load %arg3[%c99] : memref<121xf32, #tpu.memory_space<smem>>
    %c100 = arith.constant 100 : index
    %133 = memref.load %arg3[%c100] : memref<121xf32, #tpu.memory_space<smem>>
    %c101 = arith.constant 101 : index
    %134 = memref.load %arg3[%c101] : memref<121xf32, #tpu.memory_space<smem>>
    %c102 = arith.constant 102 : index
    %135 = memref.load %arg3[%c102] : memref<121xf32, #tpu.memory_space<smem>>
    %c103 = arith.constant 103 : index
    %136 = memref.load %arg3[%c103] : memref<121xf32, #tpu.memory_space<smem>>
    %c104 = arith.constant 104 : index
    %137 = memref.load %arg3[%c104] : memref<121xf32, #tpu.memory_space<smem>>
    %c105 = arith.constant 105 : index
    %138 = memref.load %arg3[%c105] : memref<121xf32, #tpu.memory_space<smem>>
    %c106 = arith.constant 106 : index
    %139 = memref.load %arg3[%c106] : memref<121xf32, #tpu.memory_space<smem>>
    %c107 = arith.constant 107 : index
    %140 = memref.load %arg3[%c107] : memref<121xf32, #tpu.memory_space<smem>>
    %c108 = arith.constant 108 : index
    %141 = memref.load %arg3[%c108] : memref<121xf32, #tpu.memory_space<smem>>
    %c109 = arith.constant 109 : index
    %142 = memref.load %arg3[%c109] : memref<121xf32, #tpu.memory_space<smem>>
    %c110 = arith.constant 110 : index
    %143 = memref.load %arg3[%c110] : memref<121xf32, #tpu.memory_space<smem>>
    %c111 = arith.constant 111 : index
    %144 = memref.load %arg3[%c111] : memref<121xf32, #tpu.memory_space<smem>>
    %c112 = arith.constant 112 : index
    %145 = memref.load %arg3[%c112] : memref<121xf32, #tpu.memory_space<smem>>
    %c113 = arith.constant 113 : index
    %146 = memref.load %arg3[%c113] : memref<121xf32, #tpu.memory_space<smem>>
    %c114 = arith.constant 114 : index
    %147 = memref.load %arg3[%c114] : memref<121xf32, #tpu.memory_space<smem>>
    %c115 = arith.constant 115 : index
    %148 = memref.load %arg3[%c115] : memref<121xf32, #tpu.memory_space<smem>>
    %c116 = arith.constant 116 : index
    %149 = memref.load %arg3[%c116] : memref<121xf32, #tpu.memory_space<smem>>
    %c117 = arith.constant 117 : index
    %150 = memref.load %arg3[%c117] : memref<121xf32, #tpu.memory_space<smem>>
    %c118 = arith.constant 118 : index
    %151 = memref.load %arg3[%c118] : memref<121xf32, #tpu.memory_space<smem>>
    %c119 = arith.constant 119 : index
    %152 = memref.load %arg3[%c119] : memref<121xf32, #tpu.memory_space<smem>>
    %c120 = arith.constant 120 : index
    %153 = memref.load %arg3[%c120] : memref<121xf32, #tpu.memory_space<smem>>
    %c0_33 = arith.constant 0 : index
    %154 = memref.load %arg4[%c0_33] : memref<11xf32, #tpu.memory_space<smem>>
    %c1_34 = arith.constant 1 : index
    %155 = memref.load %arg4[%c1_34] : memref<11xf32, #tpu.memory_space<smem>>
    %c2_35 = arith.constant 2 : index
    %156 = memref.load %arg4[%c2_35] : memref<11xf32, #tpu.memory_space<smem>>
    %c3_36 = arith.constant 3 : index
    %157 = memref.load %arg4[%c3_36] : memref<11xf32, #tpu.memory_space<smem>>
    %c4_37 = arith.constant 4 : index
    %158 = memref.load %arg4[%c4_37] : memref<11xf32, #tpu.memory_space<smem>>
    %c5_38 = arith.constant 5 : index
    %159 = memref.load %arg4[%c5_38] : memref<11xf32, #tpu.memory_space<smem>>
    %c6_39 = arith.constant 6 : index
    %160 = memref.load %arg4[%c6_39] : memref<11xf32, #tpu.memory_space<smem>>
    %c7_40 = arith.constant 7 : index
    %161 = memref.load %arg4[%c7_40] : memref<11xf32, #tpu.memory_space<smem>>
    %c8_41 = arith.constant 8 : index
    %162 = memref.load %arg4[%c8_41] : memref<11xf32, #tpu.memory_space<smem>>
    %c9_42 = arith.constant 9 : index
    %163 = memref.load %arg4[%c9_42] : memref<11xf32, #tpu.memory_space<smem>>
    %c10_43 = arith.constant 10 : index
    %164 = memref.load %arg4[%c10_43] : memref<11xf32, #tpu.memory_space<smem>>
    %c0_44 = arith.constant 0 : index
    %165 = memref.load %arg5[%c0_44] : memref<22xf32, #tpu.memory_space<smem>>
    %c1_45 = arith.constant 1 : index
    %166 = memref.load %arg5[%c1_45] : memref<22xf32, #tpu.memory_space<smem>>
    %c2_46 = arith.constant 2 : index
    %167 = memref.load %arg5[%c2_46] : memref<22xf32, #tpu.memory_space<smem>>
    %c3_47 = arith.constant 3 : index
    %168 = memref.load %arg5[%c3_47] : memref<22xf32, #tpu.memory_space<smem>>
    %c4_48 = arith.constant 4 : index
    %169 = memref.load %arg5[%c4_48] : memref<22xf32, #tpu.memory_space<smem>>
    %c5_49 = arith.constant 5 : index
    %170 = memref.load %arg5[%c5_49] : memref<22xf32, #tpu.memory_space<smem>>
    %c6_50 = arith.constant 6 : index
    %171 = memref.load %arg5[%c6_50] : memref<22xf32, #tpu.memory_space<smem>>
    %c7_51 = arith.constant 7 : index
    %172 = memref.load %arg5[%c7_51] : memref<22xf32, #tpu.memory_space<smem>>
    %c8_52 = arith.constant 8 : index
    %173 = memref.load %arg5[%c8_52] : memref<22xf32, #tpu.memory_space<smem>>
    %c9_53 = arith.constant 9 : index
    %174 = memref.load %arg5[%c9_53] : memref<22xf32, #tpu.memory_space<smem>>
    %c10_54 = arith.constant 10 : index
    %175 = memref.load %arg5[%c10_54] : memref<22xf32, #tpu.memory_space<smem>>
    %c11_55 = arith.constant 11 : index
    %176 = memref.load %arg5[%c11_55] : memref<22xf32, #tpu.memory_space<smem>>
    %c12_56 = arith.constant 12 : index
    %177 = memref.load %arg5[%c12_56] : memref<22xf32, #tpu.memory_space<smem>>
    %c13_57 = arith.constant 13 : index
    %178 = memref.load %arg5[%c13_57] : memref<22xf32, #tpu.memory_space<smem>>
    %c14_58 = arith.constant 14 : index
    %179 = memref.load %arg5[%c14_58] : memref<22xf32, #tpu.memory_space<smem>>
    %c15_59 = arith.constant 15 : index
    %180 = memref.load %arg5[%c15_59] : memref<22xf32, #tpu.memory_space<smem>>
    %c16_60 = arith.constant 16 : index
    %181 = memref.load %arg5[%c16_60] : memref<22xf32, #tpu.memory_space<smem>>
    %c17_61 = arith.constant 17 : index
    %182 = memref.load %arg5[%c17_61] : memref<22xf32, #tpu.memory_space<smem>>
    %c18_62 = arith.constant 18 : index
    %183 = memref.load %arg5[%c18_62] : memref<22xf32, #tpu.memory_space<smem>>
    %c19_63 = arith.constant 19 : index
    %184 = memref.load %arg5[%c19_63] : memref<22xf32, #tpu.memory_space<smem>>
    %c20_64 = arith.constant 20 : index
    %185 = memref.load %arg5[%c20_64] : memref<22xf32, #tpu.memory_space<smem>>
    %c21_65 = arith.constant 21 : index
    %186 = memref.load %arg5[%c21_65] : memref<22xf32, #tpu.memory_space<smem>>
    %c0_66 = arith.constant 0 : index
    %187 = memref.load %arg6[%c0_66] : memref<2xf32, #tpu.memory_space<smem>>
    %c1_67 = arith.constant 1 : index
    %188 = memref.load %arg6[%c1_67] : memref<2xf32, #tpu.memory_space<smem>>
    %c0_i32 = arith.constant 0 : i32
    %c8_i32 = arith.constant 8 : i32
    %189 = arith.muli %c0_i32, %c8_i32 : i32
    %190 = tpu.assume_multiple %189, 8 : i32
    %c0_68 = arith.constant 0 : index
    %191 = arith.index_cast %190 : i32 to index
    %c0_69 = arith.constant 0 : index
    %192 = vector.load %arg7[%c0_68, %191, %c0_69] : memref<2x16x128xf32, #tpu.memory_space<vmem>>, vector<1x8x128xf32>
    %193 = vector.shape_cast %192 : vector<1x8x128xf32> to vector<8x128xf32>
    %c1_70 = arith.constant 1 : index
    %194 = arith.index_cast %190 : i32 to index
    %c0_71 = arith.constant 0 : index
    %195 = vector.load %arg7[%c1_70, %194, %c0_71] : memref<2x16x128xf32, #tpu.memory_space<vmem>>, vector<1x8x128xf32>
    %196 = vector.shape_cast %195 : vector<1x8x128xf32> to vector<8x128xf32>
    %197 = vector.broadcast %0 : f32 to vector<8x128xf32>
    %198 = arith.mulf %193, %197 : vector<8x128xf32>
    %199 = vector.broadcast %1 : f32 to vector<8x128xf32>
    %200 = arith.mulf %196, %199 : vector<8x128xf32>
    %201 = arith.addf %198, %200 : vector<8x128xf32>
    %202 = vector.broadcast %22 : f32 to vector<8x128xf32>
    %203 = arith.addf %201, %202 : vector<8x128xf32>
    %cst = arith.constant 0.000000e+00 : f32
    %204 = vector.broadcast %cst : f32 to vector<8x128xf32>
    %205 = arith.maximumf %203, %204 : vector<8x128xf32>
    %206 = vector.broadcast %2 : f32 to vector<8x128xf32>
    %207 = arith.mulf %193, %206 : vector<8x128xf32>
    %208 = vector.broadcast %3 : f32 to vector<8x128xf32>
    %209 = arith.mulf %196, %208 : vector<8x128xf32>
    %210 = arith.addf %207, %209 : vector<8x128xf32>
    %211 = vector.broadcast %23 : f32 to vector<8x128xf32>
    %212 = arith.addf %210, %211 : vector<8x128xf32>
    %cst_72 = arith.constant 0.000000e+00 : f32
    %213 = vector.broadcast %cst_72 : f32 to vector<8x128xf32>
    %214 = arith.maximumf %212, %213 : vector<8x128xf32>
    %215 = vector.broadcast %4 : f32 to vector<8x128xf32>
    %216 = arith.mulf %193, %215 : vector<8x128xf32>
    %217 = vector.broadcast %5 : f32 to vector<8x128xf32>
    %218 = arith.mulf %196, %217 : vector<8x128xf32>
    %219 = arith.addf %216, %218 : vector<8x128xf32>
    %220 = vector.broadcast %24 : f32 to vector<8x128xf32>
    %221 = arith.addf %219, %220 : vector<8x128xf32>
    %cst_73 = arith.constant 0.000000e+00 : f32
    %222 = vector.broadcast %cst_73 : f32 to vector<8x128xf32>
    %223 = arith.maximumf %221, %222 : vector<8x128xf32>
    %224 = vector.broadcast %6 : f32 to vector<8x128xf32>
    %225 = arith.mulf %193, %224 : vector<8x128xf32>
    %226 = vector.broadcast %7 : f32 to vector<8x128xf32>
    %227 = arith.mulf %196, %226 : vector<8x128xf32>
    %228 = arith.addf %225, %227 : vector<8x128xf32>
    %229 = vector.broadcast %25 : f32 to vector<8x128xf32>
    %230 = arith.addf %228, %229 : vector<8x128xf32>
    %cst_74 = arith.constant 0.000000e+00 : f32
    %231 = vector.broadcast %cst_74 : f32 to vector<8x128xf32>
    %232 = arith.maximumf %230, %231 : vector<8x128xf32>
    %233 = vector.broadcast %8 : f32 to vector<8x128xf32>
    %234 = arith.mulf %193, %233 : vector<8x128xf32>
    %235 = vector.broadcast %9 : f32 to vector<8x128xf32>
    %236 = arith.mulf %196, %235 : vector<8x128xf32>
    %237 = arith.addf %234, %236 : vector<8x128xf32>
    %238 = vector.broadcast %26 : f32 to vector<8x128xf32>
    %239 = arith.addf %237, %238 : vector<8x128xf32>
    %cst_75 = arith.constant 0.000000e+00 : f32
    %240 = vector.broadcast %cst_75 : f32 to vector<8x128xf32>
    %241 = arith.maximumf %239, %240 : vector<8x128xf32>
    %242 = vector.broadcast %10 : f32 to vector<8x128xf32>
    %243 = arith.mulf %193, %242 : vector<8x128xf32>
    %244 = vector.broadcast %11 : f32 to vector<8x128xf32>
    %245 = arith.mulf %196, %244 : vector<8x128xf32>
    %246 = arith.addf %243, %245 : vector<8x128xf32>
    %247 = vector.broadcast %27 : f32 to vector<8x128xf32>
    %248 = arith.addf %246, %247 : vector<8x128xf32>
    %cst_76 = arith.constant 0.000000e+00 : f32
    %249 = vector.broadcast %cst_76 : f32 to vector<8x128xf32>
    %250 = arith.maximumf %248, %249 : vector<8x128xf32>
    %251 = vector.broadcast %12 : f32 to vector<8x128xf32>
    %252 = arith.mulf %193, %251 : vector<8x128xf32>
    %253 = vector.broadcast %13 : f32 to vector<8x128xf32>
    %254 = arith.mulf %196, %253 : vector<8x128xf32>
    %255 = arith.addf %252, %254 : vector<8x128xf32>
    %256 = vector.broadcast %28 : f32 to vector<8x128xf32>
    %257 = arith.addf %255, %256 : vector<8x128xf32>
    %cst_77 = arith.constant 0.000000e+00 : f32
    %258 = vector.broadcast %cst_77 : f32 to vector<8x128xf32>
    %259 = arith.maximumf %257, %258 : vector<8x128xf32>
    %260 = vector.broadcast %14 : f32 to vector<8x128xf32>
    %261 = arith.mulf %193, %260 : vector<8x128xf32>
    %262 = vector.broadcast %15 : f32 to vector<8x128xf32>
    %263 = arith.mulf %196, %262 : vector<8x128xf32>
    %264 = arith.addf %261, %263 : vector<8x128xf32>
    %265 = vector.broadcast %29 : f32 to vector<8x128xf32>
    %266 = arith.addf %264, %265 : vector<8x128xf32>
    %cst_78 = arith.constant 0.000000e+00 : f32
    %267 = vector.broadcast %cst_78 : f32 to vector<8x128xf32>
    %268 = arith.maximumf %266, %267 : vector<8x128xf32>
    %269 = vector.broadcast %16 : f32 to vector<8x128xf32>
    %270 = arith.mulf %193, %269 : vector<8x128xf32>
    %271 = vector.broadcast %17 : f32 to vector<8x128xf32>
    %272 = arith.mulf %196, %271 : vector<8x128xf32>
    %273 = arith.addf %270, %272 : vector<8x128xf32>
    %274 = vector.broadcast %30 : f32 to vector<8x128xf32>
    %275 = arith.addf %273, %274 : vector<8x128xf32>
    %cst_79 = arith.constant 0.000000e+00 : f32
    %276 = vector.broadcast %cst_79 : f32 to vector<8x128xf32>
    %277 = arith.maximumf %275, %276 : vector<8x128xf32>
    %278 = vector.broadcast %18 : f32 to vector<8x128xf32>
    %279 = arith.mulf %193, %278 : vector<8x128xf32>
    %280 = vector.broadcast %19 : f32 to vector<8x128xf32>
    %281 = arith.mulf %196, %280 : vector<8x128xf32>
    %282 = arith.addf %279, %281 : vector<8x128xf32>
    %283 = vector.broadcast %31 : f32 to vector<8x128xf32>
    %284 = arith.addf %282, %283 : vector<8x128xf32>
    %cst_80 = arith.constant 0.000000e+00 : f32
    %285 = vector.broadcast %cst_80 : f32 to vector<8x128xf32>
    %286 = arith.maximumf %284, %285 : vector<8x128xf32>
    %287 = vector.broadcast %20 : f32 to vector<8x128xf32>
    %288 = arith.mulf %193, %287 : vector<8x128xf32>
    %289 = vector.broadcast %21 : f32 to vector<8x128xf32>
    %290 = arith.mulf %196, %289 : vector<8x128xf32>
    %291 = arith.addf %288, %290 : vector<8x128xf32>
    %292 = vector.broadcast %32 : f32 to vector<8x128xf32>
    %293 = arith.addf %291, %292 : vector<8x128xf32>
    %cst_81 = arith.constant 0.000000e+00 : f32
    %294 = vector.broadcast %cst_81 : f32 to vector<8x128xf32>
    %295 = arith.maximumf %293, %294 : vector<8x128xf32>
    %296 = vector.broadcast %33 : f32 to vector<8x128xf32>
    %297 = arith.mulf %205, %296 : vector<8x128xf32>
    %298 = vector.broadcast %34 : f32 to vector<8x128xf32>
    %299 = arith.mulf %214, %298 : vector<8x128xf32>
    %300 = arith.addf %297, %299 : vector<8x128xf32>
    %301 = vector.broadcast %35 : f32 to vector<8x128xf32>
    %302 = arith.mulf %223, %301 : vector<8x128xf32>
    %303 = arith.addf %300, %302 : vector<8x128xf32>
    %304 = vector.broadcast %36 : f32 to vector<8x128xf32>
    %305 = arith.mulf %232, %304 : vector<8x128xf32>
    %306 = arith.addf %303, %305 : vector<8x128xf32>
    %307 = vector.broadcast %37 : f32 to vector<8x128xf32>
    %308 = arith.mulf %241, %307 : vector<8x128xf32>
    %309 = arith.addf %306, %308 : vector<8x128xf32>
    %310 = vector.broadcast %38 : f32 to vector<8x128xf32>
    %311 = arith.mulf %250, %310 : vector<8x128xf32>
    %312 = arith.addf %309, %311 : vector<8x128xf32>
    %313 = vector.broadcast %39 : f32 to vector<8x128xf32>
    %314 = arith.mulf %259, %313 : vector<8x128xf32>
    %315 = arith.addf %312, %314 : vector<8x128xf32>
    %316 = vector.broadcast %40 : f32 to vector<8x128xf32>
    %317 = arith.mulf %268, %316 : vector<8x128xf32>
    %318 = arith.addf %315, %317 : vector<8x128xf32>
    %319 = vector.broadcast %41 : f32 to vector<8x128xf32>
    %320 = arith.mulf %277, %319 : vector<8x128xf32>
    %321 = arith.addf %318, %320 : vector<8x128xf32>
    %322 = vector.broadcast %42 : f32 to vector<8x128xf32>
    %323 = arith.mulf %286, %322 : vector<8x128xf32>
    %324 = arith.addf %321, %323 : vector<8x128xf32>
    %325 = vector.broadcast %43 : f32 to vector<8x128xf32>
    %326 = arith.mulf %295, %325 : vector<8x128xf32>
    %327 = arith.addf %324, %326 : vector<8x128xf32>
    %328 = vector.broadcast %154 : f32 to vector<8x128xf32>
    %329 = arith.addf %327, %328 : vector<8x128xf32>
    %cst_82 = arith.constant 0.000000e+00 : f32
    %330 = vector.broadcast %cst_82 : f32 to vector<8x128xf32>
    %331 = arith.maximumf %329, %330 : vector<8x128xf32>
    %332 = vector.broadcast %44 : f32 to vector<8x128xf32>
    %333 = arith.mulf %205, %332 : vector<8x128xf32>
    %334 = vector.broadcast %45 : f32 to vector<8x128xf32>
    %335 = arith.mulf %214, %334 : vector<8x128xf32>
    %336 = arith.addf %333, %335 : vector<8x128xf32>
    %337 = vector.broadcast %46 : f32 to vector<8x128xf32>
    %338 = arith.mulf %223, %337 : vector<8x128xf32>
    %339 = arith.addf %336, %338 : vector<8x128xf32>
    %340 = vector.broadcast %47 : f32 to vector<8x128xf32>
    %341 = arith.mulf %232, %340 : vector<8x128xf32>
    %342 = arith.addf %339, %341 : vector<8x128xf32>
    %343 = vector.broadcast %48 : f32 to vector<8x128xf32>
    %344 = arith.mulf %241, %343 : vector<8x128xf32>
    %345 = arith.addf %342, %344 : vector<8x128xf32>
    %346 = vector.broadcast %49 : f32 to vector<8x128xf32>
    %347 = arith.mulf %250, %346 : vector<8x128xf32>
    %348 = arith.addf %345, %347 : vector<8x128xf32>
    %349 = vector.broadcast %50 : f32 to vector<8x128xf32>
    %350 = arith.mulf %259, %349 : vector<8x128xf32>
    %351 = arith.addf %348, %350 : vector<8x128xf32>
    %352 = vector.broadcast %51 : f32 to vector<8x128xf32>
    %353 = arith.mulf %268, %352 : vector<8x128xf32>
    %354 = arith.addf %351, %353 : vector<8x128xf32>
    %355 = vector.broadcast %52 : f32 to vector<8x128xf32>
    %356 = arith.mulf %277, %355 : vector<8x128xf32>
    %357 = arith.addf %354, %356 : vector<8x128xf32>
    %358 = vector.broadcast %53 : f32 to vector<8x128xf32>
    %359 = arith.mulf %286, %358 : vector<8x128xf32>
    %360 = arith.addf %357, %359 : vector<8x128xf32>
    %361 = vector.broadcast %54 : f32 to vector<8x128xf32>
    %362 = arith.mulf %295, %361 : vector<8x128xf32>
    %363 = arith.addf %360, %362 : vector<8x128xf32>
    %364 = vector.broadcast %155 : f32 to vector<8x128xf32>
    %365 = arith.addf %363, %364 : vector<8x128xf32>
    %cst_83 = arith.constant 0.000000e+00 : f32
    %366 = vector.broadcast %cst_83 : f32 to vector<8x128xf32>
    %367 = arith.maximumf %365, %366 : vector<8x128xf32>
    %368 = vector.broadcast %55 : f32 to vector<8x128xf32>
    %369 = arith.mulf %205, %368 : vector<8x128xf32>
    %370 = vector.broadcast %56 : f32 to vector<8x128xf32>
    %371 = arith.mulf %214, %370 : vector<8x128xf32>
    %372 = arith.addf %369, %371 : vector<8x128xf32>
    %373 = vector.broadcast %57 : f32 to vector<8x128xf32>
    %374 = arith.mulf %223, %373 : vector<8x128xf32>
    %375 = arith.addf %372, %374 : vector<8x128xf32>
    %376 = vector.broadcast %58 : f32 to vector<8x128xf32>
    %377 = arith.mulf %232, %376 : vector<8x128xf32>
    %378 = arith.addf %375, %377 : vector<8x128xf32>
    %379 = vector.broadcast %59 : f32 to vector<8x128xf32>
    %380 = arith.mulf %241, %379 : vector<8x128xf32>
    %381 = arith.addf %378, %380 : vector<8x128xf32>
    %382 = vector.broadcast %60 : f32 to vector<8x128xf32>
    %383 = arith.mulf %250, %382 : vector<8x128xf32>
    %384 = arith.addf %381, %383 : vector<8x128xf32>
    %385 = vector.broadcast %61 : f32 to vector<8x128xf32>
    %386 = arith.mulf %259, %385 : vector<8x128xf32>
    %387 = arith.addf %384, %386 : vector<8x128xf32>
    %388 = vector.broadcast %62 : f32 to vector<8x128xf32>
    %389 = arith.mulf %268, %388 : vector<8x128xf32>
    %390 = arith.addf %387, %389 : vector<8x128xf32>
    %391 = vector.broadcast %63 : f32 to vector<8x128xf32>
    %392 = arith.mulf %277, %391 : vector<8x128xf32>
    %393 = arith.addf %390, %392 : vector<8x128xf32>
    %394 = vector.broadcast %64 : f32 to vector<8x128xf32>
    %395 = arith.mulf %286, %394 : vector<8x128xf32>
    %396 = arith.addf %393, %395 : vector<8x128xf32>
    %397 = vector.broadcast %65 : f32 to vector<8x128xf32>
    %398 = arith.mulf %295, %397 : vector<8x128xf32>
    %399 = arith.addf %396, %398 : vector<8x128xf32>
    %400 = vector.broadcast %156 : f32 to vector<8x128xf32>
    %401 = arith.addf %399, %400 : vector<8x128xf32>
    %cst_84 = arith.constant 0.000000e+00 : f32
    %402 = vector.broadcast %cst_84 : f32 to vector<8x128xf32>
    %403 = arith.maximumf %401, %402 : vector<8x128xf32>
    %404 = vector.broadcast %66 : f32 to vector<8x128xf32>
    %405 = arith.mulf %205, %404 : vector<8x128xf32>
    %406 = vector.broadcast %67 : f32 to vector<8x128xf32>
    %407 = arith.mulf %214, %406 : vector<8x128xf32>
    %408 = arith.addf %405, %407 : vector<8x128xf32>
    %409 = vector.broadcast %68 : f32 to vector<8x128xf32>
    %410 = arith.mulf %223, %409 : vector<8x128xf32>
    %411 = arith.addf %408, %410 : vector<8x128xf32>
    %412 = vector.broadcast %69 : f32 to vector<8x128xf32>
    %413 = arith.mulf %232, %412 : vector<8x128xf32>
    %414 = arith.addf %411, %413 : vector<8x128xf32>
    %415 = vector.broadcast %70 : f32 to vector<8x128xf32>
    %416 = arith.mulf %241, %415 : vector<8x128xf32>
    %417 = arith.addf %414, %416 : vector<8x128xf32>
    %418 = vector.broadcast %71 : f32 to vector<8x128xf32>
    %419 = arith.mulf %250, %418 : vector<8x128xf32>
    %420 = arith.addf %417, %419 : vector<8x128xf32>
    %421 = vector.broadcast %72 : f32 to vector<8x128xf32>
    %422 = arith.mulf %259, %421 : vector<8x128xf32>
    %423 = arith.addf %420, %422 : vector<8x128xf32>
    %424 = vector.broadcast %73 : f32 to vector<8x128xf32>
    %425 = arith.mulf %268, %424 : vector<8x128xf32>
    %426 = arith.addf %423, %425 : vector<8x128xf32>
    %427 = vector.broadcast %74 : f32 to vector<8x128xf32>
    %428 = arith.mulf %277, %427 : vector<8x128xf32>
    %429 = arith.addf %426, %428 : vector<8x128xf32>
    %430 = vector.broadcast %75 : f32 to vector<8x128xf32>
    %431 = arith.mulf %286, %430 : vector<8x128xf32>
    %432 = arith.addf %429, %431 : vector<8x128xf32>
    %433 = vector.broadcast %76 : f32 to vector<8x128xf32>
    %434 = arith.mulf %295, %433 : vector<8x128xf32>
    %435 = arith.addf %432, %434 : vector<8x128xf32>
    %436 = vector.broadcast %157 : f32 to vector<8x128xf32>
    %437 = arith.addf %435, %436 : vector<8x128xf32>
    %cst_85 = arith.constant 0.000000e+00 : f32
    %438 = vector.broadcast %cst_85 : f32 to vector<8x128xf32>
    %439 = arith.maximumf %437, %438 : vector<8x128xf32>
    %440 = vector.broadcast %77 : f32 to vector<8x128xf32>
    %441 = arith.mulf %205, %440 : vector<8x128xf32>
    %442 = vector.broadcast %78 : f32 to vector<8x128xf32>
    %443 = arith.mulf %214, %442 : vector<8x128xf32>
    %444 = arith.addf %441, %443 : vector<8x128xf32>
    %445 = vector.broadcast %79 : f32 to vector<8x128xf32>
    %446 = arith.mulf %223, %445 : vector<8x128xf32>
    %447 = arith.addf %444, %446 : vector<8x128xf32>
    %448 = vector.broadcast %80 : f32 to vector<8x128xf32>
    %449 = arith.mulf %232, %448 : vector<8x128xf32>
    %450 = arith.addf %447, %449 : vector<8x128xf32>
    %451 = vector.broadcast %81 : f32 to vector<8x128xf32>
    %452 = arith.mulf %241, %451 : vector<8x128xf32>
    %453 = arith.addf %450, %452 : vector<8x128xf32>
    %454 = vector.broadcast %82 : f32 to vector<8x128xf32>
    %455 = arith.mulf %250, %454 : vector<8x128xf32>
    %456 = arith.addf %453, %455 : vector<8x128xf32>
    %457 = vector.broadcast %83 : f32 to vector<8x128xf32>
    %458 = arith.mulf %259, %457 : vector<8x128xf32>
    %459 = arith.addf %456, %458 : vector<8x128xf32>
    %460 = vector.broadcast %84 : f32 to vector<8x128xf32>
    %461 = arith.mulf %268, %460 : vector<8x128xf32>
    %462 = arith.addf %459, %461 : vector<8x128xf32>
    %463 = vector.broadcast %85 : f32 to vector<8x128xf32>
    %464 = arith.mulf %277, %463 : vector<8x128xf32>
    %465 = arith.addf %462, %464 : vector<8x128xf32>
    %466 = vector.broadcast %86 : f32 to vector<8x128xf32>
    %467 = arith.mulf %286, %466 : vector<8x128xf32>
    %468 = arith.addf %465, %467 : vector<8x128xf32>
    %469 = vector.broadcast %87 : f32 to vector<8x128xf32>
    %470 = arith.mulf %295, %469 : vector<8x128xf32>
    %471 = arith.addf %468, %470 : vector<8x128xf32>
    %472 = vector.broadcast %158 : f32 to vector<8x128xf32>
    %473 = arith.addf %471, %472 : vector<8x128xf32>
    %cst_86 = arith.constant 0.000000e+00 : f32
    %474 = vector.broadcast %cst_86 : f32 to vector<8x128xf32>
    %475 = arith.maximumf %473, %474 : vector<8x128xf32>
    %476 = vector.broadcast %88 : f32 to vector<8x128xf32>
    %477 = arith.mulf %205, %476 : vector<8x128xf32>
    %478 = vector.broadcast %89 : f32 to vector<8x128xf32>
    %479 = arith.mulf %214, %478 : vector<8x128xf32>
    %480 = arith.addf %477, %479 : vector<8x128xf32>
    %481 = vector.broadcast %90 : f32 to vector<8x128xf32>
    %482 = arith.mulf %223, %481 : vector<8x128xf32>
    %483 = arith.addf %480, %482 : vector<8x128xf32>
    %484 = vector.broadcast %91 : f32 to vector<8x128xf32>
    %485 = arith.mulf %232, %484 : vector<8x128xf32>
    %486 = arith.addf %483, %485 : vector<8x128xf32>
    %487 = vector.broadcast %92 : f32 to vector<8x128xf32>
    %488 = arith.mulf %241, %487 : vector<8x128xf32>
    %489 = arith.addf %486, %488 : vector<8x128xf32>
    %490 = vector.broadcast %93 : f32 to vector<8x128xf32>
    %491 = arith.mulf %250, %490 : vector<8x128xf32>
    %492 = arith.addf %489, %491 : vector<8x128xf32>
    %493 = vector.broadcast %94 : f32 to vector<8x128xf32>
    %494 = arith.mulf %259, %493 : vector<8x128xf32>
    %495 = arith.addf %492, %494 : vector<8x128xf32>
    %496 = vector.broadcast %95 : f32 to vector<8x128xf32>
    %497 = arith.mulf %268, %496 : vector<8x128xf32>
    %498 = arith.addf %495, %497 : vector<8x128xf32>
    %499 = vector.broadcast %96 : f32 to vector<8x128xf32>
    %500 = arith.mulf %277, %499 : vector<8x128xf32>
    %501 = arith.addf %498, %500 : vector<8x128xf32>
    %502 = vector.broadcast %97 : f32 to vector<8x128xf32>
    %503 = arith.mulf %286, %502 : vector<8x128xf32>
    %504 = arith.addf %501, %503 : vector<8x128xf32>
    %505 = vector.broadcast %98 : f32 to vector<8x128xf32>
    %506 = arith.mulf %295, %505 : vector<8x128xf32>
    %507 = arith.addf %504, %506 : vector<8x128xf32>
    %508 = vector.broadcast %159 : f32 to vector<8x128xf32>
    %509 = arith.addf %507, %508 : vector<8x128xf32>
    %cst_87 = arith.constant 0.000000e+00 : f32
    %510 = vector.broadcast %cst_87 : f32 to vector<8x128xf32>
    %511 = arith.maximumf %509, %510 : vector<8x128xf32>
    %512 = vector.broadcast %99 : f32 to vector<8x128xf32>
    %513 = arith.mulf %205, %512 : vector<8x128xf32>
    %514 = vector.broadcast %100 : f32 to vector<8x128xf32>
    %515 = arith.mulf %214, %514 : vector<8x128xf32>
    %516 = arith.addf %513, %515 : vector<8x128xf32>
    %517 = vector.broadcast %101 : f32 to vector<8x128xf32>
    %518 = arith.mulf %223, %517 : vector<8x128xf32>
    %519 = arith.addf %516, %518 : vector<8x128xf32>
    %520 = vector.broadcast %102 : f32 to vector<8x128xf32>
    %521 = arith.mulf %232, %520 : vector<8x128xf32>
    %522 = arith.addf %519, %521 : vector<8x128xf32>
    %523 = vector.broadcast %103 : f32 to vector<8x128xf32>
    %524 = arith.mulf %241, %523 : vector<8x128xf32>
    %525 = arith.addf %522, %524 : vector<8x128xf32>
    %526 = vector.broadcast %104 : f32 to vector<8x128xf32>
    %527 = arith.mulf %250, %526 : vector<8x128xf32>
    %528 = arith.addf %525, %527 : vector<8x128xf32>
    %529 = vector.broadcast %105 : f32 to vector<8x128xf32>
    %530 = arith.mulf %259, %529 : vector<8x128xf32>
    %531 = arith.addf %528, %530 : vector<8x128xf32>
    %532 = vector.broadcast %106 : f32 to vector<8x128xf32>
    %533 = arith.mulf %268, %532 : vector<8x128xf32>
    %534 = arith.addf %531, %533 : vector<8x128xf32>
    %535 = vector.broadcast %107 : f32 to vector<8x128xf32>
    %536 = arith.mulf %277, %535 : vector<8x128xf32>
    %537 = arith.addf %534, %536 : vector<8x128xf32>
    %538 = vector.broadcast %108 : f32 to vector<8x128xf32>
    %539 = arith.mulf %286, %538 : vector<8x128xf32>
    %540 = arith.addf %537, %539 : vector<8x128xf32>
    %541 = vector.broadcast %109 : f32 to vector<8x128xf32>
    %542 = arith.mulf %295, %541 : vector<8x128xf32>
    %543 = arith.addf %540, %542 : vector<8x128xf32>
    %544 = vector.broadcast %160 : f32 to vector<8x128xf32>
    %545 = arith.addf %543, %544 : vector<8x128xf32>
    %cst_88 = arith.constant 0.000000e+00 : f32
    %546 = vector.broadcast %cst_88 : f32 to vector<8x128xf32>
    %547 = arith.maximumf %545, %546 : vector<8x128xf32>
    %548 = vector.broadcast %110 : f32 to vector<8x128xf32>
    %549 = arith.mulf %205, %548 : vector<8x128xf32>
    %550 = vector.broadcast %111 : f32 to vector<8x128xf32>
    %551 = arith.mulf %214, %550 : vector<8x128xf32>
    %552 = arith.addf %549, %551 : vector<8x128xf32>
    %553 = vector.broadcast %112 : f32 to vector<8x128xf32>
    %554 = arith.mulf %223, %553 : vector<8x128xf32>
    %555 = arith.addf %552, %554 : vector<8x128xf32>
    %556 = vector.broadcast %113 : f32 to vector<8x128xf32>
    %557 = arith.mulf %232, %556 : vector<8x128xf32>
    %558 = arith.addf %555, %557 : vector<8x128xf32>
    %559 = vector.broadcast %114 : f32 to vector<8x128xf32>
    %560 = arith.mulf %241, %559 : vector<8x128xf32>
    %561 = arith.addf %558, %560 : vector<8x128xf32>
    %562 = vector.broadcast %115 : f32 to vector<8x128xf32>
    %563 = arith.mulf %250, %562 : vector<8x128xf32>
    %564 = arith.addf %561, %563 : vector<8x128xf32>
    %565 = vector.broadcast %116 : f32 to vector<8x128xf32>
    %566 = arith.mulf %259, %565 : vector<8x128xf32>
    %567 = arith.addf %564, %566 : vector<8x128xf32>
    %568 = vector.broadcast %117 : f32 to vector<8x128xf32>
    %569 = arith.mulf %268, %568 : vector<8x128xf32>
    %570 = arith.addf %567, %569 : vector<8x128xf32>
    %571 = vector.broadcast %118 : f32 to vector<8x128xf32>
    %572 = arith.mulf %277, %571 : vector<8x128xf32>
    %573 = arith.addf %570, %572 : vector<8x128xf32>
    %574 = vector.broadcast %119 : f32 to vector<8x128xf32>
    %575 = arith.mulf %286, %574 : vector<8x128xf32>
    %576 = arith.addf %573, %575 : vector<8x128xf32>
    %577 = vector.broadcast %120 : f32 to vector<8x128xf32>
    %578 = arith.mulf %295, %577 : vector<8x128xf32>
    %579 = arith.addf %576, %578 : vector<8x128xf32>
    %580 = vector.broadcast %161 : f32 to vector<8x128xf32>
    %581 = arith.addf %579, %580 : vector<8x128xf32>
    %cst_89 = arith.constant 0.000000e+00 : f32
    %582 = vector.broadcast %cst_89 : f32 to vector<8x128xf32>
    %583 = arith.maximumf %581, %582 : vector<8x128xf32>
    %584 = vector.broadcast %121 : f32 to vector<8x128xf32>
    %585 = arith.mulf %205, %584 : vector<8x128xf32>
    %586 = vector.broadcast %122 : f32 to vector<8x128xf32>
    %587 = arith.mulf %214, %586 : vector<8x128xf32>
    %588 = arith.addf %585, %587 : vector<8x128xf32>
    %589 = vector.broadcast %123 : f32 to vector<8x128xf32>
    %590 = arith.mulf %223, %589 : vector<8x128xf32>
    %591 = arith.addf %588, %590 : vector<8x128xf32>
    %592 = vector.broadcast %124 : f32 to vector<8x128xf32>
    %593 = arith.mulf %232, %592 : vector<8x128xf32>
    %594 = arith.addf %591, %593 : vector<8x128xf32>
    %595 = vector.broadcast %125 : f32 to vector<8x128xf32>
    %596 = arith.mulf %241, %595 : vector<8x128xf32>
    %597 = arith.addf %594, %596 : vector<8x128xf32>
    %598 = vector.broadcast %126 : f32 to vector<8x128xf32>
    %599 = arith.mulf %250, %598 : vector<8x128xf32>
    %600 = arith.addf %597, %599 : vector<8x128xf32>
    %601 = vector.broadcast %127 : f32 to vector<8x128xf32>
    %602 = arith.mulf %259, %601 : vector<8x128xf32>
    %603 = arith.addf %600, %602 : vector<8x128xf32>
    %604 = vector.broadcast %128 : f32 to vector<8x128xf32>
    %605 = arith.mulf %268, %604 : vector<8x128xf32>
    %606 = arith.addf %603, %605 : vector<8x128xf32>
    %607 = vector.broadcast %129 : f32 to vector<8x128xf32>
    %608 = arith.mulf %277, %607 : vector<8x128xf32>
    %609 = arith.addf %606, %608 : vector<8x128xf32>
    %610 = vector.broadcast %130 : f32 to vector<8x128xf32>
    %611 = arith.mulf %286, %610 : vector<8x128xf32>
    %612 = arith.addf %609, %611 : vector<8x128xf32>
    %613 = vector.broadcast %131 : f32 to vector<8x128xf32>
    %614 = arith.mulf %295, %613 : vector<8x128xf32>
    %615 = arith.addf %612, %614 : vector<8x128xf32>
    %616 = vector.broadcast %162 : f32 to vector<8x128xf32>
    %617 = arith.addf %615, %616 : vector<8x128xf32>
    %cst_90 = arith.constant 0.000000e+00 : f32
    %618 = vector.broadcast %cst_90 : f32 to vector<8x128xf32>
    %619 = arith.maximumf %617, %618 : vector<8x128xf32>
    %620 = vector.broadcast %132 : f32 to vector<8x128xf32>
    %621 = arith.mulf %205, %620 : vector<8x128xf32>
    %622 = vector.broadcast %133 : f32 to vector<8x128xf32>
    %623 = arith.mulf %214, %622 : vector<8x128xf32>
    %624 = arith.addf %621, %623 : vector<8x128xf32>
    %625 = vector.broadcast %134 : f32 to vector<8x128xf32>
    %626 = arith.mulf %223, %625 : vector<8x128xf32>
    %627 = arith.addf %624, %626 : vector<8x128xf32>
    %628 = vector.broadcast %135 : f32 to vector<8x128xf32>
    %629 = arith.mulf %232, %628 : vector<8x128xf32>
    %630 = arith.addf %627, %629 : vector<8x128xf32>
    %631 = vector.broadcast %136 : f32 to vector<8x128xf32>
    %632 = arith.mulf %241, %631 : vector<8x128xf32>
    %633 = arith.addf %630, %632 : vector<8x128xf32>
    %634 = vector.broadcast %137 : f32 to vector<8x128xf32>
    %635 = arith.mulf %250, %634 : vector<8x128xf32>
    %636 = arith.addf %633, %635 : vector<8x128xf32>
    %637 = vector.broadcast %138 : f32 to vector<8x128xf32>
    %638 = arith.mulf %259, %637 : vector<8x128xf32>
    %639 = arith.addf %636, %638 : vector<8x128xf32>
    %640 = vector.broadcast %139 : f32 to vector<8x128xf32>
    %641 = arith.mulf %268, %640 : vector<8x128xf32>
    %642 = arith.addf %639, %641 : vector<8x128xf32>
    %643 = vector.broadcast %140 : f32 to vector<8x128xf32>
    %644 = arith.mulf %277, %643 : vector<8x128xf32>
    %645 = arith.addf %642, %644 : vector<8x128xf32>
    %646 = vector.broadcast %141 : f32 to vector<8x128xf32>
    %647 = arith.mulf %286, %646 : vector<8x128xf32>
    %648 = arith.addf %645, %647 : vector<8x128xf32>
    %649 = vector.broadcast %142 : f32 to vector<8x128xf32>
    %650 = arith.mulf %295, %649 : vector<8x128xf32>
    %651 = arith.addf %648, %650 : vector<8x128xf32>
    %652 = vector.broadcast %163 : f32 to vector<8x128xf32>
    %653 = arith.addf %651, %652 : vector<8x128xf32>
    %cst_91 = arith.constant 0.000000e+00 : f32
    %654 = vector.broadcast %cst_91 : f32 to vector<8x128xf32>
    %655 = arith.maximumf %653, %654 : vector<8x128xf32>
    %656 = vector.broadcast %143 : f32 to vector<8x128xf32>
    %657 = arith.mulf %205, %656 : vector<8x128xf32>
    %658 = vector.broadcast %144 : f32 to vector<8x128xf32>
    %659 = arith.mulf %214, %658 : vector<8x128xf32>
    %660 = arith.addf %657, %659 : vector<8x128xf32>
    %661 = vector.broadcast %145 : f32 to vector<8x128xf32>
    %662 = arith.mulf %223, %661 : vector<8x128xf32>
    %663 = arith.addf %660, %662 : vector<8x128xf32>
    %664 = vector.broadcast %146 : f32 to vector<8x128xf32>
    %665 = arith.mulf %232, %664 : vector<8x128xf32>
    %666 = arith.addf %663, %665 : vector<8x128xf32>
    %667 = vector.broadcast %147 : f32 to vector<8x128xf32>
    %668 = arith.mulf %241, %667 : vector<8x128xf32>
    %669 = arith.addf %666, %668 : vector<8x128xf32>
    %670 = vector.broadcast %148 : f32 to vector<8x128xf32>
    %671 = arith.mulf %250, %670 : vector<8x128xf32>
    %672 = arith.addf %669, %671 : vector<8x128xf32>
    %673 = vector.broadcast %149 : f32 to vector<8x128xf32>
    %674 = arith.mulf %259, %673 : vector<8x128xf32>
    %675 = arith.addf %672, %674 : vector<8x128xf32>
    %676 = vector.broadcast %150 : f32 to vector<8x128xf32>
    %677 = arith.mulf %268, %676 : vector<8x128xf32>
    %678 = arith.addf %675, %677 : vector<8x128xf32>
    %679 = vector.broadcast %151 : f32 to vector<8x128xf32>
    %680 = arith.mulf %277, %679 : vector<8x128xf32>
    %681 = arith.addf %678, %680 : vector<8x128xf32>
    %682 = vector.broadcast %152 : f32 to vector<8x128xf32>
    %683 = arith.mulf %286, %682 : vector<8x128xf32>
    %684 = arith.addf %681, %683 : vector<8x128xf32>
    %685 = vector.broadcast %153 : f32 to vector<8x128xf32>
    %686 = arith.mulf %295, %685 : vector<8x128xf32>
    %687 = arith.addf %684, %686 : vector<8x128xf32>
    %688 = vector.broadcast %164 : f32 to vector<8x128xf32>
    %689 = arith.addf %687, %688 : vector<8x128xf32>
    %cst_92 = arith.constant 0.000000e+00 : f32
    %690 = vector.broadcast %cst_92 : f32 to vector<8x128xf32>
    %691 = arith.maximumf %689, %690 : vector<8x128xf32>
    %692 = vector.broadcast %165 : f32 to vector<8x128xf32>
    %693 = arith.mulf %331, %692 : vector<8x128xf32>
    %694 = vector.broadcast %166 : f32 to vector<8x128xf32>
    %695 = arith.mulf %367, %694 : vector<8x128xf32>
    %696 = arith.addf %693, %695 : vector<8x128xf32>
    %697 = vector.broadcast %167 : f32 to vector<8x128xf32>
    %698 = arith.mulf %403, %697 : vector<8x128xf32>
    %699 = arith.addf %696, %698 : vector<8x128xf32>
    %700 = vector.broadcast %168 : f32 to vector<8x128xf32>
    %701 = arith.mulf %439, %700 : vector<8x128xf32>
    %702 = arith.addf %699, %701 : vector<8x128xf32>
    %703 = vector.broadcast %169 : f32 to vector<8x128xf32>
    %704 = arith.mulf %475, %703 : vector<8x128xf32>
    %705 = arith.addf %702, %704 : vector<8x128xf32>
    %706 = vector.broadcast %170 : f32 to vector<8x128xf32>
    %707 = arith.mulf %511, %706 : vector<8x128xf32>
    %708 = arith.addf %705, %707 : vector<8x128xf32>
    %709 = vector.broadcast %171 : f32 to vector<8x128xf32>
    %710 = arith.mulf %547, %709 : vector<8x128xf32>
    %711 = arith.addf %708, %710 : vector<8x128xf32>
    %712 = vector.broadcast %172 : f32 to vector<8x128xf32>
    %713 = arith.mulf %583, %712 : vector<8x128xf32>
    %714 = arith.addf %711, %713 : vector<8x128xf32>
    %715 = vector.broadcast %173 : f32 to vector<8x128xf32>
    %716 = arith.mulf %619, %715 : vector<8x128xf32>
    %717 = arith.addf %714, %716 : vector<8x128xf32>
    %718 = vector.broadcast %174 : f32 to vector<8x128xf32>
    %719 = arith.mulf %655, %718 : vector<8x128xf32>
    %720 = arith.addf %717, %719 : vector<8x128xf32>
    %721 = vector.broadcast %175 : f32 to vector<8x128xf32>
    %722 = arith.mulf %691, %721 : vector<8x128xf32>
    %723 = arith.addf %720, %722 : vector<8x128xf32>
    %724 = vector.broadcast %187 : f32 to vector<8x128xf32>
    %725 = arith.addf %723, %724 : vector<8x128xf32>
    %c0_93 = arith.constant 0 : index
    %726 = arith.index_cast %190 : i32 to index
    %c0_94 = arith.constant 0 : index
    %727 = vector.load %arg8[%c0_93, %726, %c0_94] : memref<2x16x128xf32, #tpu.memory_space<vmem>>, vector<1x8x128xf32>
    %728 = vector.shape_cast %727 : vector<1x8x128xf32> to vector<8x128xf32>
    %729 = vector.shape_cast %725 : vector<8x128xf32> to vector<1x8x128xf32>
    tpu.vector_store %arg8[%c0_93, %726, %c0_94], %729 {strides = array<i32>} : memref<2x16x128xf32, #tpu.memory_space<vmem>>, vector<1x8x128xf32>,
    %730 = vector.broadcast %176 : f32 to vector<8x128xf32>
    %731 = arith.mulf %331, %730 : vector<8x128xf32>
    %732 = vector.broadcast %177 : f32 to vector<8x128xf32>
    %733 = arith.mulf %367, %732 : vector<8x128xf32>
    %734 = arith.addf %731, %733 : vector<8x128xf32>
    %735 = vector.broadcast %178 : f32 to vector<8x128xf32>
    %736 = arith.mulf %403, %735 : vector<8x128xf32>
    %737 = arith.addf %734, %736 : vector<8x128xf32>
    %738 = vector.broadcast %179 : f32 to vector<8x128xf32>
    %739 = arith.mulf %439, %738 : vector<8x128xf32>
    %740 = arith.addf %737, %739 : vector<8x128xf32>
    %741 = vector.broadcast %180 : f32 to vector<8x128xf32>
    %742 = arith.mulf %475, %741 : vector<8x128xf32>
    %743 = arith.addf %740, %742 : vector<8x128xf32>
    %744 = vector.broadcast %181 : f32 to vector<8x128xf32>
    %745 = arith.mulf %511, %744 : vector<8x128xf32>
    %746 = arith.addf %743, %745 : vector<8x128xf32>
    %747 = vector.broadcast %182 : f32 to vector<8x128xf32>
    %748 = arith.mulf %547, %747 : vector<8x128xf32>
    %749 = arith.addf %746, %748 : vector<8x128xf32>
    %750 = vector.broadcast %183 : f32 to vector<8x128xf32>
    %751 = arith.mulf %583, %750 : vector<8x128xf32>
    %752 = arith.addf %749, %751 : vector<8x128xf32>
    %753 = vector.broadcast %184 : f32 to vector<8x128xf32>
    %754 = arith.mulf %619, %753 : vector<8x128xf32>
    %755 = arith.addf %752, %754 : vector<8x128xf32>
    %756 = vector.broadcast %185 : f32 to vector<8x128xf32>
    %757 = arith.mulf %655, %756 : vector<8x128xf32>
    %758 = arith.addf %755, %757 : vector<8x128xf32>
    %759 = vector.broadcast %186 : f32 to vector<8x128xf32>
    %760 = arith.mulf %691, %759 : vector<8x128xf32>
    %761 = arith.addf %758, %760 : vector<8x128xf32>
    %762 = vector.broadcast %188 : f32 to vector<8x128xf32>
    %763 = arith.addf %761, %762 : vector<8x128xf32>
    %c1_95 = arith.constant 1 : index
    %764 = arith.index_cast %190 : i32 to index
    %c0_96 = arith.constant 0 : index
    %765 = vector.load %arg8[%c1_95, %764, %c0_96] : memref<2x16x128xf32, #tpu.memory_space<vmem>>, vector<1x8x128xf32>
    %766 = vector.shape_cast %765 : vector<1x8x128xf32> to vector<8x128xf32>
    %767 = vector.shape_cast %763 : vector<8x128xf32> to vector<1x8x128xf32>
    tpu.vector_store %arg8[%c1_95, %764, %c0_96], %767 {strides = array<i32>} : memref<2x16x128xf32, #tpu.memory_space<vmem>>, vector<1x8x128xf32>,
    %c1_i32 = arith.constant 1 : i32
    %c8_i32_97 = arith.constant 8 : i32
    %768 = arith.muli %c1_i32, %c8_i32_97 : i32
    %769 = tpu.assume_multiple %768, 8 : i32
    %c0_98 = arith.constant 0 : index
    %770 = arith.index_cast %769 : i32 to index
    %c0_99 = arith.constant 0 : index
    %771 = vector.load %arg7[%c0_98, %770, %c0_99] : memref<2x16x128xf32, #tpu.memory_space<vmem>>, vector<1x8x128xf32>
    %772 = vector.shape_cast %771 : vector<1x8x128xf32> to vector<8x128xf32>
    %c1_100 = arith.constant 1 : index
    %773 = arith.index_cast %769 : i32 to index
    %c0_101 = arith.constant 0 : index
    %774 = vector.load %arg7[%c1_100, %773, %c0_101] : memref<2x16x128xf32, #tpu.memory_space<vmem>>, vector<1x8x128xf32>
    %775 = vector.shape_cast %774 : vector<1x8x128xf32> to vector<8x128xf32>
    %776 = vector.broadcast %0 : f32 to vector<8x128xf32>
    %777 = arith.mulf %772, %776 : vector<8x128xf32>
    %778 = vector.broadcast %1 : f32 to vector<8x128xf32>
    %779 = arith.mulf %775, %778 : vector<8x128xf32>
    %780 = arith.addf %777, %779 : vector<8x128xf32>
    %781 = vector.broadcast %22 : f32 to vector<8x128xf32>
    %782 = arith.addf %780, %781 : vector<8x128xf32>
    %cst_102 = arith.constant 0.000000e+00 : f32
    %783 = vector.broadcast %cst_102 : f32 to vector<8x128xf32>
    %784 = arith.maximumf %782, %783 : vector<8x128xf32>
    %785 = vector.broadcast %2 : f32 to vector<8x128xf32>
    %786 = arith.mulf %772, %785 : vector<8x128xf32>
    %787 = vector.broadcast %3 : f32 to vector<8x128xf32>
    %788 = arith.mulf %775, %787 : vector<8x128xf32>
    %789 = arith.addf %786, %788 : vector<8x128xf32>
    %790 = vector.broadcast %23 : f32 to vector<8x128xf32>
    %791 = arith.addf %789, %790 : vector<8x128xf32>
    %cst_103 = arith.constant 0.000000e+00 : f32
    %792 = vector.broadcast %cst_103 : f32 to vector<8x128xf32>
    %793 = arith.maximumf %791, %792 : vector<8x128xf32>
    %794 = vector.broadcast %4 : f32 to vector<8x128xf32>
    %795 = arith.mulf %772, %794 : vector<8x128xf32>
    %796 = vector.broadcast %5 : f32 to vector<8x128xf32>
    %797 = arith.mulf %775, %796 : vector<8x128xf32>
    %798 = arith.addf %795, %797 : vector<8x128xf32>
    %799 = vector.broadcast %24 : f32 to vector<8x128xf32>
    %800 = arith.addf %798, %799 : vector<8x128xf32>
    %cst_104 = arith.constant 0.000000e+00 : f32
    %801 = vector.broadcast %cst_104 : f32 to vector<8x128xf32>
    %802 = arith.maximumf %800, %801 : vector<8x128xf32>
    %803 = vector.broadcast %6 : f32 to vector<8x128xf32>
    %804 = arith.mulf %772, %803 : vector<8x128xf32>
    %805 = vector.broadcast %7 : f32 to vector<8x128xf32>
    %806 = arith.mulf %775, %805 : vector<8x128xf32>
    %807 = arith.addf %804, %806 : vector<8x128xf32>
    %808 = vector.broadcast %25 : f32 to vector<8x128xf32>
    %809 = arith.addf %807, %808 : vector<8x128xf32>
    %cst_105 = arith.constant 0.000000e+00 : f32
    %810 = vector.broadcast %cst_105 : f32 to vector<8x128xf32>
    %811 = arith.maximumf %809, %810 : vector<8x128xf32>
    %812 = vector.broadcast %8 : f32 to vector<8x128xf32>
    %813 = arith.mulf %772, %812 : vector<8x128xf32>
    %814 = vector.broadcast %9 : f32 to vector<8x128xf32>
    %815 = arith.mulf %775, %814 : vector<8x128xf32>
    %816 = arith.addf %813, %815 : vector<8x128xf32>
    %817 = vector.broadcast %26 : f32 to vector<8x128xf32>
    %818 = arith.addf %816, %817 : vector<8x128xf32>
    %cst_106 = arith.constant 0.000000e+00 : f32
    %819 = vector.broadcast %cst_106 : f32 to vector<8x128xf32>
    %820 = arith.maximumf %818, %819 : vector<8x128xf32>
    %821 = vector.broadcast %10 : f32 to vector<8x128xf32>
    %822 = arith.mulf %772, %821 : vector<8x128xf32>
    %823 = vector.broadcast %11 : f32 to vector<8x128xf32>
    %824 = arith.mulf %775, %823 : vector<8x128xf32>
    %825 = arith.addf %822, %824 : vector<8x128xf32>
    %826 = vector.broadcast %27 : f32 to vector<8x128xf32>
    %827 = arith.addf %825, %826 : vector<8x128xf32>
    %cst_107 = arith.constant 0.000000e+00 : f32
    %828 = vector.broadcast %cst_107 : f32 to vector<8x128xf32>
    %829 = arith.maximumf %827, %828 : vector<8x128xf32>
    %830 = vector.broadcast %12 : f32 to vector<8x128xf32>
    %831 = arith.mulf %772, %830 : vector<8x128xf32>
    %832 = vector.broadcast %13 : f32 to vector<8x128xf32>
    %833 = arith.mulf %775, %832 : vector<8x128xf32>
    %834 = arith.addf %831, %833 : vector<8x128xf32>
    %835 = vector.broadcast %28 : f32 to vector<8x128xf32>
    %836 = arith.addf %834, %835 : vector<8x128xf32>
    %cst_108 = arith.constant 0.000000e+00 : f32
    %837 = vector.broadcast %cst_108 : f32 to vector<8x128xf32>
    %838 = arith.maximumf %836, %837 : vector<8x128xf32>
    %839 = vector.broadcast %14 : f32 to vector<8x128xf32>
    %840 = arith.mulf %772, %839 : vector<8x128xf32>
    %841 = vector.broadcast %15 : f32 to vector<8x128xf32>
    %842 = arith.mulf %775, %841 : vector<8x128xf32>
    %843 = arith.addf %840, %842 : vector<8x128xf32>
    %844 = vector.broadcast %29 : f32 to vector<8x128xf32>
    %845 = arith.addf %843, %844 : vector<8x128xf32>
    %cst_109 = arith.constant 0.000000e+00 : f32
    %846 = vector.broadcast %cst_109 : f32 to vector<8x128xf32>
    %847 = arith.maximumf %845, %846 : vector<8x128xf32>
    %848 = vector.broadcast %16 : f32 to vector<8x128xf32>
    %849 = arith.mulf %772, %848 : vector<8x128xf32>
    %850 = vector.broadcast %17 : f32 to vector<8x128xf32>
    %851 = arith.mulf %775, %850 : vector<8x128xf32>
    %852 = arith.addf %849, %851 : vector<8x128xf32>
    %853 = vector.broadcast %30 : f32 to vector<8x128xf32>
    %854 = arith.addf %852, %853 : vector<8x128xf32>
    %cst_110 = arith.constant 0.000000e+00 : f32
    %855 = vector.broadcast %cst_110 : f32 to vector<8x128xf32>
    %856 = arith.maximumf %854, %855 : vector<8x128xf32>
    %857 = vector.broadcast %18 : f32 to vector<8x128xf32>
    %858 = arith.mulf %772, %857 : vector<8x128xf32>
    %859 = vector.broadcast %19 : f32 to vector<8x128xf32>
    %860 = arith.mulf %775, %859 : vector<8x128xf32>
    %861 = arith.addf %858, %860 : vector<8x128xf32>
    %862 = vector.broadcast %31 : f32 to vector<8x128xf32>
    %863 = arith.addf %861, %862 : vector<8x128xf32>
    %cst_111 = arith.constant 0.000000e+00 : f32
    %864 = vector.broadcast %cst_111 : f32 to vector<8x128xf32>
    %865 = arith.maximumf %863, %864 : vector<8x128xf32>
    %866 = vector.broadcast %20 : f32 to vector<8x128xf32>
    %867 = arith.mulf %772, %866 : vector<8x128xf32>
    %868 = vector.broadcast %21 : f32 to vector<8x128xf32>
    %869 = arith.mulf %775, %868 : vector<8x128xf32>
    %870 = arith.addf %867, %869 : vector<8x128xf32>
    %871 = vector.broadcast %32 : f32 to vector<8x128xf32>
    %872 = arith.addf %870, %871 : vector<8x128xf32>
    %cst_112 = arith.constant 0.000000e+00 : f32
    %873 = vector.broadcast %cst_112 : f32 to vector<8x128xf32>
    %874 = arith.maximumf %872, %873 : vector<8x128xf32>
    %875 = vector.broadcast %33 : f32 to vector<8x128xf32>
    %876 = arith.mulf %784, %875 : vector<8x128xf32>
    %877 = vector.broadcast %34 : f32 to vector<8x128xf32>
    %878 = arith.mulf %793, %877 : vector<8x128xf32>
    %879 = arith.addf %876, %878 : vector<8x128xf32>
    %880 = vector.broadcast %35 : f32 to vector<8x128xf32>
    %881 = arith.mulf %802, %880 : vector<8x128xf32>
    %882 = arith.addf %879, %881 : vector<8x128xf32>
    %883 = vector.broadcast %36 : f32 to vector<8x128xf32>
    %884 = arith.mulf %811, %883 : vector<8x128xf32>
    %885 = arith.addf %882, %884 : vector<8x128xf32>
    %886 = vector.broadcast %37 : f32 to vector<8x128xf32>
    %887 = arith.mulf %820, %886 : vector<8x128xf32>
    %888 = arith.addf %885, %887 : vector<8x128xf32>
    %889 = vector.broadcast %38 : f32 to vector<8x128xf32>
    %890 = arith.mulf %829, %889 : vector<8x128xf32>
    %891 = arith.addf %888, %890 : vector<8x128xf32>
    %892 = vector.broadcast %39 : f32 to vector<8x128xf32>
    %893 = arith.mulf %838, %892 : vector<8x128xf32>
    %894 = arith.addf %891, %893 : vector<8x128xf32>
    %895 = vector.broadcast %40 : f32 to vector<8x128xf32>
    %896 = arith.mulf %847, %895 : vector<8x128xf32>
    %897 = arith.addf %894, %896 : vector<8x128xf32>
    %898 = vector.broadcast %41 : f32 to vector<8x128xf32>
    %899 = arith.mulf %856, %898 : vector<8x128xf32>
    %900 = arith.addf %897, %899 : vector<8x128xf32>
    %901 = vector.broadcast %42 : f32 to vector<8x128xf32>
    %902 = arith.mulf %865, %901 : vector<8x128xf32>
    %903 = arith.addf %900, %902 : vector<8x128xf32>
    %904 = vector.broadcast %43 : f32 to vector<8x128xf32>
    %905 = arith.mulf %874, %904 : vector<8x128xf32>
    %906 = arith.addf %903, %905 : vector<8x128xf32>
    %907 = vector.broadcast %154 : f32 to vector<8x128xf32>
    %908 = arith.addf %906, %907 : vector<8x128xf32>
    %cst_113 = arith.constant 0.000000e+00 : f32
    %909 = vector.broadcast %cst_113 : f32 to vector<8x128xf32>
    %910 = arith.maximumf %908, %909 : vector<8x128xf32>
    %911 = vector.broadcast %44 : f32 to vector<8x128xf32>
    %912 = arith.mulf %784, %911 : vector<8x128xf32>
    %913 = vector.broadcast %45 : f32 to vector<8x128xf32>
    %914 = arith.mulf %793, %913 : vector<8x128xf32>
    %915 = arith.addf %912, %914 : vector<8x128xf32>
    %916 = vector.broadcast %46 : f32 to vector<8x128xf32>
    %917 = arith.mulf %802, %916 : vector<8x128xf32>
    %918 = arith.addf %915, %917 : vector<8x128xf32>
    %919 = vector.broadcast %47 : f32 to vector<8x128xf32>
    %920 = arith.mulf %811, %919 : vector<8x128xf32>
    %921 = arith.addf %918, %920 : vector<8x128xf32>
    %922 = vector.broadcast %48 : f32 to vector<8x128xf32>
    %923 = arith.mulf %820, %922 : vector<8x128xf32>
    %924 = arith.addf %921, %923 : vector<8x128xf32>
    %925 = vector.broadcast %49 : f32 to vector<8x128xf32>
    %926 = arith.mulf %829, %925 : vector<8x128xf32>
    %927 = arith.addf %924, %926 : vector<8x128xf32>
    %928 = vector.broadcast %50 : f32 to vector<8x128xf32>
    %929 = arith.mulf %838, %928 : vector<8x128xf32>
    %930 = arith.addf %927, %929 : vector<8x128xf32>
    %931 = vector.broadcast %51 : f32 to vector<8x128xf32>
    %932 = arith.mulf %847, %931 : vector<8x128xf32>
    %933 = arith.addf %930, %932 : vector<8x128xf32>
    %934 = vector.broadcast %52 : f32 to vector<8x128xf32>
    %935 = arith.mulf %856, %934 : vector<8x128xf32>
    %936 = arith.addf %933, %935 : vector<8x128xf32>
    %937 = vector.broadcast %53 : f32 to vector<8x128xf32>
    %938 = arith.mulf %865, %937 : vector<8x128xf32>
    %939 = arith.addf %936, %938 : vector<8x128xf32>
    %940 = vector.broadcast %54 : f32 to vector<8x128xf32>
    %941 = arith.mulf %874, %940 : vector<8x128xf32>
    %942 = arith.addf %939, %941 : vector<8x128xf32>
    %943 = vector.broadcast %155 : f32 to vector<8x128xf32>
    %944 = arith.addf %942, %943 : vector<8x128xf32>
    %cst_114 = arith.constant 0.000000e+00 : f32
    %945 = vector.broadcast %cst_114 : f32 to vector<8x128xf32>
    %946 = arith.maximumf %944, %945 : vector<8x128xf32>
    %947 = vector.broadcast %55 : f32 to vector<8x128xf32>
    %948 = arith.mulf %784, %947 : vector<8x128xf32>
    %949 = vector.broadcast %56 : f32 to vector<8x128xf32>
    %950 = arith.mulf %793, %949 : vector<8x128xf32>
    %951 = arith.addf %948, %950 : vector<8x128xf32>
    %952 = vector.broadcast %57 : f32 to vector<8x128xf32>
    %953 = arith.mulf %802, %952 : vector<8x128xf32>
    %954 = arith.addf %951, %953 : vector<8x128xf32>
    %955 = vector.broadcast %58 : f32 to vector<8x128xf32>
    %956 = arith.mulf %811, %955 : vector<8x128xf32>
    %957 = arith.addf %954, %956 : vector<8x128xf32>
    %958 = vector.broadcast %59 : f32 to vector<8x128xf32>
    %959 = arith.mulf %820, %958 : vector<8x128xf32>
    %960 = arith.addf %957, %959 : vector<8x128xf32>
    %961 = vector.broadcast %60 : f32 to vector<8x128xf32>
    %962 = arith.mulf %829, %961 : vector<8x128xf32>
    %963 = arith.addf %960, %962 : vector<8x128xf32>
    %964 = vector.broadcast %61 : f32 to vector<8x128xf32>
    %965 = arith.mulf %838, %964 : vector<8x128xf32>
    %966 = arith.addf %963, %965 : vector<8x128xf32>
    %967 = vector.broadcast %62 : f32 to vector<8x128xf32>
    %968 = arith.mulf %847, %967 : vector<8x128xf32>
    %969 = arith.addf %966, %968 : vector<8x128xf32>
    %970 = vector.broadcast %63 : f32 to vector<8x128xf32>
    %971 = arith.mulf %856, %970 : vector<8x128xf32>
    %972 = arith.addf %969, %971 : vector<8x128xf32>
    %973 = vector.broadcast %64 : f32 to vector<8x128xf32>
    %974 = arith.mulf %865, %973 : vector<8x128xf32>
    %975 = arith.addf %972, %974 : vector<8x128xf32>
    %976 = vector.broadcast %65 : f32 to vector<8x128xf32>
    %977 = arith.mulf %874, %976 : vector<8x128xf32>
    %978 = arith.addf %975, %977 : vector<8x128xf32>
    %979 = vector.broadcast %156 : f32 to vector<8x128xf32>
    %980 = arith.addf %978, %979 : vector<8x128xf32>
    %cst_115 = arith.constant 0.000000e+00 : f32
    %981 = vector.broadcast %cst_115 : f32 to vector<8x128xf32>
    %982 = arith.maximumf %980, %981 : vector<8x128xf32>
    %983 = vector.broadcast %66 : f32 to vector<8x128xf32>
    %984 = arith.mulf %784, %983 : vector<8x128xf32>
    %985 = vector.broadcast %67 : f32 to vector<8x128xf32>
    %986 = arith.mulf %793, %985 : vector<8x128xf32>
    %987 = arith.addf %984, %986 : vector<8x128xf32>
    %988 = vector.broadcast %68 : f32 to vector<8x128xf32>
    %989 = arith.mulf %802, %988 : vector<8x128xf32>
    %990 = arith.addf %987, %989 : vector<8x128xf32>
    %991 = vector.broadcast %69 : f32 to vector<8x128xf32>
    %992 = arith.mulf %811, %991 : vector<8x128xf32>
    %993 = arith.addf %990, %992 : vector<8x128xf32>
    %994 = vector.broadcast %70 : f32 to vector<8x128xf32>
    %995 = arith.mulf %820, %994 : vector<8x128xf32>
    %996 = arith.addf %993, %995 : vector<8x128xf32>
    %997 = vector.broadcast %71 : f32 to vector<8x128xf32>
    %998 = arith.mulf %829, %997 : vector<8x128xf32>
    %999 = arith.addf %996, %998 : vector<8x128xf32>
    %1000 = vector.broadcast %72 : f32 to vector<8x128xf32>
    %1001 = arith.mulf %838, %1000 : vector<8x128xf32>
    %1002 = arith.addf %999, %1001 : vector<8x128xf32>
    %1003 = vector.broadcast %73 : f32 to vector<8x128xf32>
    %1004 = arith.mulf %847, %1003 : vector<8x128xf32>
    %1005 = arith.addf %1002, %1004 : vector<8x128xf32>
    %1006 = vector.broadcast %74 : f32 to vector<8x128xf32>
    %1007 = arith.mulf %856, %1006 : vector<8x128xf32>
    %1008 = arith.addf %1005, %1007 : vector<8x128xf32>
    %1009 = vector.broadcast %75 : f32 to vector<8x128xf32>
    %1010 = arith.mulf %865, %1009 : vector<8x128xf32>
    %1011 = arith.addf %1008, %1010 : vector<8x128xf32>
    %1012 = vector.broadcast %76 : f32 to vector<8x128xf32>
    %1013 = arith.mulf %874, %1012 : vector<8x128xf32>
    %1014 = arith.addf %1011, %1013 : vector<8x128xf32>
    %1015 = vector.broadcast %157 : f32 to vector<8x128xf32>
    %1016 = arith.addf %1014, %1015 : vector<8x128xf32>
    %cst_116 = arith.constant 0.000000e+00 : f32
    %1017 = vector.broadcast %cst_116 : f32 to vector<8x128xf32>
    %1018 = arith.maximumf %1016, %1017 : vector<8x128xf32>
    %1019 = vector.broadcast %77 : f32 to vector<8x128xf32>
    %1020 = arith.mulf %784, %1019 : vector<8x128xf32>
    %1021 = vector.broadcast %78 : f32 to vector<8x128xf32>
    %1022 = arith.mulf %793, %1021 : vector<8x128xf32>
    %1023 = arith.addf %1020, %1022 : vector<8x128xf32>
    %1024 = vector.broadcast %79 : f32 to vector<8x128xf32>
    %1025 = arith.mulf %802, %1024 : vector<8x128xf32>
    %1026 = arith.addf %1023, %1025 : vector<8x128xf32>
    %1027 = vector.broadcast %80 : f32 to vector<8x128xf32>
    %1028 = arith.mulf %811, %1027 : vector<8x128xf32>
    %1029 = arith.addf %1026, %1028 : vector<8x128xf32>
    %1030 = vector.broadcast %81 : f32 to vector<8x128xf32>
    %1031 = arith.mulf %820, %1030 : vector<8x128xf32>
    %1032 = arith.addf %1029, %1031 : vector<8x128xf32>
    %1033 = vector.broadcast %82 : f32 to vector<8x128xf32>
    %1034 = arith.mulf %829, %1033 : vector<8x128xf32>
    %1035 = arith.addf %1032, %1034 : vector<8x128xf32>
    %1036 = vector.broadcast %83 : f32 to vector<8x128xf32>
    %1037 = arith.mulf %838, %1036 : vector<8x128xf32>
    %1038 = arith.addf %1035, %1037 : vector<8x128xf32>
    %1039 = vector.broadcast %84 : f32 to vector<8x128xf32>
    %1040 = arith.mulf %847, %1039 : vector<8x128xf32>
    %1041 = arith.addf %1038, %1040 : vector<8x128xf32>
    %1042 = vector.broadcast %85 : f32 to vector<8x128xf32>
    %1043 = arith.mulf %856, %1042 : vector<8x128xf32>
    %1044 = arith.addf %1041, %1043 : vector<8x128xf32>
    %1045 = vector.broadcast %86 : f32 to vector<8x128xf32>
    %1046 = arith.mulf %865, %1045 : vector<8x128xf32>
    %1047 = arith.addf %1044, %1046 : vector<8x128xf32>
    %1048 = vector.broadcast %87 : f32 to vector<8x128xf32>
    %1049 = arith.mulf %874, %1048 : vector<8x128xf32>
    %1050 = arith.addf %1047, %1049 : vector<8x128xf32>
    %1051 = vector.broadcast %158 : f32 to vector<8x128xf32>
    %1052 = arith.addf %1050, %1051 : vector<8x128xf32>
    %cst_117 = arith.constant 0.000000e+00 : f32
    %1053 = vector.broadcast %cst_117 : f32 to vector<8x128xf32>
    %1054 = arith.maximumf %1052, %1053 : vector<8x128xf32>
    %1055 = vector.broadcast %88 : f32 to vector<8x128xf32>
    %1056 = arith.mulf %784, %1055 : vector<8x128xf32>
    %1057 = vector.broadcast %89 : f32 to vector<8x128xf32>
    %1058 = arith.mulf %793, %1057 : vector<8x128xf32>
    %1059 = arith.addf %1056, %1058 : vector<8x128xf32>
    %1060 = vector.broadcast %90 : f32 to vector<8x128xf32>
    %1061 = arith.mulf %802, %1060 : vector<8x128xf32>
    %1062 = arith.addf %1059, %1061 : vector<8x128xf32>
    %1063 = vector.broadcast %91 : f32 to vector<8x128xf32>
    %1064 = arith.mulf %811, %1063 : vector<8x128xf32>
    %1065 = arith.addf %1062, %1064 : vector<8x128xf32>
    %1066 = vector.broadcast %92 : f32 to vector<8x128xf32>
    %1067 = arith.mulf %820, %1066 : vector<8x128xf32>
    %1068 = arith.addf %1065, %1067 : vector<8x128xf32>
    %1069 = vector.broadcast %93 : f32 to vector<8x128xf32>
    %1070 = arith.mulf %829, %1069 : vector<8x128xf32>
    %1071 = arith.addf %1068, %1070 : vector<8x128xf32>
    %1072 = vector.broadcast %94 : f32 to vector<8x128xf32>
    %1073 = arith.mulf %838, %1072 : vector<8x128xf32>
    %1074 = arith.addf %1071, %1073 : vector<8x128xf32>
    %1075 = vector.broadcast %95 : f32 to vector<8x128xf32>
    %1076 = arith.mulf %847, %1075 : vector<8x128xf32>
    %1077 = arith.addf %1074, %1076 : vector<8x128xf32>
    %1078 = vector.broadcast %96 : f32 to vector<8x128xf32>
    %1079 = arith.mulf %856, %1078 : vector<8x128xf32>
    %1080 = arith.addf %1077, %1079 : vector<8x128xf32>
    %1081 = vector.broadcast %97 : f32 to vector<8x128xf32>
    %1082 = arith.mulf %865, %1081 : vector<8x128xf32>
    %1083 = arith.addf %1080, %1082 : vector<8x128xf32>
    %1084 = vector.broadcast %98 : f32 to vector<8x128xf32>
    %1085 = arith.mulf %874, %1084 : vector<8x128xf32>
    %1086 = arith.addf %1083, %1085 : vector<8x128xf32>
    %1087 = vector.broadcast %159 : f32 to vector<8x128xf32>
    %1088 = arith.addf %1086, %1087 : vector<8x128xf32>
    %cst_118 = arith.constant 0.000000e+00 : f32
    %1089 = vector.broadcast %cst_118 : f32 to vector<8x128xf32>
    %1090 = arith.maximumf %1088, %1089 : vector<8x128xf32>
    %1091 = vector.broadcast %99 : f32 to vector<8x128xf32>
    %1092 = arith.mulf %784, %1091 : vector<8x128xf32>
    %1093 = vector.broadcast %100 : f32 to vector<8x128xf32>
    %1094 = arith.mulf %793, %1093 : vector<8x128xf32>
    %1095 = arith.addf %1092, %1094 : vector<8x128xf32>
    %1096 = vector.broadcast %101 : f32 to vector<8x128xf32>
    %1097 = arith.mulf %802, %1096 : vector<8x128xf32>
    %1098 = arith.addf %1095, %1097 : vector<8x128xf32>
    %1099 = vector.broadcast %102 : f32 to vector<8x128xf32>
    %1100 = arith.mulf %811, %1099 : vector<8x128xf32>
    %1101 = arith.addf %1098, %1100 : vector<8x128xf32>
    %1102 = vector.broadcast %103 : f32 to vector<8x128xf32>
    %1103 = arith.mulf %820, %1102 : vector<8x128xf32>
    %1104 = arith.addf %1101, %1103 : vector<8x128xf32>
    %1105 = vector.broadcast %104 : f32 to vector<8x128xf32>
    %1106 = arith.mulf %829, %1105 : vector<8x128xf32>
    %1107 = arith.addf %1104, %1106 : vector<8x128xf32>
    %1108 = vector.broadcast %105 : f32 to vector<8x128xf32>
    %1109 = arith.mulf %838, %1108 : vector<8x128xf32>
    %1110 = arith.addf %1107, %1109 : vector<8x128xf32>
    %1111 = vector.broadcast %106 : f32 to vector<8x128xf32>
    %1112 = arith.mulf %847, %1111 : vector<8x128xf32>
    %1113 = arith.addf %1110, %1112 : vector<8x128xf32>
    %1114 = vector.broadcast %107 : f32 to vector<8x128xf32>
    %1115 = arith.mulf %856, %1114 : vector<8x128xf32>
    %1116 = arith.addf %1113, %1115 : vector<8x128xf32>
    %1117 = vector.broadcast %108 : f32 to vector<8x128xf32>
    %1118 = arith.mulf %865, %1117 : vector<8x128xf32>
    %1119 = arith.addf %1116, %1118 : vector<8x128xf32>
    %1120 = vector.broadcast %109 : f32 to vector<8x128xf32>
    %1121 = arith.mulf %874, %1120 : vector<8x128xf32>
    %1122 = arith.addf %1119, %1121 : vector<8x128xf32>
    %1123 = vector.broadcast %160 : f32 to vector<8x128xf32>
    %1124 = arith.addf %1122, %1123 : vector<8x128xf32>
    %cst_119 = arith.constant 0.000000e+00 : f32
    %1125 = vector.broadcast %cst_119 : f32 to vector<8x128xf32>
    %1126 = arith.maximumf %1124, %1125 : vector<8x128xf32>
    %1127 = vector.broadcast %110 : f32 to vector<8x128xf32>
    %1128 = arith.mulf %784, %1127 : vector<8x128xf32>
    %1129 = vector.broadcast %111 : f32 to vector<8x128xf32>
    %1130 = arith.mulf %793, %1129 : vector<8x128xf32>
    %1131 = arith.addf %1128, %1130 : vector<8x128xf32>
    %1132 = vector.broadcast %112 : f32 to vector<8x128xf32>
    %1133 = arith.mulf %802, %1132 : vector<8x128xf32>
    %1134 = arith.addf %1131, %1133 : vector<8x128xf32>
    %1135 = vector.broadcast %113 : f32 to vector<8x128xf32>
    %1136 = arith.mulf %811, %1135 : vector<8x128xf32>
    %1137 = arith.addf %1134, %1136 : vector<8x128xf32>
    %1138 = vector.broadcast %114 : f32 to vector<8x128xf32>
    %1139 = arith.mulf %820, %1138 : vector<8x128xf32>
    %1140 = arith.addf %1137, %1139 : vector<8x128xf32>
    %1141 = vector.broadcast %115 : f32 to vector<8x128xf32>
    %1142 = arith.mulf %829, %1141 : vector<8x128xf32>
    %1143 = arith.addf %1140, %1142 : vector<8x128xf32>
    %1144 = vector.broadcast %116 : f32 to vector<8x128xf32>
    %1145 = arith.mulf %838, %1144 : vector<8x128xf32>
    %1146 = arith.addf %1143, %1145 : vector<8x128xf32>
    %1147 = vector.broadcast %117 : f32 to vector<8x128xf32>
    %1148 = arith.mulf %847, %1147 : vector<8x128xf32>
    %1149 = arith.addf %1146, %1148 : vector<8x128xf32>
    %1150 = vector.broadcast %118 : f32 to vector<8x128xf32>
    %1151 = arith.mulf %856, %1150 : vector<8x128xf32>
    %1152 = arith.addf %1149, %1151 : vector<8x128xf32>
    %1153 = vector.broadcast %119 : f32 to vector<8x128xf32>
    %1154 = arith.mulf %865, %1153 : vector<8x128xf32>
    %1155 = arith.addf %1152, %1154 : vector<8x128xf32>
    %1156 = vector.broadcast %120 : f32 to vector<8x128xf32>
    %1157 = arith.mulf %874, %1156 : vector<8x128xf32>
    %1158 = arith.addf %1155, %1157 : vector<8x128xf32>
    %1159 = vector.broadcast %161 : f32 to vector<8x128xf32>
    %1160 = arith.addf %1158, %1159 : vector<8x128xf32>
    %cst_120 = arith.constant 0.000000e+00 : f32
    %1161 = vector.broadcast %cst_120 : f32 to vector<8x128xf32>
    %1162 = arith.maximumf %1160, %1161 : vector<8x128xf32>
    %1163 = vector.broadcast %121 : f32 to vector<8x128xf32>
    %1164 = arith.mulf %784, %1163 : vector<8x128xf32>
    %1165 = vector.broadcast %122 : f32 to vector<8x128xf32>
    %1166 = arith.mulf %793, %1165 : vector<8x128xf32>
    %1167 = arith.addf %1164, %1166 : vector<8x128xf32>
    %1168 = vector.broadcast %123 : f32 to vector<8x128xf32>
    %1169 = arith.mulf %802, %1168 : vector<8x128xf32>
    %1170 = arith.addf %1167, %1169 : vector<8x128xf32>
    %1171 = vector.broadcast %124 : f32 to vector<8x128xf32>
    %1172 = arith.mulf %811, %1171 : vector<8x128xf32>
    %1173 = arith.addf %1170, %1172 : vector<8x128xf32>
    %1174 = vector.broadcast %125 : f32 to vector<8x128xf32>
    %1175 = arith.mulf %820, %1174 : vector<8x128xf32>
    %1176 = arith.addf %1173, %1175 : vector<8x128xf32>
    %1177 = vector.broadcast %126 : f32 to vector<8x128xf32>
    %1178 = arith.mulf %829, %1177 : vector<8x128xf32>
    %1179 = arith.addf %1176, %1178 : vector<8x128xf32>
    %1180 = vector.broadcast %127 : f32 to vector<8x128xf32>
    %1181 = arith.mulf %838, %1180 : vector<8x128xf32>
    %1182 = arith.addf %1179, %1181 : vector<8x128xf32>
    %1183 = vector.broadcast %128 : f32 to vector<8x128xf32>
    %1184 = arith.mulf %847, %1183 : vector<8x128xf32>
    %1185 = arith.addf %1182, %1184 : vector<8x128xf32>
    %1186 = vector.broadcast %129 : f32 to vector<8x128xf32>
    %1187 = arith.mulf %856, %1186 : vector<8x128xf32>
    %1188 = arith.addf %1185, %1187 : vector<8x128xf32>
    %1189 = vector.broadcast %130 : f32 to vector<8x128xf32>
    %1190 = arith.mulf %865, %1189 : vector<8x128xf32>
    %1191 = arith.addf %1188, %1190 : vector<8x128xf32>
    %1192 = vector.broadcast %131 : f32 to vector<8x128xf32>
    %1193 = arith.mulf %874, %1192 : vector<8x128xf32>
    %1194 = arith.addf %1191, %1193 : vector<8x128xf32>
    %1195 = vector.broadcast %162 : f32 to vector<8x128xf32>
    %1196 = arith.addf %1194, %1195 : vector<8x128xf32>
    %cst_121 = arith.constant 0.000000e+00 : f32
    %1197 = vector.broadcast %cst_121 : f32 to vector<8x128xf32>
    %1198 = arith.maximumf %1196, %1197 : vector<8x128xf32>
    %1199 = vector.broadcast %132 : f32 to vector<8x128xf32>
    %1200 = arith.mulf %784, %1199 : vector<8x128xf32>
    %1201 = vector.broadcast %133 : f32 to vector<8x128xf32>
    %1202 = arith.mulf %793, %1201 : vector<8x128xf32>
    %1203 = arith.addf %1200, %1202 : vector<8x128xf32>
    %1204 = vector.broadcast %134 : f32 to vector<8x128xf32>
    %1205 = arith.mulf %802, %1204 : vector<8x128xf32>
    %1206 = arith.addf %1203, %1205 : vector<8x128xf32>
    %1207 = vector.broadcast %135 : f32 to vector<8x128xf32>
    %1208 = arith.mulf %811, %1207 : vector<8x128xf32>
    %1209 = arith.addf %1206, %1208 : vector<8x128xf32>
    %1210 = vector.broadcast %136 : f32 to vector<8x128xf32>
    %1211 = arith.mulf %820, %1210 : vector<8x128xf32>
    %1212 = arith.addf %1209, %1211 : vector<8x128xf32>
    %1213 = vector.broadcast %137 : f32 to vector<8x128xf32>
    %1214 = arith.mulf %829, %1213 : vector<8x128xf32>
    %1215 = arith.addf %1212, %1214 : vector<8x128xf32>
    %1216 = vector.broadcast %138 : f32 to vector<8x128xf32>
    %1217 = arith.mulf %838, %1216 : vector<8x128xf32>
    %1218 = arith.addf %1215, %1217 : vector<8x128xf32>
    %1219 = vector.broadcast %139 : f32 to vector<8x128xf32>
    %1220 = arith.mulf %847, %1219 : vector<8x128xf32>
    %1221 = arith.addf %1218, %1220 : vector<8x128xf32>
    %1222 = vector.broadcast %140 : f32 to vector<8x128xf32>
    %1223 = arith.mulf %856, %1222 : vector<8x128xf32>
    %1224 = arith.addf %1221, %1223 : vector<8x128xf32>
    %1225 = vector.broadcast %141 : f32 to vector<8x128xf32>
    %1226 = arith.mulf %865, %1225 : vector<8x128xf32>
    %1227 = arith.addf %1224, %1226 : vector<8x128xf32>
    %1228 = vector.broadcast %142 : f32 to vector<8x128xf32>
    %1229 = arith.mulf %874, %1228 : vector<8x128xf32>
    %1230 = arith.addf %1227, %1229 : vector<8x128xf32>
    %1231 = vector.broadcast %163 : f32 to vector<8x128xf32>
    %1232 = arith.addf %1230, %1231 : vector<8x128xf32>
    %cst_122 = arith.constant 0.000000e+00 : f32
    %1233 = vector.broadcast %cst_122 : f32 to vector<8x128xf32>
    %1234 = arith.maximumf %1232, %1233 : vector<8x128xf32>
    %1235 = vector.broadcast %143 : f32 to vector<8x128xf32>
    %1236 = arith.mulf %784, %1235 : vector<8x128xf32>
    %1237 = vector.broadcast %144 : f32 to vector<8x128xf32>
    %1238 = arith.mulf %793, %1237 : vector<8x128xf32>
    %1239 = arith.addf %1236, %1238 : vector<8x128xf32>
    %1240 = vector.broadcast %145 : f32 to vector<8x128xf32>
    %1241 = arith.mulf %802, %1240 : vector<8x128xf32>
    %1242 = arith.addf %1239, %1241 : vector<8x128xf32>
    %1243 = vector.broadcast %146 : f32 to vector<8x128xf32>
    %1244 = arith.mulf %811, %1243 : vector<8x128xf32>
    %1245 = arith.addf %1242, %1244 : vector<8x128xf32>
    %1246 = vector.broadcast %147 : f32 to vector<8x128xf32>
    %1247 = arith.mulf %820, %1246 : vector<8x128xf32>
    %1248 = arith.addf %1245, %1247 : vector<8x128xf32>
    %1249 = vector.broadcast %148 : f32 to vector<8x128xf32>
    %1250 = arith.mulf %829, %1249 : vector<8x128xf32>
    %1251 = arith.addf %1248, %1250 : vector<8x128xf32>
    %1252 = vector.broadcast %149 : f32 to vector<8x128xf32>
    %1253 = arith.mulf %838, %1252 : vector<8x128xf32>
    %1254 = arith.addf %1251, %1253 : vector<8x128xf32>
    %1255 = vector.broadcast %150 : f32 to vector<8x128xf32>
    %1256 = arith.mulf %847, %1255 : vector<8x128xf32>
    %1257 = arith.addf %1254, %1256 : vector<8x128xf32>
    %1258 = vector.broadcast %151 : f32 to vector<8x128xf32>
    %1259 = arith.mulf %856, %1258 : vector<8x128xf32>
    %1260 = arith.addf %1257, %1259 : vector<8x128xf32>
    %1261 = vector.broadcast %152 : f32 to vector<8x128xf32>
    %1262 = arith.mulf %865, %1261 : vector<8x128xf32>
    %1263 = arith.addf %1260, %1262 : vector<8x128xf32>
    %1264 = vector.broadcast %153 : f32 to vector<8x128xf32>
    %1265 = arith.mulf %874, %1264 : vector<8x128xf32>
    %1266 = arith.addf %1263, %1265 : vector<8x128xf32>
    %1267 = vector.broadcast %164 : f32 to vector<8x128xf32>
    %1268 = arith.addf %1266, %1267 : vector<8x128xf32>
    %cst_123 = arith.constant 0.000000e+00 : f32
    %1269 = vector.broadcast %cst_123 : f32 to vector<8x128xf32>
    %1270 = arith.maximumf %1268, %1269 : vector<8x128xf32>
    %1271 = vector.broadcast %165 : f32 to vector<8x128xf32>
    %1272 = arith.mulf %910, %1271 : vector<8x128xf32>
    %1273 = vector.broadcast %166 : f32 to vector<8x128xf32>
    %1274 = arith.mulf %946, %1273 : vector<8x128xf32>
    %1275 = arith.addf %1272, %1274 : vector<8x128xf32>
    %1276 = vector.broadcast %167 : f32 to vector<8x128xf32>
    %1277 = arith.mulf %982, %1276 : vector<8x128xf32>
    %1278 = arith.addf %1275, %1277 : vector<8x128xf32>
    %1279 = vector.broadcast %168 : f32 to vector<8x128xf32>
    %1280 = arith.mulf %1018, %1279 : vector<8x128xf32>
    %1281 = arith.addf %1278, %1280 : vector<8x128xf32>
    %1282 = vector.broadcast %169 : f32 to vector<8x128xf32>
    %1283 = arith.mulf %1054, %1282 : vector<8x128xf32>
    %1284 = arith.addf %1281, %1283 : vector<8x128xf32>
    %1285 = vector.broadcast %170 : f32 to vector<8x128xf32>
    %1286 = arith.mulf %1090, %1285 : vector<8x128xf32>
    %1287 = arith.addf %1284, %1286 : vector<8x128xf32>
    %1288 = vector.broadcast %171 : f32 to vector<8x128xf32>
    %1289 = arith.mulf %1126, %1288 : vector<8x128xf32>
    %1290 = arith.addf %1287, %1289 : vector<8x128xf32>
    %1291 = vector.broadcast %172 : f32 to vector<8x128xf32>
    %1292 = arith.mulf %1162, %1291 : vector<8x128xf32>
    %1293 = arith.addf %1290, %1292 : vector<8x128xf32>
    %1294 = vector.broadcast %173 : f32 to vector<8x128xf32>
    %1295 = arith.mulf %1198, %1294 : vector<8x128xf32>
    %1296 = arith.addf %1293, %1295 : vector<8x128xf32>
    %1297 = vector.broadcast %174 : f32 to vector<8x128xf32>
    %1298 = arith.mulf %1234, %1297 : vector<8x128xf32>
    %1299 = arith.addf %1296, %1298 : vector<8x128xf32>
    %1300 = vector.broadcast %175 : f32 to vector<8x128xf32>
    %1301 = arith.mulf %1270, %1300 : vector<8x128xf32>
    %1302 = arith.addf %1299, %1301 : vector<8x128xf32>
    %1303 = vector.broadcast %187 : f32 to vector<8x128xf32>
    %1304 = arith.addf %1302, %1303 : vector<8x128xf32>
    %c0_124 = arith.constant 0 : index
    %1305 = arith.index_cast %769 : i32 to index
    %c0_125 = arith.constant 0 : index
    %1306 = vector.load %arg8[%c0_124, %1305, %c0_125] : memref<2x16x128xf32, #tpu.memory_space<vmem>>, vector<1x8x128xf32>
    %1307 = vector.shape_cast %1306 : vector<1x8x128xf32> to vector<8x128xf32>
    %1308 = vector.shape_cast %1304 : vector<8x128xf32> to vector<1x8x128xf32>
    tpu.vector_store %arg8[%c0_124, %1305, %c0_125], %1308 {strides = array<i32>} : memref<2x16x128xf32, #tpu.memory_space<vmem>>, vector<1x8x128xf32>,
    %1309 = vector.broadcast %176 : f32 to vector<8x128xf32>
    %1310 = arith.mulf %910, %1309 : vector<8x128xf32>
    %1311 = vector.broadcast %177 : f32 to vector<8x128xf32>
    %1312 = arith.mulf %946, %1311 : vector<8x128xf32>
    %1313 = arith.addf %1310, %1312 : vector<8x128xf32>
    %1314 = vector.broadcast %178 : f32 to vector<8x128xf32>
    %1315 = arith.mulf %982, %1314 : vector<8x128xf32>
    %1316 = arith.addf %1313, %1315 : vector<8x128xf32>
    %1317 = vector.broadcast %179 : f32 to vector<8x128xf32>
    %1318 = arith.mulf %1018, %1317 : vector<8x128xf32>
    %1319 = arith.addf %1316, %1318 : vector<8x128xf32>
    %1320 = vector.broadcast %180 : f32 to vector<8x128xf32>
    %1321 = arith.mulf %1054, %1320 : vector<8x128xf32>
    %1322 = arith.addf %1319, %1321 : vector<8x128xf32>
    %1323 = vector.broadcast %181 : f32 to vector<8x128xf32>
    %1324 = arith.mulf %1090, %1323 : vector<8x128xf32>
    %1325 = arith.addf %1322, %1324 : vector<8x128xf32>
    %1326 = vector.broadcast %182 : f32 to vector<8x128xf32>
    %1327 = arith.mulf %1126, %1326 : vector<8x128xf32>
    %1328 = arith.addf %1325, %1327 : vector<8x128xf32>
    %1329 = vector.broadcast %183 : f32 to vector<8x128xf32>
    %1330 = arith.mulf %1162, %1329 : vector<8x128xf32>
    %1331 = arith.addf %1328, %1330 : vector<8x128xf32>
    %1332 = vector.broadcast %184 : f32 to vector<8x128xf32>
    %1333 = arith.mulf %1198, %1332 : vector<8x128xf32>
    %1334 = arith.addf %1331, %1333 : vector<8x128xf32>
    %1335 = vector.broadcast %185 : f32 to vector<8x128xf32>
    %1336 = arith.mulf %1234, %1335 : vector<8x128xf32>
    %1337 = arith.addf %1334, %1336 : vector<8x128xf32>
    %1338 = vector.broadcast %186 : f32 to vector<8x128xf32>
    %1339 = arith.mulf %1270, %1338 : vector<8x128xf32>
    %1340 = arith.addf %1337, %1339 : vector<8x128xf32>
    %1341 = vector.broadcast %188 : f32 to vector<8x128xf32>
    %1342 = arith.addf %1340, %1341 : vector<8x128xf32>
    %c1_126 = arith.constant 1 : index
    %1343 = arith.index_cast %769 : i32 to index
    %c0_127 = arith.constant 0 : index
    %1344 = vector.load %arg8[%c1_126, %1343, %c0_127] : memref<2x16x128xf32, #tpu.memory_space<vmem>>, vector<1x8x128xf32>
    %1345 = vector.shape_cast %1344 : vector<1x8x128xf32> to vector<8x128xf32>
    %1346 = vector.shape_cast %1342 : vector<8x128xf32> to vector<1x8x128xf32>
    tpu.vector_store %arg8[%c1_126, %1343, %c0_127], %1346 {strides = array<i32>} : memref<2x16x128xf32, #tpu.memory_space<vmem>>, vector<1x8x128xf32>,
    %c2_i32 = arith.constant 2 : i32
    return
  }
  func.func @transform_0(%arg0: i32) -> i32 {
    %c0_i32 = arith.constant 0 : i32
    %c0_i32_0 = arith.constant 0 : i32
    return %c0_i32 : i32
  }
  func.func @transform_1(%arg0: i32) -> i32 {
    %c0_i32 = arith.constant 0 : i32
    %c0_i32_0 = arith.constant 0 : i32
    return %c0_i32 : i32
  }
  func.func @transform_2(%arg0: i32) -> i32 {
    %c0_i32 = arith.constant 0 : i32
    %c0_i32_0 = arith.constant 0 : i32
    return %c0_i32 : i32
  }
  func.func @transform_3(%arg0: i32) -> i32 {
    %c0_i32 = arith.constant 0 : i32
    %c0_i32_0 = arith.constant 0 : i32
    return %c0_i32 : i32
  }
  func.func @transform_4(%arg0: i32) -> i32 {
    %c0_i32 = arith.constant 0 : i32
    %c0_i32_0 = arith.constant 0 : i32
    return %c0_i32 : i32
  }
  func.func @transform_5(%arg0: i32) -> i32 {
    %c0_i32 = arith.constant 0 : i32
    %c0_i32_0 = arith.constant 0 : i32
    return %c0_i32 : i32
  }
  func.func @transform_6(%arg0: i32) -> (i32, i32, i32) {
    %c0_i32 = arith.constant 0 : i32
    %c0_i32_0 = arith.constant 0 : i32
    %c0_i32_1 = arith.constant 0 : i32
    return %c0_i32, %arg0, %c0_i32_0 : i32, i32, i32
  }
  func.func @transform_7(%arg0: i32) -> (i32, i32, i32) {
    %c0_i32 = arith.constant 0 : i32
    %c0_i32_0 = arith.constant 0 : i32
    %c0_i32_1 = arith.constant 0 : i32
    return %c0_i32, %arg0, %c0_i32_0 : i32, i32, i32
  }
}

</mosaic_0001>

<bundles_post_ra>
// kernel: tpu_custom_call.1
= control target key start
LH: loop header
LB: loop body
LE: loop exit
PB: predicated region body
PF: predicated region fallthrough
CT: control target
= control target key end

     0   :  { %s4245_s0 = inlined_call_operand.hbm [shape: f32[22], index: 0, kind: input, shape index: {}]   ;;  %s4246_s1 = inlined_call_operand.vmem [shape: f32[11], index: 1, kind: input, shape index: {}]   ;;  %s4247_s2 = inlined_call_operand.vmem [shape: f32[121], index: 2, kind: input, shape index: {}]   ;;  %s4248_s3 = inlined_call_operand.vmem [shape: f32[11], index: 3, kind: input, shape index: {}]   ;;  %s4249_s4 = inlined_call_operand.vmem [shape: f32[22], index: 4, kind: input, shape index: {}]   ;;  %s4250_s5 = inlined_call_operand.vmem [shape: f32[2], index: 5, kind: input, shape index: {}]   ;;  %s4251_s6 = inlined_call_operand.hbm [shape: f32[2,32,128], index: 6, kind: input, shape index: {}]   ;;  %s4252_s7 = inlined_call_operand.hbm [shape: f32[2,32,128], index: 7, kind: output, shape index: {}]  }
   0x1   :  { %4598 = sst [smem:[#allocation201_spill]] %s4245_s0 }
   0x2   :  { %4599 = sst [smem:[#allocation202_spill]] %s4246_s1 }
   0x3   :  { %4600 = sst [smem:[#allocation203_spill]] %s4247_s2 }
   0x4   :  { %4601 = sst [smem:[#allocation204_spill]] %s4248_s3 }
   0x5   :  { %4602 = sst [smem:[#allocation205_spill]] %s4249_s4 }
   0x6   :  { %4603 = sst [smem:[#allocation206_spill]] %s4250_s5 }
   0x7   :  { %4604 = sst [smem:[#allocation207_spill]] %s4251_s6 }
   0x8   :  { %4605 = sst [smem:[#allocation208_spill]] %s4252_s7 }
   0x9   :  { %12 = vsyncpa [#allocation5], 0 }
   0xa   :  { %13 = vsyncpa [#allocation6], 0 }
   0xb   :  { %14 = vsyncpa [#allocation9], 0 }
   0xc   :  { %15 = vsyncpa [#allocation12], 0 }
   0xd   :  { %16 = vsyncpa [#allocation3], 0 }
   0xe   :  { %18 = vsyncpa [#allocation3 + $0x1], 0 }
   0xf   :  { %19 = vsyncpa [#allocation4], 0 }
  0x10   :  { %21 = vsyncpa [#allocation4 + $0x1], 0  ;;  %s2230_s24 = smov 0   ;;  %s2232_s25 = smov 0  }
  0x11   :  { %s2234_s26 = smov 0   ;;  %s2236_s27 = smov 0  }
  0x12 LB: > { %4606 = sst [smem:[#allocation27_spill]] %s2157_s24  ;;  %s2251_s28 = sadd.s32 4294967295, %s2169_s27   ;;  %s2169_s27 = sphi %s2236_s27, %s5143_s27   ;;  %s2165_s26 = sphi %s2234_s26, %s5146_s26   ;;  %s2161_s25 = sphi %s2232_s25, %s5145_s25   ;;  %s2157_s24 = sphi %s2230_s24, %s5144_s24  }
  0x13   : > { %4607 = sst [smem:[#allocation28_spill]] %s2161_s25  ;;  %s1679_s29 = sadd.s32 4294967294, %s2169_s27  }
  0x14   : > { %4608 = sst [smem:[#allocation29_spill]] %s2165_s26  ;;  %s2255_s30 = sadd.s32 1, %s2169_s27  }
  0x15   : > { %4609 = sst [smem:[#allocation30_spill]] %s2169_s27  ;;  %s160_s8 = sadd.s32 1, %s2165_s26 }
  0x16   : > { %4610 = sst [smem:[#allocation31_spill]] %s2251_s28  ;;  %s157_s9 = ssub.s32 %s2169_s27, %s2255_s30 }
  0x17   : > { %4611 = sst [smem:[#allocation32_spill]] %s2255_s30  ;;  %p167_p0 = scmp.ne.s32.totalorder %s2165_s26, %s2161_s25 }
  0x18   : > { %p158_p1 = scmp.eq.s32.totalorder %s157_s9, 0  ;;  %p168_p2 = scmp.eq.s32.totalorder %s2169_s27, 0 }
  0x19   : > { %p173_p3 = scmp.ne.s32.totalorder %s2161_s25, %s2157_s24  ;;  %p4253_p4 = scmp.eq.s32.totalorder %s2251_s28, 0 }
  0x1a   : > { %s2267_s10 = scalar_select %p158_p1, %s2165_s26, %s160_s8  }
  0x1b   : > { %p2269_p5 = por %p168_p2, %p167_p0  ;;  %p2275_p6 = por %p4253_p4, %p173_p3 }
  0x1c   : > { %4612 = sst [smem:[#allocation33_spill]] %s2267_s10  ;;  %p197_p7 = scmp.eq.s32.totalorder %s2251_s28, 1 }
  0x1d   : > { %s4613_s11 = scalar_select %p2269_p5, 1, 0 }
  0x1e   : > { %s4614_s12 = scalar_select %p2275_p6, 1, 0 }
  0x1f   : > { %p203_p8 = scmp.eq.s32.totalorder %s1679_s29, 1  ;;  %p1680_p9 = scmp.ge.s32.totalorder %s2169_s27, 1 }
  0x20   : > { %p210_p10 = scmp.lt.s32.totalorder %s2169_s27, 3  ;;  %p2282_p11 = por %p197_p7, %p167_p0 }
  0x21   : > { %p2286_p12 = por %p203_p8, %p173_p3  ;;  %s4620_s2 = sld [smem:[#allocation203_spill]] }
  0x22   : > { %s4615_s13 = scalar_select %p2282_p11, 1, 0 }
  0x23   : > { %s4617_s14 = scalar_select %p2286_p12, 1, 0 }
  0x24   : > { %4616 = sst [smem:[#allocation34_spill]] %s4615_s13  ;;  %p2290_p13 = pnand %p1680_p9, %p210_p10 }
  0x25   : > { %4618 = sst [smem:[#allocation35_spill]] %s4617_s14  ;;  %s4621_s4 = sld [smem:[#allocation205_spill]] }
  0x26   : > { %s4619_s15 = scalar_select %p2290_p13, 1, 0 }
  0x27   : > { %s243_s18 = sshll.u32 %s4620_s2, 4  ;;  %p1939_p1 = pneg %p2290_p13  ;;  %s244_s18 = int_to_ptr.vmem [resolvable:$true] %s243_s18 }
  0x28   : > { %s4623_s1 = sld [smem:[#allocation202_spill]]  ;;  %s2027_s9 = scalar_lea.vmem %s244_s18, 16 }
  0x29   : > { %p2304_p0 = pnand %p1939_p1, %p4253_p4  ;;  %p2028_p2 = scmp.ne.s32.totalorder %s244_s18, %s2027_s9 }
  0x2a   : > { %p2035_p9 = scmp.lt.s32.totalorder %s244_s18, %s244_s18  ;;  %p2036_p10 = scmp.lt.s32.totalorder %s2027_s9, %s2027_s9 }
  0x2b   : > { %s265_s21 = sshll.u32 %s4621_s4, 4  ;;  %p2315_p3 = pneg %p2304_p0  ;;  %s266_s21 = int_to_ptr.vmem [resolvable:$true] %s265_s21 }
  0x2c   : > { %p2037_p1 = por %p2036_p10, %p2035_p9 }
  0x2d   : > { %p2030_p7 = pnand %p2315_p3, %p2028_p2 }
  0x2e   : > { %s232_s8 = sshll.u32 %s4623_s1, 4  ;;  %s2311_s8 = int_to_ptr.vmem [resolvable:$true] %s232_s8 }
  0x2f   : > { %p2031_p8 = pneg %p2030_p7 }
  0x31   : > { %p2038_p4 = pnand %p2037_p1, %p2031_p8 }
  0x33   : > { %2041 = shalt.err (!%p2038_p4)
}
  0x34   : > { %s2171_s17 = smov [#allocation8]   ;;  %s2042_s19 = scalar_lea.vmem %s266_s21, 16 }
  0x35   : > { %1948 = dma.vmem_to_smem (!%p2304_p0), %s244_s18, 16, %s2171_s17, [#allocation9]  }
  0x36   : > { %p2043_p12 = scmp.ne.s32.totalorder %s266_s21, %s2042_s19  ;;  %p2050_p13 = scmp.lt.s32.totalorder %s266_s21, %s266_s21 }
  0x37   : > { %p2051_p5 = scmp.lt.s32.totalorder %s2042_s19, %s2042_s19 }
  0x38   : > { %p2045_p11 = pnand %p2043_p12, %p2315_p3 }
  0x39   : > { %p2052_p2 = por %p2051_p5, %p2050_p13 }
  0x3a   : > { %p2046_p6 = pneg %p2045_p11 }
  0x3c   : > { %p2053_p7 = pnand %p2052_p2, %p2046_p6 }
  0x3e   : > { %2056 = shalt.err (!%p2053_p7)
}
  0x3f   : > { %s2172_s20 = smov [#allocation11]   ;;  %s4625_s0 = sld [smem:[#allocation201_spill]] }
  0x40   : > { %1954 = dma.vmem_to_smem (!%p2304_p0), %s266_s21, 16, %s2172_s20, [#allocation12]  }
  0x45   : > { %s2057_s9 = scalar_lea.hbm %s4625_s0, 16 }
  0x46   : > { %p2058_p4 = scmp.ne.s32.totalorder %s4625_s0, %s2057_s9  ;;  %p2064_p5 = scmp.lt.u32.totalorder %s2057_s9, %s4625_s0 }
  0x48   : > { %p2060_p11 = pnand %p2058_p4, %p2315_p3 }
  0x4a   : > { %p2061_p12 = pneg %p2060_p11 }
  0x4c   : > { %p2066_p6 = pnand %p2064_p5, %p2061_p12 }
  0x4e   : > { %2069 = shalt.err (!%p2066_p6)
}
  0x4f   : > { %s2173_s2 = smov [#allocation2]   ;;  %s4626_s3 = sld [smem:[#allocation204_spill]] }
  0x50   : > { %1942 = dma.hbm_to_smem (!%p2304_p0), %s4625_s0, 16, %s2173_s2, [#allocation5]  }
  0x51   : > { %s2070_s17 = scalar_lea.vmem %s2311_s8, 16  ;;  %p2078_p10 = scmp.lt.s32.totalorder %s2311_s8, %s2311_s8 }
  0x52   : > { %p2071_p13 = scmp.ne.s32.totalorder %s2311_s8, %s2070_s17  ;;  %p2079_p1 = scmp.lt.s32.totalorder %s2070_s17, %s2070_s17 }
  0x54   : > { %p2073_p8 = pnand %p2071_p13, %p2315_p3  ;;  %p2080_p2 = por %p2079_p1, %p2078_p10 }
  0x55   : > { %s254_s18 = sshll.u32 %s4626_s3, 4  ;;  %s255_s18 = int_to_ptr.vmem [resolvable:$true] %s254_s18 }
  0x56   : > { %p2074_p9 = pneg %p2073_p8 }
  0x58   : > { %p2081_p7 = pnand %p2080_p2, %p2074_p9 }
  0x5a   : > { %2084 = shalt.err (!%p2081_p7)
}
  0x5b   : > { %s2174_s1 = smov [#allocation7]   ;;  %s2085_s2 = scalar_lea.vmem %s255_s18, 16 }
  0x5c   : > { %1945 = dma.vmem_to_smem (!%p2304_p0), %s2311_s8, 16, %s2174_s1, [#allocation6]  }
  0x5d   : > { %p2086_p4 = scmp.ne.s32.totalorder %s255_s18, %s2085_s2  ;;  %p2093_p5 = scmp.lt.s32.totalorder %s255_s18, %s255_s18 }
  0x5e   : > { %p2094_p6 = scmp.lt.s32.totalorder %s2085_s2, %s2085_s2 }
  0x5f   : > { %p2088_p11 = pnand %p2086_p4, %p2315_p3 }
  0x60   : > { %p2095_p13 = por %p2094_p6, %p2093_p5 }
  0x61   : > { %p2089_p12 = pneg %p2088_p11 }
  0x63   : > { %p2096_p8 = pnand %p2095_p13, %p2089_p12 }
  0x65   : > { %2099 = shalt.err (!%p2096_p8)
}
  0x66   : > { %s2175_s9 = smov [#allocation10]   ;;  %s4627_s5 = sld [smem:[#allocation206_spill]] }
  0x67   : > { %1951 = dma.vmem_to_smem (!%p2304_p0), %s255_s18, 16, %s2175_s9, [#allocation9]  }
  0x6c   : > { %s276_s8 = sshll.u32 %s4627_s5, 4  ;;  %s277_s8 = int_to_ptr.vmem [resolvable:$true] %s276_s8 }
  0x6d   : > { %s2100_s20 = scalar_lea.vmem %s277_s8, 16  ;;  %p2108_p2 = scmp.lt.s32.totalorder %s277_s8, %s277_s8 }
  0x6e   : > { %p2101_p9 = scmp.ne.s32.totalorder %s277_s8, %s2100_s20  ;;  %p2109_p7 = scmp.lt.s32.totalorder %s2100_s20, %s2100_s20 }
  0x70   : > { %p2103_p10 = pnand %p2101_p9, %p2315_p3  ;;  %p2110_p4 = por %p2109_p7, %p2108_p2 }
  0x72   : > { %p2104_p1 = pneg %p2103_p10 }
  0x74   : > { %p2111_p11 = pnand %p2110_p4, %p2104_p1 }
  0x76   : > { %2114 = shalt.err (!%p2111_p11)
}
  0x77   : > { %s2176_s23 = smov [#allocation13]   ;;  %p1687_p12 = scmp.ge.s32.totalorder %s2169_s27, 2 }
  0x78   : > { %1957 = dma.vmem_to_smem (!%p2304_p0), %s277_s8, 16, %s2176_s23, [#allocation12]  }
  0x79   : > { %283 = sbr.rel (%p1687_p12) target bundleno = 143 (0x8f), region = 40 }
  0x80   : > { %s287_s16 = sand.u32 1, %s2165_s26   ;;  %s1896_s29 = sshll.u32 %s2169_s27, 8 }
  0x81   : > { %s1688_s18 = sshll.u32 %s287_s16, 5  ;;  %s4628_s6 = sld [smem:[#allocation207_spill]] }
  0x82   : > { %p4629_p0 = scmp.ne.s32.totalorder %s4613_s11, 0  ;;  %s291_s9 = scalar_lea.vmem [#allocation14], %s1688_s18 }
  0x83   : > { %s310_s19 = sshll.u32 %s291_s9, 4  ;;  %s2177_s8 = smov 512   ;;  %s311_s19 = int_to_ptr.vmem [resolvable:$true] %s310_s19 }
  0x84   : > { %s1910_s2 = scalar_select %p4629_p0, [#allocation0], [#allocation20] }
  0x85   : > { %1911 = sst [smem:[#allocation17]] (%p4629_p0), %s2177_s8  ;;  %s2178_s20 = smov 256  }
  0x86   : > { %s302_s21 = sld [smem:[%s1910_s2]]   ;;  %s2179_s23 = smov 2  }
  0x87   : > { %s297_s22 = scalar_lea.hbm %s4628_s6, %s1896_s29  ;;  %1912 = sst [smem:[#allocation17 + $0x1]] (%p4629_p0), %s2178_s20 }
  0x88   : > { %1913 = sst [smem:[#allocation17 + $0x2]] (%p4629_p0), %s2179_s23  ;;  %s2180_s0 = smov 128  }
  0x89   : > { %1914 = sst [smem:[#allocation17 + $0x3]] (%p4629_p0), %s2180_s0  ;;  %s2181_s18 = smov 8  }
  0x8a   : > { %1915 = sst [smem:[#allocation17 + $0x4]] (%p4629_p0), %s2180_s0  ;;  %s288_s1 = scalar_lea.sflag [#allocation3], %s287_s16 }
  0x8b   : > { %1916 = sst [smem:[#allocation17 + $0x5]] (%p4629_p0), %s2181_s18  ;;  %s2182_s2 = smov [#allocation16]  }
  0x8c   : > { %s1691_s29 = sshll.u32 %s302_s21, 26 }
  0x8d   : > { %s1692_s17 = sadd.s32 134217728, %s1691_s29 }
  0x8e   : > { %1917 = dma.general (%p4629_p0), %s297_s22, 512, %s311_s19, %s288_s1, %s2182_s2, [#allocation17], %s1692_s17, 0  }
  0x8f PF: > { %p4630_p3 = scmp.ne.s32.totalorder %s4619_s15, 0 }
  0x91   : > { %335 = sbr.rel (%p4630_p3) target bundleno = 507 (0x1fb), region = 48 }
  0x98   : > { %p4631_p5 = scmp.eq.s32.totalorder %s2251_s28, 0 }
  0x9a   : > { %2132 = dma.done.wait (%p4631_p5), [#allocation5], 16   ;;  %p4632_p6 = pmov %p4631_p5 }
  0x9b   : > { %p4633_p13 = pmov %p4631_p5 }
  0x9c   : > { %2134 = vsyncadd (%p4632_p6), [#allocation5], 4294967280 }
  0x9d   : > { %2136 = dma.done.wait (%p4633_p13), [#allocation6], 16   ;;  %p4634_p8 = pmov %p4631_p5 }
  0x9e   : > { %p4635_p9 = pmov %p4631_p5 }
  0x9f   : > { %2138 = vsyncadd (%p4634_p8), [#allocation6], 4294967280 }
  0xa0   : > { %2140 = dma.done.wait (%p4635_p9), [#allocation9], 32   ;;  %p4636_p10 = pmov %p4631_p5 }
  0xa1   : > { %p4637_p1 = pmov %p4631_p5 }
  0xa2   : > { %2142 = vsyncadd (%p4636_p10), [#allocation9], 4294967264 }
  0xa3   : > { %2144 = dma.done.wait (%p4637_p1), [#allocation12], 32   ;;  %p4638_p2 = pmov %p4637_p1 }
  0xa4   : > { %s2409_s0 = sand.u32 1, %s2161_s25   ;;  %p4640_p7 = scmp.ne.s32.totalorder %s4614_s12, 0 }
  0xa5   : > { %2146 = vsyncadd (%p4638_p2), [#allocation12], 4294967264  ;;  %4639 = sst [smem:[#allocation36_spill]] %s2409_s0  ;;  %s4258_s11 = sshll.u32 %s2409_s0, 5 }
  0xa6   : > { %s362_s15 = scalar_lea.sflag [#allocation3], %s2409_s0  ;;  %s2415_s16 = scalar_lea.vmem [#allocation14], %s4258_s11 }
  0xa7   : > { %2148 = dma.done.wait (%p4640_p7), %s362_s15, 512  }
  0xa8   : > { %2150 = vsyncadd (%p4640_p7), %s362_s15, 4294966784 }
  0xa9   : > { %370 = sfence }
  0xaa   : > { %s2421_s22 = sld [smem:[#allocation2]]  ;;  %s2423_s9 = sld [smem:[#allocation2 + $0x1]]  ;;  %v2440_v0 = vld [vmem:[%s2415_s16] sm:$0xff]  ;;  %v2447_v1 = vld [vmem:[%s2415_s16 + $0x10] sm:$0xff]  ;;  %v1887_v6 = vld [vmem:[%s2415_s16 + $0x8] sm:$0xff] }
  0xab   : > { %s2425_s19 = sld [smem:[#allocation2 + $0x2]]  ;;  %s2427_s21 = sld [smem:[#allocation2 + $0x3]] }
  0xac   : > { %s2429_s8 = sld [smem:[#allocation2 + $0x4]]  ;;  %s2431_s20 = sld [smem:[#allocation2 + $0x5]] }
  0xad   : > { %s2433_s12 = sld [smem:[#allocation2 + $0x6]]  ;;  %s2435_s23 = sld [smem:[#allocation2 + $0x7]] }
  0xae   : > { %s2437_s29 = sld [smem:[#allocation2 + $0x8]]  ;;  %s2442_s18 = sld [smem:[#allocation2 + $0x9]] }
  0xaf   : > { %s2444_s17 = sld [smem:[#allocation2 + $0xa]]  ;;  %s2449_s1 = sld [smem:[#allocation2 + $0xb]] }
  0xb0   : > { %s2451_s2 = sld [smem:[#allocation2 + $0xc]]  ;;  %v592_v2 = vstv %s2421_s22  ;;  %s2454_s15 = sld [smem:[#allocation2 + $0xd]]  ;;  %v594_v4 = vstv %s2423_s9 }
  0xb1   : > { %s2456_s11 = sld [smem:[#allocation2 + $0xe]]  ;;  %v593_v3 = vmul.f32 %v592_v2, %v2440_v0  ;;  %v600_v5 = vstv %s2425_s19  ;;  %s2462_s3 = sld [smem:[#allocation2 + $0xf]]  ;;  %v595_v7 = vmul.f32 %v2447_v1, %v594_v4  ;;  %v602_v8 = vstv %s2427_s21 }
  0xb2   : > { %s2464_s4 = sld [smem:[#allocation2 + $0x10]]  ;;  %v608_v9 = vstv %s2429_s8  ;;  %v601_v10 = vmul.f32 %v600_v5, %v2440_v0  ;;  %v603_v11 = vmul.f32 %v2447_v1, %v602_v8  ;;  %v610_v12 = vstv %s2431_s20  ;;  %s2479_s22 = sld [smem:[#allocation2 + $0x11]] }
  0xb3   : > { %v616_v13 = vstv %s2433_s12  ;;  %v609_v14 = vmul.f32 %v608_v9, %v2440_v0  ;;  %v611_v15 = vmul.f32 %v2447_v1, %v610_v12  ;;  %v618_v16 = vstv %s2435_s23  ;;  %s2490_s5 = sld [smem:[#allocation2 + $0x12]]  ;;  %s2492_s6 = sld [smem:[#allocation7]] }
  0xb4   : > { %4641 = sst [smem:[#allocation37_spill]] %s2437_s29  ;;  %v2488_v17 = vmul.f32 %v1887_v6, %v592_v2  ;;  %v596_v18 = vadd.f32 %v595_v7, %v593_v3  ;;  %v617_v19 = vmul.f32 %v616_v13, %v2440_v0  ;;  %v624_v20 = vstv %s2437_s29  ;;  %s2499_s10 = sld [smem:[#allocation7 + $0x1]] }
  0xb5   : > { %4642 = sst [smem:[#allocation38_spill]] %s2442_s18  ;;  %v626_v21 = vstv %s2442_s18  ;;  %s2501_s26 = sld [smem:[#allocation7 + $0x2]]  ;;  %v619_v22 = vmul.f32 %v2447_v1, %v618_v16  ;;  %v625_v23 = vmul.f32 %v624_v20, %v2440_v0  ;;  %v632_v25 = vstv %s2444_s17 }
  0xb6   : > { %4643 = sst [smem:[#allocation39_spill]] %s2444_s17  ;;  %v627_v24 = vmul.f32 %v2447_v1, %v626_v21  ;;  %s2513_s25 = sld [smem:[#allocation7 + $0x3]]  ;;  %v604_v26 = vadd.f32 %v603_v11, %v601_v10  ;;  %v633_v27 = vmul.f32 %v632_v25, %v2440_v0  ;;  %v4525_v28 = vstv %s2449_s1 }
  0xb7   : > { %4644 = sst [smem:[#allocation40_spill]] %s2449_s1  ;;  %s2515_s30 = sld [smem:[#allocation7 + $0x4]]  ;;  %v4524_v29 = vstv %s2451_s2  ;;  %v612_v30 = vadd.f32 %v611_v15, %v609_v14  ;;  %v635_v31 = vmul.f32 %v2447_v1, %v4525_v28  ;;  %v4510_v33 = vstv %s2454_s15 }
  0xb8   : > { %4645 = sst [smem:[#allocation41_spill]] %s2451_s2  ;;  %s2522_s27 = sld [smem:[#allocation7 + $0x5]]  ;;  %v641_v32 = vmul.f32 %v4524_v29, %v2440_v0  ;;  %v643_v34 = vmul.f32 %v2447_v1, %v4510_v33  ;;  %v4499_v35 = vstv %s2456_s11  ;;  %v4490_v36 = vstv %s2462_s3 }
  0xb9   : > { %4646 = sst [smem:[#allocation42_spill]] %s2454_s15  ;;  %s2524_s14 = sld [smem:[#allocation7 + $0x6]]  ;;  %v4486_v37 = vstv %s2464_s4  ;;  %v620_v38 = vadd.f32 %v619_v22, %v617_v19  ;;  %v628_v39 = vadd.f32 %v627_v24, %v625_v23  ;;  %v649_v40 = vmul.f32 %v4499_v35, %v2440_v0 }
  0xba   : > { %4647 = sst [smem:[#allocation43_spill]] %s2456_s11  ;;  %s2533_s24 = sld [smem:[#allocation2 + $0x13]]  ;;  %v651_v41 = vmul.f32 %v2447_v1, %v4490_v36  ;;  %v597_v42 = vstv %s2492_s6  ;;  %v636_v43 = vadd.f32 %v635_v31, %v633_v27  ;;  %v644_v44 = vadd.f32 %v643_v34, %v641_v32 }
  0xbb   : > { %4648 = sst [smem:[#allocation44_spill]] %s2462_s3  ;;  %s2535_s7 = sld [smem:[#allocation7 + $0x7]]  ;;  %v657_v45 = vmul.f32 %v4486_v37, %v2440_v0  ;;  %v598_v46 = vadd.f32 %v597_v42, %v596_v18  ;;  %v605_v47 = vstv %s2499_s10  ;;  %v613_v48 = vstv %s2501_s26 }
  0xbc   : > { %4649 = sst [smem:[#allocation45_spill]] %s2464_s4  ;;  %s2543_s13 = sld [smem:[#allocation2 + $0x14]]  ;;  %v4477_v49 = vstv %s2479_s22  ;;  %v606_v50 = vadd.f32 %v605_v47, %v604_v26  ;;  %v614_v51 = vadd.f32 %v613_v48, %v612_v30  ;;  %v4531_v52 = vstv %s2513_s25 }
  0xbd   : > { %4650 = sst [smem:[#allocation46_spill]] %s2479_s22  ;;  %s2545_s28 = sld [smem:[#allocation7 + $0x8]]  ;;  %v4494_v53 = vstv %s2515_s30  ;;  %v622_v54 = vadd.f32 %v4531_v52, %v620_v38  ;;  %v652_v57 = vadd.f32 %v651_v41, %v649_v40  ;;  %v2589_v58 = vmax.f32 %v598_v46, 0.0 }
  0xbe   : > { %4651 = sst [smem:[#allocation47_spill]] %s2490_s5  ;;  %s2553_s15 = sld [smem:[#allocation2 + $0x15]]  ;;  %v630_v55 = vadd.f32 %v4494_v53, %v628_v39  ;;  %v4472_v56 = vstv %s2522_s27  ;;  %v4473_v61 = vstv %s2490_s5  ;;  %v2597_v62 = vmax.f32 %v606_v50, 0.0 }
  0xbf   : > { %4652 = sst [smem:[#allocation48_spill]] %s2501_s26  ;;  %s2555_s2 = sld [smem:[#allocation7 + $0x9]]  ;;  %v638_v59 = vadd.f32 %v4472_v56, %v636_v43  ;;  %v4422_v60 = vstv %s2524_s14  ;;  %v2599_v63 = vmax.f32 %v614_v51, 0.0  ;;  %v2601_v2 = vmax.f32 %v622_v54, 0.0 }
  0xc0   : > { %4653 = sst [smem:[#allocation49_spill]] %s2513_s25  ;;  %s2561_s11 = sld [smem:[#allocation7 + $0xa]]  ;;  %v2606_v6 = vmax.f32 %v630_v55, 0.0  ;;  %v646_v10 = vadd.f32 %v4422_v60, %v644_v44  ;;  %v659_v11 = vmul.f32 %v2447_v1, %v4477_v49  ;;  %v665_v18 = vmul.f32 %v4473_v61, %v2440_v0 }
  0xc1   : > { %4654 = sst [smem:[#allocation50_spill]] %s2515_s30  ;;  %s2563_s3 = sld [smem:[#allocation8]]  ;;  %v4340_v3 = vstv %s2535_s7  ;;  %v2608_v7 = vmax.f32 %v638_v59, 0.0  ;;  %v4468_v19 = vstv %s2533_s24 }
  0xc2   : > { %4655 = sst [smem:[#allocation51_spill]] %s2522_s27  ;;  %s2570_s0 = sld [smem:[#allocation8 + $0x1]]  ;;  %v654_v14 = vadd.f32 %v4340_v3, %v652_v57  ;;  %v660_v22 = vadd.f32 %v659_v11, %v657_v45  ;;  %v667_v23 = vmul.f32 %v2447_v1, %v4468_v19  ;;  %v4429_v26 = vstv %s2543_s13 }
  0xc3   : > { %4656 = sst [smem:[#allocation52_spill]] %s2524_s14  ;;  %s2572_s1 = sld [smem:[#allocation8 + $0x2]]  ;;  %v4337_v15 = vstv %s2545_s28  ;;  %v673_v27 = vmul.f32 %v4429_v26, %v2440_v0  ;;  %v2665_v45 = vmax.f32 %v646_v10, 0.0 }
  0xc4   : > { %4657 = sst [smem:[#allocation53_spill]] %s2533_s24  ;;  %s2580_s4 = sld [smem:[#allocation8 + $0x3]]  ;;  %v4404_v30 = vstv %s2553_s15  ;;  %v662_v34 = vadd.f32 %v4337_v15, %v660_v22  ;;  %v668_v38 = vadd.f32 %v667_v23, %v665_v18  ;;  %v2676_v51 = vmax.f32 %v654_v14, 0.0 }
  0xc5   : > { %4658 = sst [smem:[#allocation54_spill]] %s2535_s7  ;;  %s2582_s17 = sld [smem:[#allocation8 + $0x4]]  ;;  %v4314_v24 = vstv %s2555_s2  ;;  %v675_v39 = vmul.f32 %v2447_v1, %v4404_v30 }
  0xc6   : > { %4659 = sst [smem:[#allocation55_spill]] %s2543_s13  ;;  %s2595_s26 = sld [smem:[#allocation8 + $0x5]]  ;;  %v4308_v31 = vstv %s2561_s11  ;;  %v670_v1 = vadd.f32 %v4314_v24, %v668_v38  ;;  %v2678_v54 = vmax.f32 %v662_v34, 0.0 }
  0xc7   : > { %4660 = sst [smem:[#allocation56_spill]] %s2545_s28  ;;  %s2604_s27 = sld [smem:[#allocation8 + $0x6]]  ;;  %v4330_v32 = vstv %s2563_s3  ;;  %v676_v46 = vadd.f32 %v675_v39, %v673_v27 }
  0xc8   : > { %4661 = sst [smem:[#allocation57_spill]] %s2553_s15  ;;  %s2615_s30 = sld [smem:[#allocation8 + $0x7]]  ;;  %v681_v40 = vmul.f32 %v4330_v32, %v2589_v58  ;;  %v4327_v0 = vstv %s2570_s0  ;;  %v2696_v14 = vmax.f32 %v670_v1, 0.0 }
  0xc9   : > { %4662 = sst [smem:[#allocation58_spill]] %s2555_s2  ;;  %s2617_s25 = sld [smem:[#allocation8 + $0x8]]  ;;  %v4312_v41 = vstv %s2572_s1  ;;  %v683_v50 = vmul.f32 %v4327_v0, %v2597_v62  ;;  %v678_v59 = vadd.f32 %v4308_v31, %v676_v46 }
  0xca   : > { %4663 = sst [smem:[#allocation59_spill]] %s2561_s11  ;;  %s2626_s14 = sld [smem:[#allocation8 + $0x9]]  ;;  %v4307_v43 = vstv %s2580_s4  ;;  %v686_v55 = vmul.f32 %v4312_v41, %v2599_v63 }
  0xcb   : > { %4664 = sst [smem:[#allocation60_spill]] %s2563_s3  ;;  %s2633_s7 = sld [smem:[#allocation8 + $0xa]]  ;;  %v4305_v44 = vstv %s2582_s17  ;;  %v684_v10 = vadd.f32 %v683_v50, %v681_v40  ;;  %v689_v11 = vmul.f32 %v4307_v43, %v2601_v2  ;;  %v2705_v34 = vmax.f32 %v678_v59, 0.0 }
  0xcc   : > { %4665 = sst [smem:[#allocation61_spill]] %s2570_s0  ;;  %s2635_s22 = sld [smem:[#allocation8 + $0xb]]  ;;  %v4299_v57 = vstv %s2595_s26  ;;  %v692_v18 = vmul.f32 %v4305_v44, %v2606_v6 }
  0xcd   : > { %4666 = sst [smem:[#allocation62_spill]] %s2572_s1  ;;  %s2643_s24 = sld [smem:[#allocation8 + $0xc]]  ;;  %v4300_v22 = vstv %s2604_s27  ;;  %v687_v38 = vadd.f32 %v686_v55, %v684_v10  ;;  %v695_v39 = vmul.f32 %v4299_v57, %v2608_v7 }
  0xce   : > { %4667 = sst [smem:[#allocation63_spill]] %s2580_s4  ;;  %s2645_s5 = sld [smem:[#allocation8 + $0xd]]  ;;  %v4304_v23 = vstv %s2615_s30  ;;  %v698_v1 = vmul.f32 %v4300_v22, %v2665_v45 }
  0xcf   : > { %4668 = sst [smem:[#allocation64_spill]] %s2582_s17  ;;  %s2655_s13 = sld [smem:[#allocation8 + $0xe]]  ;;  %v4303_v27 = vstv %s2617_s25  ;;  %v701_v46 = vmul.f32 %v4304_v23, %v2676_v51  ;;  %v690_v59 = vadd.f32 %v689_v11, %v687_v38 }
  0xd0   : > { %4669 = sst [smem:[#allocation65_spill]] %s2595_s26  ;;  %s2657_s18 = sld [smem:[#allocation8 + $0xf]]  ;;  %v4313_v40 = vstv %s2626_s14  ;;  %v704_v50 = vmul.f32 %v4303_v27, %v2678_v54 }
  0xd1   : > { %4670 = sst [smem:[#allocation66_spill]] %s2604_s27  ;;  %s2663_s28 = sld [smem:[#allocation8 + $0x10]]  ;;  %v4321_v10 = vstv %s2633_s7  ;;  %v693_v44 = vadd.f32 %v692_v18, %v690_v59 }
  0xd2   : > { %4671 = sst [smem:[#allocation67_spill]] %s2615_s30  ;;  %s2672_s3 = sld [smem:[#allocation8 + $0x11]]  ;;  %v4306_v55 = vstv %s2635_s22  ;;  %v710_v24 = vmul.f32 %v4321_v10, %v2705_v34 }
  0xd3   : > { %4672 = sst [smem:[#allocation68_spill]] %s2617_s25  ;;  %s2674_s15 = sld [smem:[#allocation8 + $0x12]]  ;;  %v716_v57 = vmul.f32 %v4306_v55, %v2589_v58  ;;  %v4311_v22 = vstv %s2643_s24  ;;  %v707_v55 = vmul.f32 %v4313_v40, %v2696_v14  ;;  %v696_v40 = vadd.f32 %v695_v39, %v693_v44 }
  0xd4   : > { %4673 = sst [smem:[#allocation69_spill]] %s2626_s14  ;;  %s2692_s2 = sld [smem:[#allocation8 + $0x13]]  ;;  %v718_v27 = vmul.f32 %v4311_v22, %v2597_v62  ;;  %v4315_v23 = vstv %s2645_s5 }
  0xd5   : > { %4674 = sst [smem:[#allocation70_spill]] %s2633_s7  ;;  %s2694_s0 = sld [smem:[#allocation8 + $0x14]]  ;;  %v4316_v11 = vstv %s2655_s13  ;;  %v721_v43 = vmul.f32 %v4315_v23, %v2599_v63 }
  0xd6   : > { %4675 = sst [smem:[#allocation71_spill]] %s2635_s22  ;;  %s2701_s4 = sld [smem:[#allocation8 + $0x15]]  ;;  %v4322_v38 = vstv %s2657_s18  ;;  %v724_v31 = vmul.f32 %v4316_v11, %v2601_v2  ;;  %v719_v22 = vadd.f32 %v718_v27, %v716_v57 }
  0xd7   : > { %4676 = sst [smem:[#allocation72_spill]] %s2643_s24  ;;  %s2703_s17 = sld [smem:[#allocation8 + $0x16]]  ;;  %v4320_v41 = vstv %s2663_s28  ;;  %v727_v23 = vmul.f32 %v4322_v38, %v2606_v6 }
  0xd8   : > { %4677 = sst [smem:[#allocation73_spill]] %s2645_s5  ;;  %s2711_s11 = sld [smem:[#allocation8 + $0x17]]  ;;  %v4326_v18 = vstv %s2672_s3  ;;  %v730_v11 = vmul.f32 %v4320_v41, %v2608_v7  ;;  %v722_v57 = vadd.f32 %v721_v43, %v719_v22  ;;  %v699_v41 = vadd.f32 %v698_v1, %v696_v40 }
  0xd9   : > { %4678 = sst [smem:[#allocation74_spill]] %s2655_s13  ;;  %s2713_s1 = sld [smem:[#allocation8 + $0x18]]  ;;  %v4325_v59 = vstv %s2674_s15  ;;  %v733_v27 = vmul.f32 %v4326_v18, %v2665_v45 }
  0xda   : > { %4679 = sst [smem:[#allocation75_spill]] %s2657_s18  ;;  %s2725_s26 = sld [smem:[#allocation8 + $0x19]]  ;;  %v736_v44 = vmul.f32 %v4325_v59, %v2676_v51  ;;  %v4329_v39 = vstv %s2692_s2  ;;  %v725_v22 = vadd.f32 %v724_v31, %v722_v57  ;;  %v702_v40 = vadd.f32 %v701_v46, %v699_v41 }
  0xdb   : > { %4680 = sst [smem:[#allocation76_spill]] %s2663_s28  ;;  %s2732_s30 = sld [smem:[#allocation8 + $0x1a]]  ;;  %v739_v10 = vmul.f32 %v4329_v39, %v2678_v54  ;;  %v4341_v38 = vstv %s2694_s0 }
  0xdc   : > { %4681 = sst [smem:[#allocation77_spill]] %s2672_s3  ;;  %s2734_s27 = sld [smem:[#allocation8 + $0x1b]]  ;;  %v4384_v43 = vstv %s2701_s4  ;;  %v728_v31 = vadd.f32 %v727_v23, %v725_v22 }
  0xdd   : > { %4682 = sst [smem:[#allocation78_spill]] %s2674_s15  ;;  %s2751_s25 = sld [smem:[#allocation8 + $0x1c]]  ;;  %v4334_v59 = vstv %s2703_s17  ;;  %v745_v22 = vmul.f32 %v4384_v43, %v2705_v34 }
  0xde   : > { %4683 = sst [smem:[#allocation79_spill]] %s2692_s2  ;;  %s2753_s24 = sld [smem:[#allocation8 + $0x1d]]  ;;  %v4335_v18 = vstv %s2711_s11  ;;  %v751_v1 = vmul.f32 %v4334_v59, %v2589_v58  ;;  %v705_v59 = vadd.f32 %v704_v50, %v702_v40  ;;  %v731_v23 = vadd.f32 %v730_v11, %v728_v31 }
  0xdf   : > { %4684 = sst [smem:[#allocation80_spill]] %s2694_s0  ;;  %s2767_s14 = sld [smem:[#allocation8 + $0x1e]]  ;;  %v4336_v0 = vstv %s2713_s1  ;;  %v753_v39 = vmul.f32 %v4335_v18, %v2597_v62  ;;  %v742_v18 = vmul.f32 %v4341_v38, %v2696_v14 }
  0xe0   : > { %4685 = sst [smem:[#allocation81_spill]] %s2701_s4  ;;  %s2776_s7 = sld [smem:[#allocation8 + $0x1f]]  ;;  %v756_v32 = vmul.f32 %v4336_v0, %v2599_v63  ;;  %v4343_v57 = vstv %s2725_s26  ;;  %v708_v3 = vadd.f32 %v707_v55, %v705_v59  ;;  %v734_v11 = vadd.f32 %v733_v27, %v731_v23 }
  0xe1   : > { %4686 = sst [smem:[#allocation82_spill]] %s2703_s17  ;;  %s2778_s28 = sld [smem:[#allocation8 + $0x20]]  ;;  %v4361_v41 = vstv %s2732_s30  ;;  %v754_v0 = vadd.f32 %v753_v39, %v751_v1  ;;  %v759_v15 = vmul.f32 %v4343_v57, %v2601_v2 }
  0xe2   : > { %4687 = sst [smem:[#allocation83_spill]] %s2711_s11  ;;  %s2785_s3 = sld [smem:[#allocation8 + $0x21]]  ;;  %v4350_v46 = vstv %s2734_s27  ;;  %v762_v39 = vmul.f32 %v4361_v41, %v2606_v6  ;;  %v737_v23 = vadd.f32 %v736_v44, %v734_v11 }
  0xe3   : > { %4688 = sst [smem:[#allocation84_spill]] %s2713_s1  ;;  %s2787_s15 = sld [smem:[#allocation8 + $0x22]]  ;;  %v4349_v50 = vstv %s2751_s25  ;;  %v757_v38 = vadd.f32 %v756_v32, %v754_v0  ;;  %v765_v1 = vmul.f32 %v4350_v46, %v2608_v7  ;;  %v2846_v0 = vadd.f32 %v710_v24, %v708_v3 }
  0xe4   : > { %4689 = sst [smem:[#allocation85_spill]] %s2725_s26  ;;  %s2792_s18 = sld [smem:[#allocation8 + $0x23]]  ;;  %v4348_v40 = vstv %s2753_s24  ;;  %v768_v31 = vmul.f32 %v4349_v50, %v2665_v45  ;;  %v740_v44 = vadd.f32 %v739_v10, %v737_v23 }
  0xe5   : > { %4690 = sst [smem:[#allocation86_spill]] %s2732_s30  ;;  %s2803_s2 = sld [smem:[#allocation8 + $0x24]]  ;;  %v771_v57 = vmul.f32 %v4348_v40, %v2676_v51  ;;  %v4355_v32 = vstv %s2767_s14  ;;  %v760_v55 = vadd.f32 %v759_v15, %v757_v38 }
  0xe6   : > { %4691 = sst [smem:[#allocation87_spill]] %s2734_s27  ;;  %s2805_s13 = sld [smem:[#allocation8 + $0x25]]  ;;  %v4362_v59 = vstv %s2776_s7  ;;  %v774_v40 = vmul.f32 %v4355_v32, %v2678_v54  ;;  %v743_v23 = vadd.f32 %v742_v18, %v740_v44 }
  0xe7   : > { %4692 = sst [smem:[#allocation88_spill]] %s2751_s25  ;;  %s2810_s17 = sld [smem:[#allocation8 + $0x26]]  ;;  %v4376_v27 = vstv %s2778_s28  ;;  %v763_v3 = vadd.f32 %v762_v39, %v760_v55 }
  0xe8   : > { %4693 = sst [smem:[#allocation89_spill]] %s2753_s24  ;;  %s2818_s1 = sld [smem:[#allocation8 + $0x27]]  ;;  %v4357_v50 = vstv %s2785_s3  ;;  %v2900_v18 = vadd.f32 %v745_v22, %v743_v23 }
  0xe9   : > { %4694 = sst [smem:[#allocation90_spill]] %s2767_s14  ;;  %s2820_s11 = sld [smem:[#allocation8 + $0x28]]  ;;  %v4356_v46 = vstv %s2787_s15  ;;  %v786_v15 = vmul.f32 %v4357_v50, %v2589_v58  ;;  %v766_v32 = vadd.f32 %v765_v1, %v763_v3 }
  0xea   : > { %4695 = sst [smem:[#allocation91_spill]] %s2776_s7  ;;  %s2833_s26 = sld [smem:[#allocation8 + $0x29]]  ;;  %v788_v24 = vmul.f32 %v4356_v46, %v2597_v62  ;;  %v4360_v38 = vstv %s2792_s18  ;;  %v777_v46 = vmul.f32 %v4362_v59, %v2696_v14  ;;  %v780_v59 = vmul.f32 %v4376_v27, %v2705_v34 }
  0xeb   : > { %4696 = sst [smem:[#allocation92_spill]] %s2778_s28  ;;  %s2842_s30 = sld [smem:[#allocation8 + $0x2a]]  ;;  %v791_v11 = vmul.f32 %v4360_v38, %v2599_v63  ;;  %v4383_v39 = vstv %s2803_s2  ;;  %v769_v3 = vadd.f32 %v768_v31, %v766_v32 }
  0xec   : > { %4697 = sst [smem:[#allocation93_spill]] %s2785_s3  ;;  %s2844_s27 = sld [smem:[#allocation8 + $0x2c]]  ;;  %v4370_v55 = vstv %s2805_s13  ;;  %v789_v50 = vadd.f32 %v788_v24, %v786_v15  ;;  %v794_v10 = vmul.f32 %v4383_v39, %v2601_v2 }
  0xed   : > { %4698 = sst [smem:[#allocation94_spill]] %s2787_s15  ;;  %s2850_s25 = sld [smem:[#allocation8 + $0x2d]]  ;;  %v4369_v38 = vstv %s2810_s17  ;;  %v797_v24 = vmul.f32 %v4370_v55, %v2606_v6 }
  0xee   : > { %4699 = sst [smem:[#allocation95_spill]] %s2792_s18  ;;  %s2852_s24 = sld [smem:[#allocation8 + $0x2e]]  ;;  %v4368_v41 = vstv %s2818_s1  ;;  %v792_v15 = vadd.f32 %v791_v11, %v789_v50  ;;  %v800_v44 = vmul.f32 %v4369_v38, %v2608_v7  ;;  %v772_v50 = vadd.f32 %v771_v57, %v769_v3 }
  0xef   : > { %4700 = sst [smem:[#allocation96_spill]] %s2803_s2  ;;  %s2859_s4 = sld [smem:[#allocation8 + $0x2b]]  ;;  %v4372_v1 = vstv %s2820_s11  ;;  %v803_v31 = vmul.f32 %v4368_v41, %v2665_v45 }
  0xf0   : > { %4701 = sst [smem:[#allocation97_spill]] %s2805_s13  ;;  %s2868_s0 = sld [smem:[#allocation8 + $0x2f]]  ;;  %v4375_v32 = vstv %s2833_s26  ;;  %v795_v11 = vadd.f32 %v794_v10, %v792_v15  ;;  %v806_v22 = vmul.f32 %v4372_v1, %v2676_v51  ;;  %v775_v10 = vadd.f32 %v774_v40, %v772_v50 }
  0xf1   : > { %4702 = sst [smem:[#allocation98_spill]] %s2810_s17  ;;  %s2870_s14 = sld [smem:[#allocation8 + $0x30]]  ;;  %v4385_v23 = vstv %s2842_s30  ;;  %v809_v41 = vmul.f32 %v4375_v32, %v2678_v54 }
  0xf2   : > { %4703 = sst [smem:[#allocation99_spill]] %s2818_s1  ;;  %s2877_s3 = sld [smem:[#allocation8 + $0x31]]  ;;  %v4378_v38 = vstv %s2844_s27  ;;  %v798_v3 = vadd.f32 %v797_v24, %v795_v11  ;;  %v778_v50 = vadd.f32 %v777_v46, %v775_v10 }
  0xf3   : > { %4704 = sst [smem:[#allocation100_spill]] %s2820_s11  ;;  %s2885_s15 = sld [smem:[#allocation8 + $0x32]]  ;;  %v4379_v55 = vstv %s2850_s25  ;;  %v821_v1 = vmul.f32 %v4378_v38, %v2589_v58  ;;  %v812_v38 = vmul.f32 %v4385_v23, %v2696_v14 }
  0xf4   : > { %4705 = sst [smem:[#allocation101_spill]] %s2833_s26  ;;  %s2887_s18 = sld [smem:[#allocation8 + $0x33]]  ;;  %v4382_v57 = vstv %s2852_s24  ;;  %v823_v32 = vmul.f32 %v4379_v55, %v2597_v62  ;;  %v801_v11 = vadd.f32 %v800_v44, %v798_v3  ;;  %v2960_v44 = vadd.f32 %v780_v59, %v778_v50 }
  0xf5   : > { %4706 = sst [smem:[#allocation102_spill]] %s2842_s30  ;;  %s2898_s7 = sld [smem:[#allocation8 + $0x34]]  ;;  %v4393_v15 = vstv %s2859_s4  ;;  %v826_v27 = vmul.f32 %v4382_v57, %v2599_v63 }
  0xf6   : > { %4707 = sst [smem:[#allocation103_spill]] %s2844_s27  ;;  %s2909_s28 = sld [smem:[#allocation8 + $0x35]]  ;;  %v4403_v40 = vstv %s2868_s0  ;;  %v824_v57 = vadd.f32 %v823_v32, %v821_v1  ;;  %v804_v10 = vadd.f32 %v803_v31, %v801_v11  ;;  %v815_v3 = vmul.f32 %v4393_v15, %v2705_v34 }
  0xf7   : > { %4708 = sst [smem:[#allocation104_spill]] %s2850_s25  ;;  %s2911_s13 = sld [smem:[#allocation8 + $0x36]]  ;;  %v4394_v24 = vstv %s2870_s14  ;;  %v829_v55 = vmul.f32 %v4403_v40, %v2601_v2 }
  0xf8   : > { %4709 = sst [smem:[#allocation105_spill]] %s2852_s24  ;;  %s2917_s17 = sld [smem:[#allocation8 + $0x37]]  ;;  %v4392_v39 = vstv %s2877_s3  ;;  %v832_v23 = vmul.f32 %v4394_v24, %v2606_v6  ;;  %v827_v1 = vadd.f32 %v826_v27, %v824_v57  ;;  %v807_v50 = vadd.f32 %v806_v22, %v804_v10 }
  0xf9   : > { %4710 = sst [smem:[#allocation106_spill]] %s2859_s4  ;;  %s2919_s1 = sld [smem:[#allocation8 + $0x38]]  ;;  %v4391_v43 = vstv %s2885_s15  ;;  %v835_v32 = vmul.f32 %v4392_v39, %v2608_v7 }
  0xfa   : > { %4711 = sst [smem:[#allocation107_spill]] %s2868_s0  ;;  %s2927_s2 = sld [smem:[#allocation8 + $0x39]]  ;;  %v4397_v46 = vstv %s2887_s18  ;;  %v838_v59 = vmul.f32 %v4391_v43, %v2665_v45  ;;  %v830_v43 = vadd.f32 %v829_v55, %v827_v1  ;;  %v810_v22 = vadd.f32 %v809_v41, %v807_v50 }
  0xfb   : > { %4712 = sst [smem:[#allocation108_spill]] %s2870_s14  ;;  %s2933_s11 = sld [smem:[#allocation8 + $0x3a]]  ;;  %v4396_v31 = vstv %s2898_s7  ;;  %v841_v11 = vmul.f32 %v4397_v46, %v2676_v51 }
  0xfc   : > { %4713 = sst [smem:[#allocation109_spill]] %s2877_s3  ;;  %s2935_s26 = sld [smem:[#allocation8 + $0x3b]]  ;;  %v844_v27 = vmul.f32 %v4396_v31, %v2678_v54  ;;  %v4408_v57 = vstv %s2909_s28  ;;  %v833_v55 = vadd.f32 %v832_v23, %v830_v43 }
  0xfd   : > { %4714 = sst [smem:[#allocation110_spill]] %s2885_s15  ;;  %s2945_s5 = sld [smem:[#allocation8 + $0x3c]]  ;;  %v4419_v39 = vstv %s2911_s13 }
  0xfe   : > { %4715 = sst [smem:[#allocation111_spill]] %s2887_s18  ;;  %s2953_s25 = sld [smem:[#allocation8 + $0x3d]]  ;;  %v4401_v15 = vstv %s2917_s17  ;;  %v836_v43 = vadd.f32 %v835_v32, %v833_v55 }
  0xff   : > { %4716 = sst [smem:[#allocation112_spill]] %s2898_s7  ;;  %s2955_s24 = sld [smem:[#allocation8 + $0x3e]]  ;;  %v4402_v24 = vstv %s2919_s1  ;;  %v856_v10 = vmul.f32 %v4401_v15, %v2589_v58  ;;  %v813_v15 = vadd.f32 %v812_v38, %v810_v22 }
 0x100   : > { %4717 = sst [smem:[#allocation113_spill]] %s2909_s28  ;;  %s2968_s30 = sld [smem:[#allocation8 + $0x3f]]  ;;  %v858_v31 = vmul.f32 %v4402_v24, %v2597_v62  ;;  %v4407_v46 = vstv %s2927_s2  ;;  %v847_v24 = vmul.f32 %v4408_v57, %v2696_v14  ;;  %v839_v32 = vadd.f32 %v838_v59, %v836_v43 }
 0x101   : > { %4718 = sst [smem:[#allocation114_spill]] %s2911_s13  ;;  %s2977_s4 = sld [smem:[#allocation8 + $0x40]]  ;;  %v861_v1 = vmul.f32 %v4407_v46, %v2599_v63  ;;  %v4421_v41 = vstv %s2933_s11  ;;  %v3028_v46 = vadd.f32 %v815_v3, %v813_v15 }
 0x102   : > { %4719 = sst [smem:[#allocation115_spill]] %s2917_s17  ;;  %s2979_s14 = sld [smem:[#allocation8 + $0x41]]  ;;  %v4411_v50 = vstv %s2935_s26  ;;  %v859_v40 = vadd.f32 %v858_v31, %v856_v10  ;;  %v864_v30 = vmul.f32 %v4421_v41, %v2601_v2  ;;  %v850_v31 = vmul.f32 %v4419_v39, %v2705_v34 }
 0x103   : > { %4720 = sst [smem:[#allocation116_spill]] %s2919_s1  ;;  %s2988_s15 = sld [smem:[#allocation8 + $0x42]]  ;;  %v4415_v23 = vstv %s2945_s5  ;;  %v867_v57 = vmul.f32 %v4411_v50, %v2606_v6  ;;  %v842_v43 = vadd.f32 %v841_v11, %v839_v32 }
 0x104   : > { %4721 = sst [smem:[#allocation117_spill]] %s2927_s2  ;;  %s2990_s3 = sld [smem:[#allocation8 + $0x43]]  ;;  %v4414_v38 = vstv %s2953_s25  ;;  %v862_v10 = vadd.f32 %v861_v1, %v859_v40  ;;  %v870_v15 = vmul.f32 %v4415_v23, %v2608_v7 }
 0x105   : > { %4722 = sst [smem:[#allocation118_spill]] %s2933_s11  ;;  %s2995_s0 = sld [smem:[#allocation8 + $0x44]]  ;;  %v4417_v22 = vstv %s2955_s24  ;;  %v873_v3 = vmul.f32 %v4414_v38, %v2665_v45  ;;  %v845_v11 = vadd.f32 %v844_v27, %v842_v43 }
 0x106   : > { %4723 = sst [smem:[#allocation119_spill]] %s2935_s26  ;;  %s3004_s7 = sld [smem:[#allocation8 + $0x45]]  ;;  %v4418_v40 = vstv %s2968_s30  ;;  %v865_v55 = vadd.f32 %v864_v30, %v862_v10  ;;  %v876_v1 = vmul.f32 %v4417_v22, %v2676_v51 }
 0x107   : > { %4724 = sst [smem:[#allocation120_spill]] %s2945_s5  ;;  %s3006_s18 = sld [smem:[#allocation8 + $0x46]]  ;;  %v879_v50 = vmul.f32 %v4418_v40, %v2678_v54  ;;  %v4447_v59 = vstv %s2977_s4  ;;  %v848_v27 = vadd.f32 %v847_v24, %v845_v11 }
 0x108   : > { %4725 = sst [smem:[#allocation121_spill]] %s2953_s25  ;;  %s3013_s17 = sld [smem:[#allocation8 + $0x47]]  ;;  %v4434_v38 = vstv %s2979_s14  ;;  %v868_v10 = vadd.f32 %v867_v57, %v865_v55  ;;  %v882_v55 = vmul.f32 %v4447_v59, %v2696_v14 }
 0x109   : > { %4726 = sst [smem:[#allocation122_spill]] %s2955_s24  ;;  %s3021_s1 = sld [smem:[#allocation8 + $0x48]]  ;;  %v4425_v23 = vstv %s2988_s15 }
 0x10a   : > { %4727 = sst [smem:[#allocation123_spill]] %s2968_s30  ;;  %s3023_s2 = sld [smem:[#allocation8 + $0x49]]  ;;  %v4424_v30 = vstv %s2990_s3  ;;  %v891_v22 = vmul.f32 %v4425_v23, %v2589_v58  ;;  %v871_v57 = vadd.f32 %v870_v15, %v868_v10  ;;  %v885_v15 = vmul.f32 %v4434_v38, %v2705_v34 }
 0x10b   : > { %4728 = sst [smem:[#allocation124_spill]] %s2977_s4  ;;  %s3036_s28 = sld [smem:[#allocation8 + $0x4a]]  ;;  %v893_v40 = vmul.f32 %v4424_v30, %v2597_v62  ;;  %v4428_v39 = vstv %s2995_s0 }
 0x10c   : > { %4729 = sst [smem:[#allocation125_spill]] %s2979_s14  ;;  %s3038_s11 = sld [smem:[#allocation8 + $0x4b]]  ;;  %v896_v32 = vmul.f32 %v4428_v39, %v2599_v63  ;;  %v4452_v41 = vstv %s3004_s7 }
 0x10d   : > { %4730 = sst [smem:[#allocation126_spill]] %s2988_s15  ;;  %s3054_s5 = sld [smem:[#allocation8 + $0x4c]]  ;;  %v4435_v60 = vstv %s3006_s18  ;;  %v894_v30 = vadd.f32 %v893_v40, %v891_v22  ;;  %v899_v23 = vmul.f32 %v4452_v41, %v2601_v2  ;;  %v874_v22 = vadd.f32 %v873_v3, %v871_v57 }
 0x10e   : > { %4731 = sst [smem:[#allocation127_spill]] %s2990_s3  ;;  %s3056_s26 = sld [smem:[#allocation8 + $0x4d]]  ;;  %v4439_v43 = vstv %s3013_s17  ;;  %v902_v10 = vmul.f32 %v4435_v60, %v2606_v6 }
 0x10f   : > { %4732 = sst [smem:[#allocation128_spill]] %s2995_s0  ;;  %s3061_s25 = sld [smem:[#allocation8 + $0x4e]]  ;;  %v4438_v39 = vstv %s3021_s1  ;;  %v897_v40 = vadd.f32 %v896_v32, %v894_v30  ;;  %v905_v24 = vmul.f32 %v4439_v43, %v2608_v7  ;;  %v851_v30 = vadd.f32 %v850_v31, %v848_v27 }
 0x110   : > { %4733 = sst [smem:[#allocation129_spill]] %s3004_s7  ;;  %s3070_s30 = sld [smem:[#allocation8 + $0x4f]]  ;;  %v4446_v26 = vstv %s3023_s2  ;;  %v908_v11 = vmul.f32 %v4438_v39, %v2665_v45  ;;  %v877_v32 = vadd.f32 %v876_v1, %v874_v22 }
 0x111   : > { %4734 = sst [smem:[#allocation130_spill]] %s3006_s18  ;;  %s3077_s24 = sld [smem:[#allocation10]]  ;;  %v4445_v3 = vstv %s3036_s28  ;;  %v900_v38 = vadd.f32 %v899_v23, %v897_v40  ;;  %v911_v60 = vmul.f32 %v4446_v26, %v2676_v51 }
 0x112   : > { %4735 = sst [smem:[#allocation131_spill]] %s3013_s17  ;;  %s3085_s3 = sld [smem:[#allocation10 + $0x1]]  ;;  %v4444_v57 = vstv %s3038_s11  ;;  %v914_v39 = vmul.f32 %v4445_v3, %v2678_v54  ;;  %v880_v27 = vadd.f32 %v879_v50, %v877_v32 }
 0x113   : > { %4736 = sst [smem:[#allocation132_spill]] %s3021_s1  ;;  %s3087_s0 = sld [smem:[#allocation10 + $0x2]]  ;;  %v3127_v43 = vmul.f32 %v4444_v57, %v2696_v14  ;;  %v4459_v31 = vstv %s3054_s5  ;;  %v903_v22 = vadd.f32 %v902_v10, %v900_v38 }
 0x114   : > { %4737 = sst [smem:[#allocation133_spill]] %s3023_s2  ;;  %s3092_s15 = sld [smem:[#allocation10 + $0x3]]  ;;  %v4464_v23 = vstv %s3056_s26 }
 0x115   : > { %4738 = sst [smem:[#allocation134_spill]] %s3036_s28  ;;  %s3094_s4 = sld [smem:[#allocation10 + $0x4]]  ;;  %v4467_v40 = vstv %s3061_s25 }
 0x116   : > { %4739 = sst [smem:[#allocation135_spill]] %s3038_s11  ;;  %s3102_s7 = sld [smem:[#allocation10 + $0x5]]  ;;  %v4466_v59 = vstv %s3070_s30 }
 0x117   : > { %4740 = sst [smem:[#allocation136_spill]] %s3054_s5  ;;  %s3112_s14 = sld [smem:[#allocation8 + $0x50]]  ;;  %v4461_v1 = vstv %s3077_s24 }
 0x118   : > { %4741 = sst [smem:[#allocation137_spill]] %s3056_s26  ;;  %s3117_s18 = sld [smem:[#allocation8 + $0x51]]  ;;  %v3144_v57 = vadd.f32 %v4461_v1, %v2846_v0  ;;  %v4456_v3 = vstv %s3085_s3  ;;  %v928_v1 = vmul.f32 %v4467_v40, %v2597_v62 }
 0x119   : > { %4742 = sst [smem:[#allocation138_spill]] %s3061_s25  ;;  %s3119_s17 = sld [smem:[#allocation8 + $0x52]]  ;;  %v4455_v26 = vstv %s3087_s0  ;;  %v3156_v50 = vadd.f32 %v4456_v3, %v2900_v18  ;;  %v883_v18 = vadd.f32 %v882_v55, %v880_v27 }
 0x11a   : > { %4743 = sst [smem:[#allocation139_spill]] %s3070_s30  ;;  %s3131_s2 = sld [smem:[#allocation8 + $0x53]]  ;;  %v3161_v38 = vadd.f32 %v4455_v26, %v2960_v44  ;;  %v4460_v10 = vstv %s3092_s15  ;;  %v920_v44 = vmul.f32 %v4459_v31, %v2705_v34  ;;  %v714_v26 = vmax.f32 %v3144_v57, 0.0 }
 0x11b   : > { %4744 = sst [smem:[#allocation140_spill]] %s3077_s24  ;;  %s3133_s1 = sld [smem:[#allocation10 + $0x6]]  ;;  %v4458_v0 = vstv %s3094_s4  ;;  %v3172_v32 = vadd.f32 %v4460_v10, %v3028_v46  ;;  %v906_v46 = vadd.f32 %v905_v24, %v903_v22  ;;  %v749_v55 = vmax.f32 %v3156_v50, 0.0 }
 0x11c   : > { %4745 = sst [smem:[#allocation141_spill]] %s3085_s3  ;;  %s3137_s28 = sld [smem:[#allocation8 + $0x54]]  ;;  %v3176_v41 = vadd.f32 %v4458_v0, %v851_v30  ;;  %v4471_v3 = vstv %s3102_s7  ;;  %v926_v30 = vmul.f32 %v4464_v23, %v2589_v58  ;;  %v784_v27 = vmax.f32 %v3161_v38, 0.0 }
 0x11d   : > { %4746 = sst [smem:[#allocation142_spill]] %s3087_s0  ;;  %s3139_s11 = sld [smem:[#allocation8 + $0x55]]  ;;  %v819_v0 = vmax.f32 %v3172_v32, 0.0  ;;  %v886_v31 = vadd.f32 %v885_v15, %v883_v18  ;;  %v909_v10 = vadd.f32 %v908_v11, %v906_v46  ;;  %v931_v24 = vmul.f32 %v4466_v59, %v2599_v63 }
 0x11e   : > { %4747 = sst [smem:[#allocation143_spill]] %s3092_s15  ;;  %s3149_s13 = sld [smem:[#allocation8 + $0x56]]  ;;  %v4476_v22 = vstv %s3112_s14  ;;  %v854_v23 = vmax.f32 %v3176_v41, 0.0  ;;  %v4475_v11 = vstv %s3117_s18  ;;  %v929_v40 = vadd.f32 %v928_v1, %v926_v30 }
 0x11f   : > { %4748 = sst [smem:[#allocation144_spill]] %s3094_s4  ;;  %s3151_s27 = sld [smem:[#allocation8 + $0x57]]  ;;  %v3209_v15 = vadd.f32 %v4471_v3, %v886_v31  ;;  %v4485_v18 = vstv %s3119_s17  ;;  %v912_v46 = vadd.f32 %v911_v60, %v909_v10  ;;  %v934_v19 = vmul.f32 %v4476_v22, %v2601_v2 }
 0x120   : > { %4749 = sst [smem:[#allocation145_spill]] %s3102_s7  ;;  %s3165_s24 = sld [smem:[#allocation8 + $0x58]]  ;;  %v937_v31 = vmul.f32 %v4475_v11, %v2606_v6  ;;  %v4480_v3 = vstv %s3131_s2  ;;  %v932_v1 = vadd.f32 %v931_v24, %v929_v40  ;;  %v940_v30 = vmul.f32 %v4485_v18, %v2608_v7 }
 0x121   : > { %4750 = sst [smem:[#allocation146_spill]] %s3112_s14  ;;  %s3167_s22 = sld [smem:[#allocation8 + $0x59]]  ;;  %v4503_v59 = vstv %s3133_s1  ;;  %v889_v10 = vmax.f32 %v3209_v15, 0.0  ;;  %v915_v61 = vadd.f32 %v914_v39, %v912_v46  ;;  %v943_v11 = vmul.f32 %v4480_v3, %v2665_v45 }
 0x122   : > { %4751 = sst [smem:[#allocation147_spill]] %s3117_s18  ;;  %s3181_s0 = sld [smem:[#allocation8 + $0x5a]]  ;;  %v4484_v56 = vstv %s3137_s28  ;;  %v935_v24 = vadd.f32 %v934_v19, %v932_v1 }
 0x123   : > { %4752 = sst [smem:[#allocation148_spill]] %s3119_s17  ;;  %s3183_s3 = sld [smem:[#allocation10 + $0x7]]  ;;  %v4483_v60 = vstv %s3139_s11  ;;  %v946_v22 = vmul.f32 %v4484_v56, %v2676_v51  ;;  %v918_v40 = vadd.f32 %v3127_v43, %v915_v61 }
 0x124   : > { %4753 = sst [smem:[#allocation149_spill]] %s3131_s2  ;;  %s3190_s4 = sld [smem:[#allocation8 + $0x5b]]  ;;  %v949_v49 = vmul.f32 %v4483_v60, %v2678_v54  ;;  %v4497_v39 = vstv %s3149_s13  ;;  %v938_v19 = vadd.f32 %v937_v31, %v935_v24 }
 0x125   : > { %4754 = sst [smem:[#allocation150_spill]] %s3133_s1  ;;  %s3202_s5 = sld [smem:[#allocation8 + $0x5c]]  ;;  %v4504_v46 = vstv %s3151_s27  ;;  %v921_v61 = vadd.f32 %v920_v44, %v918_v40  ;;  %v952_v36 = vmul.f32 %v4497_v39, %v2696_v14 }
 0x126   : > { %4755 = sst [smem:[#allocation151_spill]] %s3137_s28  ;;  %s3204_s26 = sld [smem:[#allocation8 + $0x5d]]  ;;  %v4493_v60 = vstv %s3165_s24  ;;  %v955_v39 = vmul.f32 %v4504_v46, %v2705_v34 }
 0x127   : > { %4756 = sst [smem:[#allocation152_spill]] %s3139_s11  ;;  %s3213_s25 = sld [smem:[#allocation8 + $0x5e]]  ;;  %v4492_v56 = vstv %s3167_s22  ;;  %v961_v43 = vmul.f32 %v4493_v60, %v2589_v58  ;;  %v3284_v24 = vadd.f32 %v4503_v59, %v921_v61 }
 0x128   : > { %4757 = sst [smem:[#allocation153_spill]] %s3149_s13  ;;  %s3219_s30 = sld [smem:[#allocation8 + $0x5f]]  ;;  %v4498_v18 = vstv %s3181_s0  ;;  %v963_v1 = vmul.f32 %v4492_v56, %v2597_v62  ;;  %v941_v56 = vadd.f32 %v940_v30, %v938_v19 }
 0x129   : > { %4758 = sst [smem:[#allocation154_spill]] %s3151_s27  ;;  %s3221_s7 = sld [smem:[#allocation8 + $0x60]]  ;;  %v4537_v3 = vstv %s3183_s3  ;;  %v966_v44 = vmul.f32 %v4498_v18, %v2599_v63  ;;  %v924_v59 = vmax.f32 %v3284_v24, 0.0 }
 0x12a   : > { %4759 = sst [smem:[#allocation155_spill]] %s3165_s24  ;;  %s3233_s14 = sld [smem:[#allocation8 + $0x61]]  ;;  %v4509_v37 = vstv %s3190_s4  ;;  %v964_v60 = vadd.f32 %v963_v1, %v961_v43  ;;  %v944_v30 = vadd.f32 %v943_v11, %v941_v56 }
 0x12b   : > { %4760 = sst [smem:[#allocation156_spill]] %s3167_s22  ;;  %s3245_s18 = sld [smem:[#allocation8 + $0x62]]  ;;  %v4506_v31 = vstv %s3202_s5  ;;  %v969_v53 = vmul.f32 %v4509_v37, %v2601_v2 }
 0x12c   : > { %4761 = sst [smem:[#allocation157_spill]] %s3181_s0  ;;  %s3247_s17 = sld [smem:[#allocation8 + $0x63]]  ;;  %v4505_v40 = vstv %s3204_s26  ;;  %v967_v19 = vadd.f32 %v966_v44, %v964_v60  ;;  %v972_v43 = vmul.f32 %v4506_v31, %v2606_v6  ;;  %v947_v60 = vadd.f32 %v946_v22, %v944_v30 }
 0x12d   : > { %4762 = sst [smem:[#allocation158_spill]] %s3183_s3  ;;  %s3252_s28 = sld [smem:[#allocation8 + $0x64]]  ;;  %v4508_v18 = vstv %s3213_s25  ;;  %v975_v1 = vmul.f32 %v4505_v40, %v2608_v7 }
 0x12e   : > { %4763 = sst [smem:[#allocation159_spill]] %s3190_s4  ;;  %s3254_s11 = sld [smem:[#allocation8 + $0x65]]  ;;  %v4511_v35 = vstv %s3219_s30  ;;  %v978_v46 = vmul.f32 %v4508_v18, %v2665_v45  ;;  %v970_v44 = vadd.f32 %v969_v53, %v967_v19  ;;  %v950_v53 = vadd.f32 %v949_v49, %v947_v60 }
 0x12f   : > { %4764 = sst [smem:[#allocation160_spill]] %s3202_s5  ;;  %s3260_s2 = sld [smem:[#allocation8 + $0x66]]  ;;  %v4517_v61 = vstv %s3221_s7  ;;  %v981_v56 = vmul.f32 %v4511_v35, %v2676_v51 }
 0x130   : > { %4765 = sst [smem:[#allocation161_spill]] %s3204_s26  ;;  %s3268_s15 = sld [smem:[#allocation8 + $0x67]]  ;;  %v4516_v11 = vstv %s3233_s14  ;;  %v984_v40 = vmul.f32 %v4517_v61, %v2678_v54  ;;  %v973_v22 = vadd.f32 %v972_v43, %v970_v44  ;;  %v953_v60 = vadd.f32 %v952_v36, %v950_v53 }
 0x131   : > { %4766 = sst [smem:[#allocation162_spill]] %s3213_s25  ;;  %s3270_s29 = sld [smem:[#allocation8 + $0x68]]  ;;  %v4529_v31 = vstv %s3245_s18  ;;  %v987_v18 = vmul.f32 %v4516_v11, %v2696_v14 }
 0x132   : > { %4767 = sst [smem:[#allocation163_spill]] %s3219_s30  ;;  %s3280_s24 = sld [smem:[#allocation8 + $0x69]]  ;;  %v4519_v37 = vstv %s3247_s17  ;;  %v976_v44 = vadd.f32 %v975_v1, %v973_v22  ;;  %v956_v1 = vadd.f32 %v955_v39, %v953_v60 }
 0x133   : > { %4768 = sst [smem:[#allocation164_spill]] %s3221_s7  ;;  %s3289_s13 = sld [smem:[#allocation8 + $0x6a]]  ;;  %v4520_v33 = vstv %s3252_s28  ;;  %v996_v30 = vmul.f32 %v4519_v37, %v2589_v58 }
 0x134   : > { %4769 = sst [smem:[#allocation165_spill]] %s3233_s14  ;;  %s3291_s0 = sld [smem:[#allocation10 + $0x8]]  ;;  %v4523_v35 = vstv %s3254_s11  ;;  %v998_v19 = vmul.f32 %v4520_v33, %v2597_v62  ;;  %v979_v53 = vadd.f32 %v978_v46, %v976_v44  ;;  %v3395_v60 = vadd.f32 %v4537_v3, %v956_v1 }
 0x135   : > { %4770 = sst [smem:[#allocation166_spill]] %s3245_s18  ;;  %s3307_s27 = sld [smem:[#allocation8 + $0x6c]]  ;;  %v1001_v11 = vmul.f32 %v4523_v35, %v2599_v63  ;;  %v4530_v61 = vstv %s3260_s2  ;;  %v990_v35 = vmul.f32 %v4529_v31, %v2705_v34 }
 0x136   : > { %4771 = sst [smem:[#allocation167_spill]] %s3247_s17  ;;  %s3299_s1 = sld [smem:[#allocation8 + $0x6b]]  ;;  %v4544_v49 = vstv %s3268_s15  ;;  %v999_v37 = vadd.f32 %v998_v19, %v996_v30  ;;  %v1004_v33 = vmul.f32 %v4530_v61, %v2601_v2 }
 0x137   : > { %4772 = sst [smem:[#allocation168_spill]] %s3252_s28  ;;  %s3323_s26 = sld [smem:[#allocation8 + $0x6e]]  ;;  %v4543_v43 = vstv %s3270_s29  ;;  %v1007_v30 = vmul.f32 %v4544_v49, %v2606_v6 }
 0x138   : > { %4773 = sst [smem:[#allocation169_spill]] %s3254_s11  ;;  %s3309_s4 = sld [smem:[#allocation8 + $0x6d]]  ;;  %v4542_v28 = vstv %s3280_s24  ;;  %v1002_v22 = vadd.f32 %v1001_v11, %v999_v37  ;;  %v1010_v19 = vmul.f32 %v4543_v43, %v2608_v7  ;;  %v982_v37 = vadd.f32 %v981_v56, %v979_v53 }
 0x139   : > { %4774 = sst [smem:[#allocation170_spill]] %s3260_s2  ;;  %s3333_s25 = sld [smem:[#allocation8 + $0x70]]  ;;  %v4541_v36 = vstv %s3289_s13  ;;  %v1013_v46 = vmul.f32 %v4542_v28, %v2665_v45 }
 0x13a   : > { %4775 = sst [smem:[#allocation171_spill]] %s3268_s15  ;;  %s3331_s30 = sld [smem:[#allocation8 + $0x6f]]  ;;  %v4562_v29 = vstv %s3291_s0  ;;  %v1005_v39 = vadd.f32 %v1004_v33, %v1002_v22  ;;  %v1016_v11 = vmul.f32 %v4541_v36, %v2676_v51  ;;  %v985_v53 = vadd.f32 %v984_v40, %v982_v37 }
 0x13b   : > { %4776 = sst [smem:[#allocation172_spill]] %s3270_s29  ;;  %s3343_s7 = sld [smem:[#allocation8 + $0x72]]  ;;  %v4539_v61 = vstv %s3307_s27 }
 0x13c   : > { %4777 = sst [smem:[#allocation173_spill]] %s3280_s24  ;;  %s3341_s14 = sld [smem:[#allocation8 + $0x71]]  ;;  %v4540_v31 = vstv %s3299_s1  ;;  %v1022_v56 = vmul.f32 %v4539_v61, %v2696_v14  ;;  %v1008_v22 = vadd.f32 %v1007_v30, %v1005_v39  ;;  %v988_v43 = vadd.f32 %v987_v18, %v985_v53 }
 0x13d   : > { %4778 = sst [smem:[#allocation174_spill]] %s3289_s13  ;;  %s3356_s28 = sld [smem:[#allocation8 + $0x74]]  ;;  %v1019_v33 = vmul.f32 %v4540_v31, %v2678_v54  ;;  %v1030_v44 = vstv %s3323_s26 }
 0x13e   : > { %4779 = sst [smem:[#allocation175_spill]] %s3291_s0  ;;  %s3351_s17 = sld [smem:[#allocation8 + $0x73]]  ;;  %v4546_v52 = vstv %s3309_s4  ;;  %v1031_v3 = vmul.f32 %v1030_v44, %v2589_v58  ;;  %v1011_v49 = vadd.f32 %v1010_v19, %v1008_v22  ;;  %v959_v58 = vmax.f32 %v3395_v60, 0.0  ;;  %v2026_v60 = vld [vmem:[%s2415_s16 + $0x8] sm:$0xff] }
 0x13f   : > { %4780 = sst [smem:[#allocation176_spill]] %s3299_s1  ;;  %s3358_s11 = sld [smem:[#allocation10 + $0x9]]  ;;  %v1025_v1 = vmul.f32 %v4546_v52, %v2705_v34  ;;  %v4551_v31 = vstv %s3333_s25 }
 0x140   : > { %4781 = sst [smem:[#allocation177_spill]] %s3307_s27  ;;  %s3366_s5 = sld [smem:[#allocation8 + $0x75]]  ;;  %v1032_v61 = vstv %s3331_s30  ;;  %v1036_v30 = vmul.f32 %v4551_v31, %v2599_v63  ;;  %v1014_v18 = vadd.f32 %v1013_v46, %v1011_v49 }
 0x141   : > { %4782 = sst [smem:[#allocation178_spill]] %s3309_s4  ;;  %s3371_s2 = sld [smem:[#allocation8 + $0x76]]  ;;  %v1041_v28 = vstv %s3343_s7  ;;  %v1033_v40 = vmul.f32 %v1032_v61, %v2597_v62  ;;  %v991_v62 = vadd.f32 %v990_v35, %v988_v43 }
 0x142   : > { %4783 = sst [smem:[#allocation179_spill]] %s3331_s30  ;;  %s3373_s18 = sld [smem:[#allocation8 + $0x77]]  ;;  %v1038_v36 = vstv %s3341_s14  ;;  %v1042_v53 = vmul.f32 %v1041_v28, %v2606_v6  ;;  %v1017_v43 = vadd.f32 %v1016_v11, %v1014_v18 }
 0x143   : > { %4784 = sst [smem:[#allocation180_spill]] %s3333_s25  ;;  %s3381_s22 = sld [smem:[#allocation8 + $0x78]]  ;;  %v4568_v52 = vstv %s3356_s28  ;;  %v1034_v63 = vadd.f32 %v1033_v40, %v1031_v3  ;;  %v1039_v19 = vmul.f32 %v1038_v36, %v2601_v2  ;;  %v3459_v6 = vadd.f32 %v4562_v29, %v991_v62 }
 0x144   : > { %4785 = sst [smem:[#allocation181_spill]] %s3341_s14  ;;  %s3391_s15 = sld [smem:[#allocation11]]  ;;  %v1044_v39 = vstv %s3351_s17  ;;  %v1048_v2 = vmul.f32 %v4568_v52, %v2665_v45  ;;  %v1020_v45 = vadd.f32 %v1019_v33, %v1017_v43 }
 0x145   : > { %4786 = sst [smem:[#allocation182_spill]] %s3343_s7  ;;  %s3389_s29 = sld [smem:[#allocation10 + $0xa]]  ;;  %v4573_v37 = vstv %s3358_s11  ;;  %v1037_v49 = vadd.f32 %v1036_v30, %v1034_v63  ;;  %v1045_v3 = vmul.f32 %v1044_v39, %v2608_v7 }
 0x146   : > { %4787 = sst [smem:[#allocation183_spill]] %s3351_s17  ;;  %s3404_s13 = sld [smem:[#allocation11 + $0x1]]  ;;  %v4566_v22 = vstv %s3366_s5  ;;  %v1023_v63 = vadd.f32 %v1022_v56, %v1020_v45  ;;  %v994_v56 = vmax.f32 %v3459_v6, 0.0 }
 0x147   : > { %4788 = sst [smem:[#allocation184_spill]] %s3356_s28  ;;  %s3406_s24 = sld [smem:[#allocation11 + $0x2]]  ;;  %v4563_v31 = vstv %s3371_s2  ;;  %v1051_v46 = vmul.f32 %v4566_v22, %v2676_v51  ;;  %v1040_v40 = vadd.f32 %v1039_v19, %v1037_v49 }
 0x148   : > { %4789 = sst [smem:[#allocation185_spill]] %s3358_s11  ;;  %s3414_s3 = sld [smem:[#allocation11 + $0x3]]  ;;  %v4558_v35 = vstv %s3373_s18  ;;  %v1054_v11 = vmul.f32 %v4563_v31, %v2678_v54  ;;  %v1026_v45 = vadd.f32 %v1025_v1, %v1023_v63 }
 0x149   : > { %4790 = sst [smem:[#allocation186_spill]] %s3366_s5  ;;  %s3426_s4 = sld [smem:[#allocation11 + $0x4]]  ;;  %v1057_v7 = vmul.f32 %v4558_v35, %v2696_v14  ;;  %v4575_v30 = vstv %s3381_s22  ;;  %v1043_v35 = vadd.f32 %v1042_v53, %v1040_v40 }
 0x14a   : > { %4791 = sst [smem:[#allocation187_spill]] %s3371_s2  ;;  %s3432_s27 = sld [smem:[#allocation11 + $0x5]]  ;;  %v1065_v51 = vstv %s3391_s15  ;;  %v1060_v22 = vmul.f32 %v4575_v30, %v2705_v34  ;;  %v3523_v1 = vadd.f32 %v4573_v37, %v1026_v45 }
 0x14b   : > { %4792 = sst [smem:[#allocation188_spill]] %s3373_s18  ;;  %s3434_s1 = sld [smem:[#allocation11 + $0x6]]  ;;  %v4595_v62 = vstv %s3389_s29  ;;  %v1066_v33 = vmul.f32 %v1065_v51, %v714_v26  ;;  %v1046_v40 = vadd.f32 %v1045_v3, %v1043_v35 }
 0x14c   : > { %4793 = sst [smem:[#allocation189_spill]] %s3381_s22  ;;  %s3439_s25 = sld [smem:[#allocation11 + $0x7]]  ;;  %v1067_v54 = vstv %s3404_s13 }
 0x14d   : > { %4794 = sst [smem:[#allocation190_spill]] %s3389_s29  ;;  %s3441_s30 = sld [smem:[#allocation11 + $0x8]]  ;;  %v4569_v14 = vstv %s3406_s24  ;;  %v1068_v19 = vmul.f32 %v1067_v54, %v749_v55  ;;  %v1049_v35 = vadd.f32 %v1048_v2, %v1046_v40 }
 0x14e   : > { %4795 = sst [smem:[#allocation191_spill]] %s3391_s15  ;;  %s3455_s14 = sld [smem:[#allocation11 + $0x9]]  ;;  %v4567_v18 = vstv %s3414_s3  ;;  %v1071_v53 = vmul.f32 %v4569_v14, %v784_v27 }
 0x14f   : > { %4796 = sst [smem:[#allocation192_spill]] %s3404_s13  ;;  %s3470_s28 = sld [smem:[#allocation11 + $0xa]]  ;;  %v1074_v43 = vmul.f32 %v4567_v18, %v819_v0  ;;  %v4579_v49 = vstv %s3426_s4  ;;  %v1069_v29 = vadd.f32 %v1068_v19, %v1066_v33  ;;  %v1029_v19 = vmax.f32 %v3523_v1, 0.0 }
 0x150   : > { %4797 = sst [smem:[#allocation193_spill]] %s3406_s24  ;;  %s3472_s17 = sld [smem:[#allocation11 + $0xb]]  ;;  %v4578_v31 = vstv %s3432_s27  ;;  %v1077_v63 = vmul.f32 %v4579_v49, %v854_v23 }
 0x151   : > { %4798 = sst [smem:[#allocation194_spill]] %s3414_s3  ;;  %s3476_s0 = sld [smem:[#allocation11 + $0xc]]  ;;  %v4577_v18 = vstv %s3434_s1  ;;  %v1072_v3 = vadd.f32 %v1071_v53, %v1069_v29  ;;  %v1080_v34 = vmul.f32 %v4578_v31, %v889_v10  ;;  %v1052_v53 = vadd.f32 %v1051_v46, %v1049_v35 }
 0x152   : > { %s3478_s2 = sld [smem:[#allocation11 + $0xd]]  ;;  %s3484_s18 = sld [smem:[#allocation11 + $0xe]]  ;;  %v4574_v52 = vstv %s3439_s25  ;;  %v1083_v33 = vmul.f32 %v4577_v18, %v924_v59 }
 0x153   : > { %s3494_s5 = sld [smem:[#allocation11 + $0xf]]  ;;  %s3496_s7 = sld [smem:[#allocation13]]  ;;  %v4576_v14 = vstv %s3441_s30  ;;  %v1086_v29 = vmul.f32 %v4574_v52, %v959_v58  ;;  %v1075_v45 = vadd.f32 %v1074_v43, %v1072_v3  ;;  %v1055_v18 = vadd.f32 %v1054_v11, %v1052_v53 }
 0x154   : > { %4799 = sst [smem:[#allocation195_spill]] %s3455_s14  ;;  %s3511_s15 = sld [smem:[#allocation11 + $0x11]]  ;;  %v1089_v2 = vmul.f32 %v4576_v14, %v994_v56  ;;  %v4597_v40 = vstv %s3455_s14 }
 0x155   : > { %4800 = sst [smem:[#allocation196_spill]] %s3470_s28  ;;  %s3508_s13 = sld [smem:[#allocation11 + $0x10]]  ;;  %v4592_v37 = vstv %s3470_s28  ;;  %v1078_v31 = vadd.f32 %v1077_v63, %v1075_v45  ;;  %v1058_v11 = vadd.f32 %v1057_v7, %v1055_v18  ;;  %v3590_v18 = vld [vmem:[%s2415_s16 + $0x18] sm:$0xff] }
 0x156   : > { %s3513_s24 = sld [smem:[#allocation11 + $0x12]]  ;;  %s3529_s3 = sld [smem:[#allocation11 + $0x13]]  ;;  %v1100_v52 = vstv %s3472_s17 }
 0x157   : > { %s3547_s11 = sld [smem:[#allocation11 + $0x14]]  ;;  %s3549_s22 = sld [smem:[#allocation11 + $0x15]]  ;;  %v1102_v30 = vstv %s3476_s0  ;;  %v1101_v49 = vmul.f32 %v1100_v52, %v714_v26  ;;  %v1081_v57 = vadd.f32 %v1080_v34, %v1078_v31  ;;  %v1092_v26 = vmul.f32 %v4597_v40, %v1029_v19 }
 0x158   : > { %v1105_v14 = vstv %s3478_s2  ;;  %v1108_v1 = vstv %s3484_s18  ;;  %v1103_v43 = vmul.f32 %v1102_v30, %v749_v55  ;;  %s3592_s14 = sld [smem:[#allocation13 + $0x1]]  ;;  %s4809_s19 = sld [smem:[#allocation49_spill]] }
 0x159   : > { %4801 = sst [smem:[#allocation197_spill]] %s3496_s7  ;;  %v4590_v46 = vstv %s3496_s7  ;;  %v1106_v35 = vmul.f32 %v1105_v14, %v784_v27  ;;  %v1111_v3 = vstv %s3494_s5  ;;  %v1109_v50 = vmul.f32 %v1108_v1, %v819_v0  ;;  %s4810_s21 = sld [smem:[#allocation40_spill]] }
 0x15a   : > { %v1104_v53 = vadd.f32 %v1103_v43, %v1101_v49  ;;  %v1117_v38 = vstv %s3511_s15  ;;  %v1061_v27 = vadd.f32 %v1060_v22, %v1058_v11  ;;  %v1084_v7 = vadd.f32 %v1083_v33, %v1081_v57  ;;  %s4811_s8 = sld [smem:[#allocation36_spill]]  ;;  %s4812_s20 = sld [smem:[#allocation41_spill]] }
 0x15b   : > { %v1114_v63 = vstv %s3508_s13  ;;  %v1112_v31 = vmul.f32 %v1111_v3, %v854_v23  ;;  %v1118_v22 = vmul.f32 %v1117_v38, %v924_v59  ;;  %v1142_v59 = vmul.f32 %v3590_v18, %v594_v4  ;;  %s4813_s6 = sld [smem:[#allocation42_spill]]  ;;  %s4814_s12 = sld [smem:[#allocation43_spill]] }
 0x15c   : > { %4802 = sst [smem:[#allocation198_spill]] %s3513_s24  ;;  %v4596_v55 = vstv %s3513_s24  ;;  %v1115_v32 = vmul.f32 %v1114_v63, %v889_v10  ;;  %v1107_v0 = vadd.f32 %v1106_v35, %v1104_v53  ;;  %v4594_v23 = vstv %s3529_s3  ;;  %s4815_s23 = sld [smem:[#allocation50_spill]] }
 0x15d   : > { %4803 = sst [smem:[#allocation199_spill]] %s3549_s22  ;;  %v1121_v41 = vmul.f32 %v4596_v55, %v959_v58  ;;  %v1063_v15 = vadd.f32 %v4595_v62, %v1061_v27  ;;  %v1087_v10 = vadd.f32 %v1086_v29, %v1084_v7  ;;  %v4593_v49 = vstv %s3547_s11  ;;  %s4816_s10 = sld [smem:[#allocation44_spill]] }
 0x15e   : > { %4804 = sst [smem:[#allocation200_spill]] %s3592_s14  ;;  %v4591_v34 = vstv %s3549_s22  ;;  %v1110_v33 = vadd.f32 %v1109_v50, %v1107_v0  ;;  %v1124_v24 = vmul.f32 %v4594_v23, %v994_v56  ;;  %v1146_v58 = vmul.f32 %v2026_v60, %v600_v5  ;;  %s4817_s24 = sld [smem:[#allocation45_spill]] }
 0x15f   : > { %v1064_v45 = vmax.f32 %v1063_v15, 0.0  ;;  %v1090_v43 = vadd.f32 %v1089_v2, %v1087_v10  ;;  %v1147_v29 = vmul.f32 %v3590_v18, %v602_v8  ;;  %v1151_v35 = vmul.f32 %v2026_v60, %v608_v9  ;;  %s4819_s29 = sld [smem:[#allocation46_spill]]  ;;  %s4823_s16 = sld [smem:[#allocation47_spill]] }
 0x160   : > { %v1113_v6 = vadd.f32 %v1112_v31, %v1110_v33  ;;  %v1143_v56 = vadd.f32 %v1142_v59, %v2488_v17  ;;  %v1152_v4 = vmul.f32 %v3590_v18, %v610_v12  ;;  %v1156_v5 = vmul.f32 %v2026_v60, %v616_v13  ;;  %s4821_s22 = sshll.u32 %s4811_s8, 5  ;;  %s4825_s9 = sld [smem:[#allocation51_spill]] }
 0x161   : > { %v1093_v11 = vadd.f32 %v1092_v26, %v1090_v43  ;;  %v1095_v2 = vmul.f32 %v4592_v37, %v1064_v45  ;;  %v1127_v8 = vmul.f32 %v4593_v49, %v1029_v19  ;;  %v1148_v57 = vadd.f32 %v1147_v29, %v1146_v58  ;;  %s3662_s7 = scalar_lea.vmem [#allocation15], %s4821_s22  ;;  %s4832_s22 = sld [smem:[#allocation52_spill]] }
 0x162   : > { %v1116_v9 = vadd.f32 %v1115_v32, %v1113_v6  ;;  %v1144_v53 = vadd.f32 %v1143_v56, %v597_v42  ;;  %v1153_v17 = vadd.f32 %v1152_v4, %v1151_v35  ;;  %v1157_v12 = vmul.f32 %v3590_v18, %v618_v16  ;;  %4822 = sst [smem:[#allocation37_spill]] %s3662_s7  ;;  %s4833_s8 = sld [smem:[#allocation57_spill]] }
 0x163   : > { %v1096_v50 = vadd.f32 %v1095_v2, %v1093_v11  ;;  %v1149_v13 = vadd.f32 %v1148_v57, %v605_v47  ;;  %v1161_v26 = vmul.f32 %v2026_v60, %v624_v20  ;;  %v1162_v19 = vmul.f32 %v3590_v18, %v626_v21  ;;  %s4879_s28 = sld [smem:[#allocation84_spill]]  ;;  %s5110_s17 = sld [smem:[#allocation185_spill]] }
 0x164   : > { %v1119_v27 = vadd.f32 %v1118_v22, %v1116_v9  ;;  %v1130_v42 = vmul.f32 %v4591_v34, %v1064_v45  ;;  %v4589_v7 = vstv %s3592_s14  ;;  %v1158_v31 = vadd.f32 %v1157_v12, %v1156_v5  ;;  %s4874_s14 = sld [smem:[#allocation76_spill]]  ;;  %s5116_s0 = sld [smem:[#allocation198_spill]] }
 0x165   : > { %v1098_v16 = vadd.f32 %v4590_v46, %v1096_v50  ;;  %v1154_v32 = vadd.f32 %v1153_v17, %v613_v48  ;;  %v1163_v47 = vadd.f32 %v1162_v19, %v1161_v26  ;;  %v1166_v20 = vmul.f32 %v2026_v60, %v632_v25  ;;  %s5118_s18 = sld [smem:[#allocation190_spill]]  ;;  %s5120_s5 = sld [smem:[#allocation196_spill]] }
 0x166   : > { %v1122_v0 = vadd.f32 %v1121_v41, %v1119_v27  ;;  %v3653_v21 = vmax.f32 %v1144_v53, 0.0  ;;  %v4818_v22 = vstv %s4809_s19  ;;  %v4820_v10 = vstv %s4810_s21  ;;  %s4828_s19 = sld [smem:[#allocation53_spill]]  ;;  %s4829_s21 = sld [smem:[#allocation55_spill]] }
 0x167   : > { %v1159_v15 = vadd.f32 %v1158_v31, %v4818_v22  ;;  %v1167_v33 = vmul.f32 %v3590_v18, %v4820_v10  ;;  %1099 = vst [vmem:[%s3662_s7] sm:$0xff] %v1098_v16  ;;  %v3665_v48 = vmax.f32 %v1149_v13, 0.0  ;;  %v4824_v59 = vstv %s4812_s20  ;;  %s4834_s20 = sld [smem:[#allocation54_spill]]  ;;  %s5123_s13 = sld [smem:[#allocation197_spill]] }
 0x168   : > { %v1171_v25 = vmul.f32 %v2026_v60, %v4824_v59  ;;  %v4826_v41 = vstv %s4813_s6  ;;  %v4827_v45 = vstv %s4814_s12  ;;  %v1125_v29 = vadd.f32 %v1124_v24, %v1122_v0  ;;  %s4836_s6 = sld [smem:[#allocation56_spill]]  ;;  %s4838_s12 = sld [smem:[#allocation60_spill]] }
 0x169   : > { %v1172_v58 = vmul.f32 %v3590_v18, %v4826_v41  ;;  %v1176_v43 = vmul.f32 %v2026_v60, %v4827_v45  ;;  %v4830_v35 = vstv %s4815_s23  ;;  %v1168_v56 = vadd.f32 %v1167_v33, %v1166_v20  ;;  %s4840_s23 = sld [smem:[#allocation61_spill]]  ;;  %s5129_s2 = sld [smem:[#allocation36_spill]] }
 0x16a   : > { %v1164_v6 = vadd.f32 %v1163_v47, %v4830_v35  ;;  %v4831_v4 = vstv %s4816_s10  ;;  %v3679_v11 = vmax.f32 %v1154_v32, 0.0  ;;  %v4835_v57 = vstv %s4817_s24  ;;  %s4842_s10 = sld [smem:[#allocation58_spill]]  ;;  %s4844_s24 = sld [smem:[#allocation62_spill]] }
 0x16b   : > { %v1177_v5 = vmul.f32 %v3590_v18, %v4831_v4  ;;  %v1173_v2 = vadd.f32 %v1172_v58, %v1171_v25  ;;  %v1181_v9 = vmul.f32 %v2026_v60, %v4835_v57  ;;  %v4837_v53 = vstv %s4819_s29  ;;  %s4846_s29 = sld [smem:[#allocation59_spill]] }
 0x16c   : > { %v1182_v17 = vmul.f32 %v3590_v18, %v4837_v53  ;;  %v1128_v24 = vadd.f32 %v1127_v8, %v1125_v29  ;;  %v3686_v12 = vmax.f32 %v1159_v15, 0.0  ;;  %v4839_v13 = vstv %s4823_s16  ;;  %s4849_s16 = sld [smem:[#allocation63_spill]] }
 0x16d   : > { %v1178_v50 = vadd.f32 %v1177_v5, %v1176_v43  ;;  %v1186_v26 = vmul.f32 %v2026_v60, %v4839_v13  ;;  %v4841_v19 = vstv %s4825_s9  ;;  %v4843_v16 = vstv %s4828_s19  ;;  %s4853_s9 = sld [smem:[#allocation64_spill]]  ;;  %s4855_s19 = sld [smem:[#allocation71_spill]] }
 0x16e   : > { %v1169_v27 = vadd.f32 %v1168_v56, %v4841_v19  ;;  %v1183_v31 = vadd.f32 %v1182_v17, %v1181_v9  ;;  %v1187_v32 = vmul.f32 %v3590_v18, %v4843_v16  ;;  %v4845_v47 = vstv %s4829_s21  ;;  %s4858_s21 = sld [smem:[#allocation65_spill]] }
 0x16f   : > { %v1191_v20 = vmul.f32 %v2026_v60, %v4845_v47  ;;  %v1131_v0 = vadd.f32 %v1130_v42, %v1128_v24  ;;  %v3697_v8 = vmax.f32 %v1164_v6, 0.0  ;;  %v4847_v22 = vstv %s4832_s22  ;;  %s4860_s22 = sld [smem:[#allocation73_spill]] }
 0x170   : > { %v1174_v15 = vadd.f32 %v1173_v2, %v4847_v22  ;;  %v4848_v10 = vstv %s4833_s8  ;;  %v4850_v59 = vstv %s4834_s20  ;;  %v4851_v41 = vstv %s4836_s6  ;;  %s4856_s8 = sld [smem:[#allocation72_spill]]  ;;  %s4861_s20 = sld [smem:[#allocation66_spill]] }
 0x171   : > { %v1192_v33 = vmul.f32 %v3590_v18, %v4848_v10  ;;  %v1179_v25 = vadd.f32 %v1178_v50, %v4850_v59  ;;  %v1184_v58 = vadd.f32 %v1183_v31, %v4851_v41  ;;  %v1188_v45 = vadd.f32 %v1187_v32, %v1186_v26  ;;  %s4863_s6 = sld [smem:[#allocation74_spill]] }
 0x172   : > { %v4852_v43 = vstv %s4838_s12  ;;  %v1133_v60 = vadd.f32 %v4589_v7, %v1131_v0  ;;  %v4854_v35 = vstv %s4840_s23  ;;  %v3716_v56 = vmax.f32 %v1169_v27, 0.0  ;;  %s4865_s12 = sld [smem:[#allocation67_spill]]  ;;  %s4866_s23 = sld [smem:[#allocation68_spill]] }
 0x173   : > { %v1196_v29 = vmul.f32 %v3653_v21, %v4852_v43  ;;  %v1193_v42 = vadd.f32 %v1192_v33, %v1191_v20  ;;  %v1197_v6 = vmul.f32 %v3665_v48, %v4854_v35  ;;  %v4857_v18 = vstv %s4842_s10  ;;  %s4867_s10 = sld [smem:[#allocation69_spill]] }
 0x174   : > { %v1189_v4 = vadd.f32 %v1188_v45, %v4857_v18  ;;  %v4859_v5 = vstv %s4844_s24  ;;  %1886 = vst [vmem:[%s3662_s7 + $0x10] sm:$0xff] %v1133_v60  ;;  %v3724_v57 = vmax.f32 %v1174_v15, 0.0  ;;  %v4862_v9 = vstv %s4846_s29  ;;  %s4868_s24 = sld [smem:[#allocation75_spill]]  ;;  %s4870_s29 = sld [smem:[#allocation70_spill]] }
 0x175   : > { %v1199_v2 = vmul.f32 %v3679_v11, %v4859_v5  ;;  %v1194_v53 = vadd.f32 %v1193_v42, %v4862_v9  ;;  %v1198_v17 = vadd.f32 %v1197_v6, %v1196_v29  ;;  %v4864_v24 = vstv %s4849_s16  ;;  %s4872_s16 = sld [smem:[#allocation82_spill]]  ;;  %s4876_s7 = sld [smem:[#allocation77_spill]] }
 0x176   : > { %v1201_v50 = vmul.f32 %v3686_v12, %v4864_v24  ;;  %v3731_v13 = vmax.f32 %v1179_v25, 0.0  ;;  %v3733_v26 = vmax.f32 %v1184_v58, 0.0  ;;  %v3735_v19 = vmax.f32 %v1189_v4, 0.0 }
 0x177   : > { %v4869_v27 = vstv %s4853_s9  ;;  %v3740_v16 = vmax.f32 %v1194_v53, 0.0  ;;  %v1200_v32 = vadd.f32 %v1199_v2, %v1198_v17  ;;  %v4871_v47 = vstv %s4855_s19  ;;  %s4878_s9 = sld [smem:[#allocation83_spill]]  ;;  %s4882_s19 = sld [smem:[#allocation78_spill]] }
 0x178   : > { %v1203_v31 = vmul.f32 %v3697_v8, %v4869_v27  ;;  %v1219_v20 = vmul.f32 %v3653_v21, %v4871_v47  ;;  %v4873_v0 = vstv %s4856_s8  ;;  %v4875_v15 = vstv %s4858_s21  ;;  %s4884_s8 = sld [smem:[#allocation79_spill]]  ;;  %s4886_s21 = sld [smem:[#allocation80_spill]] }
 0x179   : > { %v1220_v22 = vmul.f32 %v3665_v48, %v4873_v0  ;;  %v1205_v10 = vmul.f32 %v3716_v56, %v4875_v15  ;;  %v4877_v33 = vstv %s4860_s22  ;;  %v1202_v25 = vadd.f32 %v1201_v50, %v1200_v32  ;;  %s4888_s22 = sld [smem:[#allocation81_spill]] }
 0x17a   : > { %v1222_v59 = vmul.f32 %v3679_v11, %v4877_v33  ;;  %v4880_v41 = vstv %s4861_s20  ;;  %v4881_v43 = vstv %s4863_s6  ;;  %v4883_v60 = vstv %s4865_s12  ;;  %s4890_s20 = sld [smem:[#allocation85_spill]]  ;;  %s4893_s6 = sld [smem:[#allocation86_spill]] }
 0x17b   : > { %v1207_v58 = vmul.f32 %v3724_v57, %v4880_v41  ;;  %v1221_v45 = vadd.f32 %v1220_v22, %v1219_v20  ;;  %v1224_v29 = vmul.f32 %v3686_v12, %v4881_v43  ;;  %v1209_v42 = vmul.f32 %v3731_v13, %v4883_v60  ;;  %s4895_s12 = sld [smem:[#allocation93_spill]] }
 0x17c   : > { %v4885_v35 = vstv %s4866_s23  ;;  %v4887_v18 = vstv %s4867_s10  ;;  %v4889_v5 = vstv %s4868_s24  ;;  %v1204_v9 = vadd.f32 %v1203_v31, %v1202_v25  ;;  %s4898_s23 = sld [smem:[#allocation87_spill]]  ;;  %s4900_s10 = sld [smem:[#allocation94_spill]] }
 0x17d   : > { %v1211_v6 = vmul.f32 %v3733_v26, %v4885_v35  ;;  %v1213_v4 = vmul.f32 %v3735_v19, %v4887_v18  ;;  %v1226_v2 = vmul.f32 %v3697_v8, %v4889_v5  ;;  %v4891_v53 = vstv %s4870_s29  ;;  %s4901_s24 = sld [smem:[#allocation95_spill]]  ;;  %s4910_s29 = sld [smem:[#allocation96_spill]] }
 0x17e   : > { %v1215_v17 = vmul.f32 %v3740_v16, %v4891_v53  ;;  %v1223_v24 = vadd.f32 %v1222_v59, %v1221_v45  ;;  %v4892_v50 = vstv %s4872_s16  ;;  %v4894_v32 = vstv %s4874_s14  ;;  %s4904_s14 = sld [smem:[#allocation88_spill]]  ;;  %s4913_s16 = sld [smem:[#allocation91_spill]] }
 0x17f   : > { %v1242_v27 = vmul.f32 %v3653_v21, %v4892_v50  ;;  %v1228_v47 = vmul.f32 %v3716_v56, %v4894_v32  ;;  %v4896_v20 = vstv %s4876_s7  ;;  %v4897_v22 = vstv %s4878_s9  ;;  %s4906_s7 = sld [smem:[#allocation89_spill]]  ;;  %s4914_s9 = sld [smem:[#allocation92_spill]] }
 0x180   : > { %v1230_v0 = vmul.f32 %v3724_v57, %v4896_v20  ;;  %v1243_v15 = vmul.f32 %v3665_v48, %v4897_v22  ;;  %v4899_v31 = vstv %s4879_s28  ;;  %v1206_v59 = vadd.f32 %v1205_v10, %v1204_v9  ;;  %s4908_s28 = sld [smem:[#allocation90_spill]] }
 0x181   : > { %v1245_v33 = vmul.f32 %v3679_v11, %v4899_v31  ;;  %v1225_v25 = vadd.f32 %v1224_v29, %v1223_v24  ;;  %v4902_v41 = vstv %s4882_s19  ;;  %v4903_v43 = vstv %s4884_s8  ;;  %s4918_s19 = sld [smem:[#allocation97_spill]]  ;;  %s4919_s8 = sld [smem:[#allocation103_spill]] }
 0x182   : > { %v1232_v45 = vmul.f32 %v3731_v13, %v4902_v41  ;;  %v1234_v60 = vmul.f32 %v3733_v26, %v4903_v43  ;;  %v4905_v35 = vstv %s4886_s21  ;;  %v4907_v5 = vstv %s4888_s22  ;;  %s4922_s21 = sld [smem:[#allocation104_spill]]  ;;  %s4923_s22 = sld [smem:[#allocation105_spill]] }
 0x183   : > { %v1236_v18 = vmul.f32 %v3735_v19, %v4905_v35  ;;  %v1238_v53 = vmul.f32 %v3740_v16, %v4907_v5  ;;  %v1244_v50 = vadd.f32 %v1243_v15, %v1242_v27  ;;  %v4909_v32 = vstv %s4890_s20  ;;  %s4926_s20 = sld [smem:[#allocation98_spill]] }
 0x184   : > { %v1247_v10 = vmul.f32 %v3686_v12, %v4909_v32  ;;  %v1208_v29 = vadd.f32 %v1207_v58, %v1206_v59  ;;  %v1227_v9 = vadd.f32 %v1226_v2, %v1225_v25  ;;  %v4911_v24 = vstv %s4893_s6  ;;  %s4927_s6 = sld [smem:[#allocation99_spill]] }
 0x185   : > { %v1249_v20 = vmul.f32 %v3697_v8, %v4911_v24  ;;  %v4912_v22 = vstv %s4895_s12  ;;  %v1246_v41 = vadd.f32 %v1245_v33, %v1244_v50  ;;  %v4915_v43 = vstv %s4898_s23  ;;  %s4929_s12 = sld [smem:[#allocation100_spill]]  ;;  %s4931_s23 = sld [smem:[#allocation107_spill]] }
 0x186   : > { %v1265_v31 = vmul.f32 %v3653_v21, %v4912_v22  ;;  %v1251_v35 = vmul.f32 %v3716_v56, %v4915_v43  ;;  %v4916_v5 = vstv %s4900_s10  ;;  %v4917_v15 = vstv %s4901_s24  ;;  %s4934_s10 = sld [smem:[#allocation101_spill]]  ;;  %s4935_s24 = sld [smem:[#allocation102_spill]] }
 0x187   : > { %v1266_v27 = vmul.f32 %v3665_v48, %v4916_v5  ;;  %v1268_v58 = vmul.f32 %v3679_v11, %v4917_v15  ;;  %v1210_v2 = vadd.f32 %v1209_v42, %v1208_v29  ;;  %v1229_v59 = vadd.f32 %v1228_v47, %v1227_v9 }
 0x188   : > { %v4920_v25 = vstv %s4904_s14  ;;  %v4921_v24 = vstv %s4906_s7  ;;  %v1248_v50 = vadd.f32 %v1247_v10, %v1246_v41  ;;  %v4924_v22 = vstv %s4908_s28  ;;  %s4938_s14 = sld [smem:[#allocation108_spill]]  ;;  %s4941_s7 = sld [smem:[#allocation106_spill]] }
 0x189   : > { %v1253_v32 = vmul.f32 %v3724_v57, %v4920_v25  ;;  %v1255_v33 = vmul.f32 %v3731_v13, %v4921_v24  ;;  %v1257_v43 = vmul.f32 %v3733_v26, %v4924_v22  ;;  %v1267_v5 = vadd.f32 %v1266_v27, %v1265_v31  ;;  %s4942_s28 = sld [smem:[#allocation109_spill]] }
 0x18a   : > { %v4925_v7 = vstv %s4910_s29  ;;  %v1212_v42 = vadd.f32 %v1211_v6, %v1210_v2  ;;  %v1231_v47 = vadd.f32 %v1230_v0, %v1229_v59  ;;  %v4928_v29 = vstv %s4913_s16  ;;  %s4945_s29 = sld [smem:[#allocation110_spill]]  ;;  %s4946_s16 = sld [smem:[#allocation115_spill]] }
 0x18b   : > { %v1270_v15 = vmul.f32 %v3686_v12, %v4925_v7  ;;  %v1259_v9 = vmul.f32 %v3735_v19, %v4928_v29  ;;  %v4930_v25 = vstv %s4914_s9  ;;  %v1250_v10 = vadd.f32 %v1249_v20, %v1248_v50  ;;  %s4949_s9 = sld [smem:[#allocation116_spill]] }
 0x18c   : > { %v1261_v24 = vmul.f32 %v3740_v16, %v4930_v25  ;;  %v1269_v41 = vadd.f32 %v1268_v58, %v1267_v5  ;;  %v4932_v46 = vstv %s4918_s19  ;;  %v4933_v27 = vstv %s4919_s8  ;;  %s4950_s19 = sld [smem:[#allocation117_spill]]  ;;  %s4951_s8 = sld [smem:[#allocation140_spill]] }
 0x18d   : > { %v1272_v31 = vmul.f32 %v3697_v8, %v4932_v46  ;;  %v1288_v7 = vmul.f32 %v3653_v21, %v4933_v27  ;;  %v1214_v6 = vadd.f32 %v1213_v4, %v1212_v42  ;;  %v1233_v0 = vadd.f32 %v1232_v45, %v1231_v47 }
 0x18e   : > { %v4936_v2 = vstv %s4922_s21  ;;  %v4937_v22 = vstv %s4923_s22  ;;  %v1252_v25 = vadd.f32 %v1251_v35, %v1250_v10  ;;  %v1271_v20 = vadd.f32 %v1270_v15, %v1269_v41  ;;  %s4952_s21 = sld [smem:[#allocation141_spill]]  ;;  %s4954_s22 = sld [smem:[#allocation111_spill]] }
 0x18f   : > { %v1289_v59 = vmul.f32 %v3665_v48, %v4936_v2  ;;  %v1291_v29 = vmul.f32 %v3679_v11, %v4937_v22  ;;  %v4939_v58 = vstv %s4926_s20  ;;  %v4940_v46 = vstv %s4927_s6  ;;  %s4957_s20 = sld [smem:[#allocation118_spill]]  ;;  %s4959_s6 = sld [smem:[#allocation112_spill]] }
 0x190   : > { %v1274_v50 = vmul.f32 %v3716_v56, %v4939_v58  ;;  %v1276_v5 = vmul.f32 %v3724_v57, %v4940_v46  ;;  %v1235_v27 = vadd.f32 %v1234_v60, %v1233_v0  ;;  %v4943_v4 = vstv %s4929_s12  ;;  %s4961_s12 = sld [smem:[#allocation113_spill]] }
 0x191   : > { %v1278_v45 = vmul.f32 %v3731_v13, %v4943_v4  ;;  %v1290_v42 = vadd.f32 %v1289_v59, %v1288_v7  ;;  %v4944_v47 = vstv %s4931_s23  ;;  %v1254_v35 = vadd.f32 %v1253_v32, %v1252_v25  ;;  %s4962_s23 = sld [smem:[#allocation114_spill]] }
 0x192   : > { %v1293_v2 = vmul.f32 %v3686_v12, %v4944_v47  ;;  %v1273_v15 = vadd.f32 %v1272_v31, %v1271_v20  ;;  %v4947_v10 = vstv %s4934_s10  ;;  %v4948_v22 = vstv %s4935_s24  ;;  %s4966_s10 = sld [smem:[#allocation119_spill]]  ;;  %s4969_s24 = sld [smem:[#allocation120_spill]] }
 0x193   : > { %v1280_v41 = vmul.f32 %v3733_v26, %v4947_v10  ;;  %v1282_v58 = vmul.f32 %v3735_v19, %v4948_v22  ;;  %v1216_v60 = vadd.f32 %v1215_v17, %v1214_v6  ;;  %v1237_v0 = vadd.f32 %v1236_v18, %v1235_v27 }
 0x194   : > { %v1292_v7 = vadd.f32 %v1291_v29, %v1290_v42  ;;  %v4953_v59 = vstv %s4938_s14  ;;  %v1256_v4 = vadd.f32 %v1255_v33, %v1254_v35  ;;  %v1275_v32 = vadd.f32 %v1274_v50, %v1273_v15  ;;  %s4970_s14 = sld [smem:[#allocation126_spill]] }
 0x195   : > { %v1295_v46 = vmul.f32 %v3697_v8, %v4953_v59  ;;  %v4955_v31 = vstv %s4941_s7  ;;  %v4956_v20 = vstv %s4942_s28  ;;  %v1239_v10 = vadd.f32 %v1238_v53, %v1237_v0  ;;  %s4972_s7 = sld [smem:[#allocation127_spill]]  ;;  %s4974_s28 = sld [smem:[#allocation142_spill]] }
 0x196   : > { %v1284_v25 = vmul.f32 %v3740_v16, %v4955_v31  ;;  %v1297_v47 = vmul.f32 %v3716_v56, %v4956_v20  ;;  %v1294_v22 = vadd.f32 %v1293_v2, %v1292_v7  ;;  %v4958_v17 = vstv %s4945_s29  ;;  %s4977_s29 = sld [smem:[#allocation121_spill]] }
 0x197   : > { %v1299_v18 = vmul.f32 %v3724_v57, %v4958_v17  ;;  %v4960_v6 = vstv %s4946_s16  ;;  %v1258_v33 = vadd.f32 %v1257_v43, %v1256_v4  ;;  %v1277_v50 = vadd.f32 %v1276_v5, %v1275_v32  ;;  %s4978_s16 = sld [smem:[#allocation128_spill]] }
 0x198   : > { %v1311_v29 = vmul.f32 %v3653_v21, %v4960_v6  ;;  %v4963_v27 = vstv %s4949_s9  ;;  %v4964_v35 = vstv %s4950_s19  ;;  %v4965_v59 = vstv %s4951_s8  ;;  %s4980_s9 = sld [smem:[#allocation129_spill]]  ;;  %s4982_s19 = sld [smem:[#allocation122_spill]] }
 0x199   : > { %v1312_v42 = vmul.f32 %v3665_v48, %v4963_v27  ;;  %v1314_v15 = vmul.f32 %v3679_v11, %v4964_v35  ;;  %v3891_v53 = vadd.f32 %v1216_v60, %v4965_v59  ;;  %v4967_v2 = vstv %s4952_s21  ;;  %s4984_s8 = sld [smem:[#allocation123_spill]]  ;;  %s4985_s21 = sld [smem:[#allocation124_spill]] }
 0x19a   : > { %v3895_v0 = vadd.f32 %v1239_v10, %v4967_v2  ;;  %v1296_v7 = vadd.f32 %v1295_v46, %v1294_v22  ;;  %v4968_v31 = vstv %s4954_s22  ;;  %v1260_v43 = vadd.f32 %v1259_v9, %v1258_v33  ;;  %s4986_s22 = sld [smem:[#allocation125_spill]] }
 0x19b   : > { %v1301_v20 = vmul.f32 %v3731_v13, %v4968_v31  ;;  %v1279_v5 = vadd.f32 %v1278_v45, %v1277_v50  ;;  %v1313_v4 = vadd.f32 %v1312_v42, %v1311_v29  ;;  %v4971_v32 = vstv %s4957_s20  ;;  %s4989_s20 = sld [smem:[#allocation130_spill]] }
 0x19c   : > { %v1316_v17 = vmul.f32 %v3686_v12, %v4971_v32  ;;  %v1298_v6 = vadd.f32 %v1297_v47, %v1296_v7  ;;  %v4973_v27 = vstv %s4959_s6  ;;  %v4975_v10 = vstv %s4961_s12  ;;  %s4991_s6 = sld [smem:[#allocation143_spill]]  ;;  %s4993_s12 = sld [smem:[#allocation137_spill]] }
 0x19d   : > { %v1303_v60 = vmul.f32 %v3733_v26, %v4973_v27  ;;  %v1305_v46 = vmul.f32 %v3735_v19, %v4975_v10  ;;  %v4976_v22 = vstv %s4962_s23  ;;  %v1262_v9 = vadd.f32 %v1261_v24, %v1260_v43  ;;  %s4995_s23 = sld [smem:[#allocation131_spill]] }
 0x19e   : > { %v1307_v35 = vmul.f32 %v3740_v16, %v4976_v22  ;;  %v1281_v45 = vadd.f32 %v1280_v41, %v1279_v5  ;;  %v1315_v29 = vadd.f32 %v1314_v15, %v1313_v4  ;;  %v4979_v33 = vstv %s4966_s10  ;;  %s4996_s10 = sld [smem:[#allocation138_spill]] }
 0x19f   : > { %v1318_v50 = vmul.f32 %v3697_v8, %v4979_v33  ;;  %v1218_v47 = vmax.f32 %v3891_v53, 0.0  ;;  %v1300_v42 = vadd.f32 %v1299_v18, %v1298_v6  ;;  %v4981_v59 = vstv %s4969_s24  ;;  %s4999_s24 = sld [smem:[#allocation132_spill]] }
 0x1a0   : > { %v1320_v2 = vmul.f32 %v3716_v56, %v4981_v59  ;;  %v4983_v7 = vstv %s4970_s14  ;;  %v1241_v24 = vmax.f32 %v3895_v0, 0.0  ;;  %v1283_v41 = vadd.f32 %v1282_v58, %v1281_v45  ;;  %s5001_s14 = sld [smem:[#allocation133_spill]] }
 0x1a1   : > { %v1334_v31 = vmul.f32 %v3653_v21, %v4983_v7  ;;  %v1317_v15 = vadd.f32 %v1316_v17, %v1315_v29  ;;  %v4987_v43 = vstv %s4972_s7  ;;  %v4988_v4 = vstv %s4974_s28  ;;  %s5002_s7 = sld [smem:[#allocation139_spill]]  ;;  %s5005_s28 = sld [smem:[#allocation146_spill]] }
 0x1a2   : > { %v1335_v5 = vmul.f32 %v3665_v48, %v4987_v43  ;;  %v3928_v18 = vadd.f32 %v1262_v9, %v4988_v4  ;;  %v1302_v32 = vadd.f32 %v1301_v20, %v1300_v42  ;;  %v4990_v6 = vstv %s4977_s29  ;;  %s5007_s29 = sld [smem:[#allocation134_spill]] }
 0x1a3   : > { %v1322_v27 = vmul.f32 %v3724_v57, %v4990_v6  ;;  %v4992_v10 = vstv %s4978_s16  ;;  %v1285_v33 = vadd.f32 %v1284_v25, %v1283_v41  ;;  %v1319_v58 = vadd.f32 %v1318_v50, %v1317_v15  ;;  %s5009_s16 = sld [smem:[#allocation135_spill]] }
 0x1a4   : > { %v1337_v22 = vmul.f32 %v3679_v11, %v4992_v10  ;;  %v1336_v45 = vadd.f32 %v1335_v5, %v1334_v31  ;;  %v4994_v17 = vstv %s4980_s9  ;;  %v1304_v59 = vadd.f32 %v1303_v60, %v1302_v32  ;;  %s5010_s9 = sld [smem:[#allocation136_spill]] }
 0x1a5   : > { %v1339_v29 = vmul.f32 %v3686_v12, %v4994_v17  ;;  %v4997_v9 = vstv %s4982_s19  ;;  %v4998_v42 = vstv %s4984_s8  ;;  %v5000_v43 = vstv %s4985_s21  ;;  %s5013_s19 = sld [smem:[#allocation147_spill]]  ;;  %s5015_s8 = sld [smem:[#allocation144_spill]] }
 0x1a6   : > { %v1324_v20 = vmul.f32 %v3731_v13, %v4997_v9  ;;  %v1326_v7 = vmul.f32 %v3733_v26, %v4998_v42  ;;  %v1328_v4 = vmul.f32 %v3735_v19, %v5000_v43  ;;  %v1321_v25 = vadd.f32 %v1320_v2, %v1319_v58  ;;  %s5017_s21 = sld [smem:[#allocation148_spill]] }
 0x1a7   : > { %v5003_v50 = vstv %s4986_s22  ;;  %v1338_v41 = vadd.f32 %v1337_v22, %v1336_v45  ;;  %v5004_v15 = vstv %s4989_s20  ;;  %v1264_v5 = vmax.f32 %v3928_v18, 0.0  ;;  %s5019_s22 = sld [smem:[#allocation155_spill]]  ;;  %s5020_s20 = sld [smem:[#allocation156_spill]] }
 0x1a8   : > { %v1330_v31 = vmul.f32 %v3740_v16, %v5003_v50  ;;  %v1341_v60 = vmul.f32 %v3697_v8, %v5004_v15  ;;  %v5006_v32 = vstv %s4991_s6  ;;  %v1306_v10 = vadd.f32 %v1305_v46, %v1304_v59  ;;  %s5022_s6 = sld [smem:[#allocation157_spill]] }
 0x1a9   : > { %v3957_v6 = vadd.f32 %v1285_v33, %v5006_v32  ;;  %v5008_v17 = vstv %s4993_s12  ;;  %v1323_v2 = vadd.f32 %v1322_v27, %v1321_v25  ;;  %v1340_v58 = vadd.f32 %v1339_v29, %v1338_v41  ;;  %s5024_s12 = sld [smem:[#allocation149_spill]] }
 0x1aa   : > { %v1357_v9 = vmul.f32 %v3653_v21, %v5008_v17  ;;  %v5011_v42 = vstv %s4995_s23  ;;  %v5012_v45 = vstv %s4996_s10  ;;  %v1308_v50 = vadd.f32 %v1307_v35, %v1306_v10  ;;  %s5026_s23 = sld [smem:[#allocation151_spill]] }
 0x1ab   : > { %v1343_v22 = vmul.f32 %v3716_v56, %v5011_v42  ;;  %v1358_v43 = vmul.f32 %v3665_v48, %v5012_v45  ;;  %v5014_v15 = vstv %s4999_s24  ;;  %v5016_v46 = vstv %s5001_s14  ;;  %s5028_s10 = sld [smem:[#allocation159_spill]]  ;;  %s5031_s24 = sld [smem:[#allocation152_spill]] }
 0x1ac   : > { %v1345_v33 = vmul.f32 %v3724_v57, %v5014_v15  ;;  %v1347_v59 = vmul.f32 %v3731_v13, %v5016_v46  ;;  %v5018_v32 = vstv %s5002_s7  ;;  %v1325_v29 = vadd.f32 %v1324_v20, %v1323_v2  ;;  %s5034_s14 = sld [smem:[#allocation153_spill]]  ;;  %s5036_s7 = sld [smem:[#allocation160_spill]] }
 0x1ad   : > { %v1360_v27 = vmul.f32 %v3679_v11, %v5018_v32  ;;  %v1342_v25 = vadd.f32 %v1341_v60, %v1340_v58  ;;  %v1359_v41 = vadd.f32 %v1358_v43, %v1357_v9  ;;  %v5021_v17 = vstv %s5005_s28  ;;  %s5038_s28 = sld [smem:[#allocation154_spill]] }
 0x1ae   : > { %v1362_v42 = vmul.f32 %v3686_v12, %v5021_v17  ;;  %v1287_v35 = vmax.f32 %v3957_v6, 0.0  ;;  %v5023_v10 = vstv %s5007_s29  ;;  %v5025_v15 = vstv %s5009_s16  ;;  %s5040_s29 = sld [smem:[#allocation161_spill]]  ;;  %s5042_s16 = sld [smem:[#allocation167_spill]] }
 0x1af   : > { %v1349_v45 = vmul.f32 %v3733_v26, %v5023_v10  ;;  %v1351_v46 = vmul.f32 %v3735_v19, %v5025_v15  ;;  %v5027_v34 = vstv %s5010_s9  ;;  %v1327_v20 = vadd.f32 %v1326_v7, %v1325_v29  ;;  %s5044_s9 = sld [smem:[#allocation168_spill]] }
 0x1b0   : > { %v1353_v32 = vmul.f32 %v3740_v16, %v5027_v34  ;;  %v1344_v60 = vadd.f32 %v1343_v22, %v1342_v25  ;;  %v1361_v9 = vadd.f32 %v1360_v27, %v1359_v41  ;;  %v5029_v2 = vstv %s5013_s19  ;;  %s5045_s19 = sld [smem:[#allocation169_spill]] }
 0x1b1   : > { %v1364_v58 = vmul.f32 %v3697_v8, %v5029_v2  ;;  %v5030_v43 = vstv %s5015_s8  ;;  %v5032_v37 = vstv %s5017_s21  ;;  %v5033_v49 = vstv %s5019_s22  ;;  %s5046_s8 = sld [smem:[#allocation145_spill]]  ;;  %s5048_s21 = sld [smem:[#allocation162_spill]] }
 0x1b2   : > { %v3995_v17 = vadd.f32 %v1308_v50, %v5030_v43  ;;  %v1366_v10 = vmul.f32 %v3716_v56, %v5032_v37  ;;  %v1380_v15 = vmul.f32 %v3653_v21, %v5033_v49  ;;  %v5035_v23 = vstv %s5020_s20  ;;  %s5050_s22 = sld [smem:[#allocation163_spill]]  ;;  %s5052_s20 = sld [smem:[#allocation170_spill]] }
 0x1b3   : > { %v1381_v34 = vmul.f32 %v3665_v48, %v5035_v23  ;;  %v1329_v7 = vadd.f32 %v1328_v4, %v1327_v20  ;;  %v1346_v22 = vadd.f32 %v1345_v33, %v1344_v60  ;;  %v1363_v27 = vadd.f32 %v1362_v42, %v1361_v9 }
 0x1b4   : > { %v5037_v29 = vstv %s5022_s6  ;;  %v5039_v50 = vstv %s5024_s12  ;;  %v5041_v37 = vstv %s5026_s23  ;;  %v5043_v43 = vstv %s5028_s10  ;;  %s5055_s6 = sld [smem:[#allocation164_spill]]  ;;  %s5056_s12 = sld [smem:[#allocation165_spill]] }
 0x1b5   : > { %v1383_v25 = vmul.f32 %v3679_v11, %v5037_v29  ;;  %v1368_v41 = vmul.f32 %v3724_v57, %v5039_v50  ;;  %v1370_v2 = vmul.f32 %v3731_v13, %v5041_v37  ;;  %v1382_v49 = vadd.f32 %v1381_v34, %v1380_v15  ;;  %s5059_s23 = sld [smem:[#allocation166_spill]]  ;;  %s5062_s10 = sld [smem:[#allocation171_spill]] }
 0x1b6   : > { %v1385_v23 = vmul.f32 %v3686_v12, %v5043_v43  ;;  %v1331_v4 = vadd.f32 %v1330_v31, %v1329_v7  ;;  %v1348_v33 = vadd.f32 %v1347_v59, %v1346_v22  ;;  %v1365_v42 = vadd.f32 %v1364_v58, %v1363_v27 }
 0x1b7   : > { %v5047_v20 = vstv %s5031_s24  ;;  %v1310_v9 = vmax.f32 %v3995_v17, 0.0  ;;  %v5049_v29 = vstv %s5034_s14  ;;  %v1384_v15 = vadd.f32 %v1383_v25, %v1382_v49  ;;  %s5064_s24 = sld [smem:[#allocation172_spill]]  ;;  %s5096_s14 = sld [smem:[#allocation186_spill]] }
 0x1b8   : > { %v1372_v60 = vmul.f32 %v3733_v26, %v5047_v20  ;;  %v1374_v50 = vmul.f32 %v3735_v19, %v5049_v29  ;;  %v5051_v34 = vstv %s5036_s7  ;;  %v1350_v43 = vadd.f32 %v1349_v45, %v1348_v33  ;;  %s5068_s7 = sld [smem:[#allocation180_spill]] }
 0x1b9   : > { %v1387_v37 = vmul.f32 %v3697_v8, %v5051_v34  ;;  %v1367_v31 = vadd.f32 %v1366_v10, %v1365_v42  ;;  %v5053_v7 = vstv %s5038_s28  ;;  %v5054_v58 = vstv %s5040_s29  ;;  %s5069_s28 = sld [smem:[#allocation150_spill]]  ;;  %s5072_s29 = sld [smem:[#allocation173_spill]] }
 0x1ba   : > { %v1376_v59 = vmul.f32 %v3740_v16, %v5053_v7  ;;  %v1389_v22 = vmul.f32 %v3716_v56, %v5054_v58  ;;  %v1386_v27 = vadd.f32 %v1385_v23, %v1384_v15  ;;  %v5057_v20 = vstv %s5042_s16  ;;  %s5073_s16 = sld [smem:[#allocation174_spill]] }
 0x1bb   : > { %v1403_v29 = vmul.f32 %v3653_v21, %v5057_v20  ;;  %v5058_v62 = vstv %s5044_s9  ;;  %v5060_v49 = vstv %s5045_s19  ;;  %v5061_v10 = vstv %s5046_s8  ;;  %s5078_s19 = sld [smem:[#allocation176_spill]]  ;;  %s5079_s8 = sld [smem:[#allocation177_spill]] }
 0x1bc   : > { %v1404_v25 = vmul.f32 %v3665_v48, %v5058_v62  ;;  %v1406_v45 = vmul.f32 %v3679_v11, %v5060_v49  ;;  %v4045_v33 = vadd.f32 %v1331_v4, %v5061_v10  ;;  %v1352_v42 = vadd.f32 %v1351_v46, %v1350_v43 }
 0x1bd   : > { %v1369_v34 = vadd.f32 %v1368_v41, %v1367_v31  ;;  %v5063_v7 = vstv %s5048_s21  ;;  %v1388_v15 = vadd.f32 %v1387_v37, %v1386_v27  ;;  %v5065_v58 = vstv %s5050_s22  ;;  %s5080_s21 = sld [smem:[#allocation178_spill]] }
 0x1be   : > { %v1391_v23 = vmul.f32 %v3724_v57, %v5063_v7  ;;  %v1393_v20 = vmul.f32 %v3731_v13, %v5065_v58  ;;  %v1405_v55 = vadd.f32 %v1404_v25, %v1403_v29  ;;  %v5066_v62 = vstv %s5052_s20 }
 0x1bf   : > { %v1408_v49 = vmul.f32 %v3686_v12, %v5066_v62  ;;  %v1354_v40 = vadd.f32 %v1353_v32, %v1352_v42  ;;  %v1371_v4 = vadd.f32 %v1370_v2, %v1369_v34  ;;  %v5070_v46 = vstv %s5055_s6 }
 0x1c0   : > { %v1395_v41 = vmul.f32 %v3733_v26, %v5070_v46  ;;  %v5071_v43 = vstv %s5056_s12  ;;  %v1390_v37 = vadd.f32 %v1389_v22, %v1388_v15  ;;  %v5074_v27 = vstv %s5059_s23  ;;  %s5089_s12 = sld [smem:[#allocation193_spill]]  ;;  %s5091_s23 = sld [smem:[#allocation158_spill]] }
 0x1c1   : > { %v1397_v31 = vmul.f32 %v3735_v19, %v5071_v43  ;;  %v1399_v29 = vmul.f32 %v3740_v16, %v5074_v27  ;;  %v1407_v25 = vadd.f32 %v1406_v45, %v1405_v55  ;;  %v5075_v10 = vstv %s5062_s10  ;;  %s5093_s10 = sld [smem:[#allocation184_spill]] }
 0x1c2   : > { %v1410_v7 = vmul.f32 %v3697_v8, %v5075_v10  ;;  %v1333_v32 = vmax.f32 %v4045_v33, 0.0  ;;  %v1373_v2 = vadd.f32 %v1372_v60, %v1371_v4  ;;  %v5077_v42 = vstv %s5064_s24  ;;  %s5095_s24 = sld [smem:[#allocation194_spill]] }
 0x1c3   : > { %v1412_v34 = vmul.f32 %v3716_v56, %v5077_v42  ;;  %v1426_v58 = vmul.f32 %v3653_v21, %v1030_v44  ;;  %v1392_v22 = vadd.f32 %v1391_v23, %v1390_v37  ;;  %v1409_v15 = vadd.f32 %v1408_v49, %v1407_v25 }
 0x1c4   : > { %v1427_v55 = vmul.f32 %v3665_v48, %v1032_v61  ;;  %v5081_v45 = vstv %s5068_s7  ;;  %v5082_v46 = vstv %s5069_s28  ;;  %v1375_v4 = vadd.f32 %v1374_v50, %v1373_v2  ;;  %s5097_s7 = sld [smem:[#allocation187_spill]]  ;;  %s5098_s28 = sld [smem:[#allocation175_spill]] }
 0x1c5   : > { %v1429_v62 = vmul.f32 %v3679_v11, %v5081_v45  ;;  %v4083_v60 = vadd.f32 %v1354_v40, %v5082_v46  ;;  %v5084_v43 = vstv %s5072_s29  ;;  %v5086_v10 = vstv %s5073_s16  ;;  %s5106_s29 = sld [smem:[#allocation188_spill]] }
 0x1c6   : > { %v1414_v27 = vmul.f32 %v3724_v57, %v5084_v43  ;;  %v1416_v44 = vmul.f32 %v3731_v13, %v5086_v10  ;;  %v1394_v21 = vadd.f32 %v1393_v20, %v1392_v22  ;;  %v1411_v23 = vadd.f32 %v1410_v7, %v1409_v15 }
 0x1c7   : > { %v1428_v61 = vadd.f32 %v1427_v55, %v1426_v58  ;;  %v1431_v48 = vmul.f32 %v3686_v12, %v1038_v36  ;;  %v1377_v11 = vadd.f32 %v1376_v59, %v1375_v4  ;;  %v5090_v40 = vstv %s5078_s19 }
 0x1c8   : > { %v1418_v50 = vmul.f32 %v3733_v26, %v5090_v40  ;;  %v5092_v49 = vstv %s5079_s8  ;;  %v5094_v25 = vstv %s5080_s21  ;;  %v1396_v20 = vadd.f32 %v1395_v41, %v1394_v21 }
 0x1c9   : > { %v1420_v37 = vmul.f32 %v3735_v19, %v5092_v49  ;;  %v1422_v2 = vmul.f32 %v3740_v16, %v5094_v25  ;;  %v1413_v7 = vadd.f32 %v1412_v34, %v1411_v23  ;;  %v1430_v42 = vadd.f32 %v1429_v62, %v1428_v61 }
 0x1ca   : > { %v1433_v36 = vmul.f32 %v3697_v8, %v1041_v28  ;;  %v1356_v12 = vmax.f32 %v4083_v60, 0.0  ;;  %v1435_v59 = vmul.f32 %v3716_v56, %v1044_v39  ;;  %v1449_v58 = vmul.f32 %v1218_v47, %v1065_v51 }
 0x1cb   : > { %v1450_v41 = vmul.f32 %v1241_v24, %v1067_v54  ;;  %v1398_v34 = vadd.f32 %v1397_v31, %v1396_v20  ;;  %v1415_v28 = vadd.f32 %v1414_v27, %v1413_v7  ;;  %v1432_v8 = vadd.f32 %v1431_v48, %v1430_v42 }
 0x1cc   : > { %v5099_v22 = vstv %s5089_s12  ;;  %v5100_v55 = vstv %s5091_s23  ;;  %v5101_v56 = vstv %s5093_s10  ;;  %v5102_v62 = vstv %s5095_s24 }
 0x1cd   : > { %v1452_v15 = vmul.f32 %v1264_v5, %v5099_v22  ;;  %v1378_v39 = vadd.f32 %v1377_v11, %v5100_v55  ;;  %v1437_v51 = vmul.f32 %v3724_v57, %v5101_v56  ;;  %v1451_v45 = vadd.f32 %v1450_v41, %v1449_v58 }
 0x1ce   : > { %v1454_v54 = vmul.f32 %v1287_v35, %v5102_v62  ;;  %v1400_v31 = vadd.f32 %v1399_v29, %v1398_v34  ;;  %v1417_v46 = vadd.f32 %v1416_v44, %v1415_v28  ;;  %v1434_v60 = vadd.f32 %v1433_v36, %v1432_v8 }
 0x1cf   : > { %v5103_v4 = vstv %s5096_s14  ;;  %v5104_v27 = vstv %s5097_s7  ;;  %v1453_v21 = vadd.f32 %v1452_v15, %v1451_v45  ;;  %v5105_v23 = vstv %s3426_s4  ;;  %s5108_s4 = sld [smem:[#allocation189_spill]] }
 0x1d0   : > { %v1439_v43 = vmul.f32 %v3731_v13, %v5103_v4  ;;  %v1441_v10 = vmul.f32 %v3733_v26, %v5104_v27  ;;  %v1456_v57 = vmul.f32 %v1310_v9, %v5105_v23  ;;  %v1473_v61 = vmul.f32 %v1218_v47, %v1100_v52 }
 0x1d1   : > { %v5107_v29 = vstv %s5098_s28  ;;  %v1419_v48 = vadd.f32 %v1418_v50, %v1417_v46  ;;  %v1436_v11 = vadd.f32 %v1435_v59, %v1434_v60  ;;  %v1474_v13 = vmul.f32 %v1241_v24, %v1102_v30 }
 0x1d2   : > { %v1401_v44 = vadd.f32 %v1400_v31, %v5107_v29  ;;  %v1379_v26 = vmax.f32 %v1378_v39, 0.0  ;;  %v1455_v40 = vadd.f32 %v1454_v54, %v1453_v21  ;;  %v5109_v49 = vstv %s3432_s27  ;;  %s5114_s27 = sld [smem:[#allocation195_spill]] }
 0x1d3   : > { %v1458_v25 = vmul.f32 %v1333_v32, %v5109_v49  ;;  %v1476_v52 = vmul.f32 %v1264_v5, %v1105_v14  ;;  %v1421_v53 = vadd.f32 %v1420_v37, %v1419_v48  ;;  %v1438_v47 = vadd.f32 %v1437_v51, %v1436_v11 }
 0x1d4   : > { %v1475_v50 = vadd.f32 %v1474_v13, %v1473_v61  ;;  %v1478_v30 = vmul.f32 %v1287_v35, %v1108_v1  ;;  %v1402_v0 = vmax.f32 %v1401_v44, 0.0  ;;  %v5111_v24 = vstv %s5106_s29 }
 0x1d5   : > { %v1443_v20 = vmul.f32 %v3735_v19, %v5111_v24  ;;  %v1457_v7 = vadd.f32 %v1456_v57, %v1455_v40  ;;  %v5112_v42 = vstv %s3434_s1  ;;  %v1423_v18 = vadd.f32 %v1422_v2, %v1421_v53  ;;  %s5125_s1 = sld [smem:[#allocation37_spill]] }
 0x1d6   : > { %v1460_v36 = vmul.f32 %v1356_v12, %v5112_v42  ;;  %v1440_v14 = vadd.f32 %v1439_v43, %v1438_v47  ;;  %v1477_v5 = vadd.f32 %v1476_v52, %v1475_v50  ;;  %v1480_v37 = vmul.f32 %v1310_v9, %v1111_v3 }
 0x1d7   : > { %v5113_v59 = vstv %s5108_s4  ;;  %v1459_v6 = vadd.f32 %v1458_v25, %v1457_v7  ;;  %v5115_v35 = vstv %s3439_s25  ;;  %v5117_v19 = vstv %s5110_s17  ;;  %s5121_s25 = sld [smem:[#allocation199_spill]] }
 0x1d8   : > { %v1445_v1 = vmul.f32 %v3740_v16, %v5113_v59  ;;  %v1462_v58 = vmul.f32 %v1379_v26, %v5115_v35  ;;  %v1424_v41 = vadd.f32 %v1423_v18, %v5117_v19  ;;  %v1442_v34 = vadd.f32 %v1441_v10, %v1440_v14 }
 0x1d9   : > { %v1479_v2 = vadd.f32 %v1478_v30, %v1477_v5  ;;  %v1482_v28 = vmul.f32 %v1333_v32, %v1114_v63  ;;  %v1461_v17 = vadd.f32 %v1460_v36, %v1459_v6  ;;  %v5119_v3 = vstv %s3441_s30  ;;  %s5127_s30 = sld [smem:[#allocation200_spill]] }
 0x1da   : > { %v1464_v9 = vmul.f32 %v1402_v0, %v5119_v3  ;;  %v1425_v8 = vmax.f32 %v1424_v41, 0.0  ;;  %v1444_v16 = vadd.f32 %v1443_v20, %v1442_v34  ;;  %v1484_v15 = vmul.f32 %v1356_v12, %v1117_v38 }
 0x1db   : > { %v1481_v22 = vadd.f32 %v1480_v37, %v1479_v2  ;;  %v1463_v55 = vadd.f32 %v1462_v58, %v1461_v17  ;;  %v5122_v56 = vstv %s5114_s27  ;;  %v5124_v33 = vstv %s5116_s0 }
 0x1dc   : > { %v1446_v39 = vadd.f32 %v1445_v1, %v1444_v16  ;;  %v1466_v51 = vmul.f32 %v1425_v8, %v5122_v56  ;;  %v1486_v62 = vmul.f32 %v1379_v26, %v5124_v33  ;;  %v5126_v32 = vstv %s5118_s18 }
 0x1dd   : > { %v1483_v45 = vadd.f32 %v1482_v28, %v1481_v22  ;;  %v1465_v63 = vadd.f32 %v1464_v9, %v1463_v55  ;;  %v5128_v46 = vstv %s3529_s3  ;;  %v5130_v43 = vstv %s3547_s11  ;;  %s1498_s3 = scalar_lea.sflag [#allocation4], %s5129_s2 }
 0x1de   : > { %v1447_v54 = vadd.f32 %v1446_v39, %v5126_v32  ;;  %v1488_v60 = vmul.f32 %v1402_v0, %v5128_v46  ;;  %v1490_v27 = vmul.f32 %v1425_v8, %v5130_v43  ;;  %v5131_v10 = vstv %s5120_s5 }
 0x1df   : > { %v1485_v31 = vadd.f32 %v1484_v15, %v1483_v45  ;;  %v1467_v12 = vadd.f32 %v1466_v51, %v1465_v63  ;;  %v5132_v57 = vstv %s5121_s25  ;;  %v5133_v48 = vstv %s5123_s13 }
 0x1e0   : > { %v1448_v38 = vmax.f32 %v1447_v54, 0.0  ;;  %v5134_v26 = vstv %s5127_s30 }
 0x1e1   : > { %v1487_v4 = vadd.f32 %v1486_v62, %v1485_v31 }
 0x1e2   : > { %v1468_v21 = vmul.f32 %v1448_v38, %v5131_v10  ;;  %v1492_v61 = vmul.f32 %v1448_v38, %v5132_v57 }
 0x1e3   : > { %v1489_v23 = vadd.f32 %v1488_v60, %v1487_v4 }
 0x1e4   : > { %v1469_v29 = vadd.f32 %v1468_v21, %v1467_v12 }
 0x1e5   : > { %v1491_v44 = vadd.f32 %v1490_v27, %v1489_v23 }
 0x1e6   : > { %v1470_v11 = vadd.f32 %v1469_v29, %v5133_v48 }
 0x1e7   : > { %v1493_v13 = vadd.f32 %v1492_v61, %v1491_v44 }
 0x1e8   : > { %1889 = vst [vmem:[%s5125_s1 + $0x8] sm:$0xff] %v1470_v11 }
 0x1e9   : > { %v1494_v40 = vadd.f32 %v1493_v13, %v5134_v26 }
 0x1eb   : > { %1890 = vst [vmem:[%s5125_s1 + $0x18] sm:$0xff] %v1494_v40 }
 0x1ec   : > { %s5135_s15 = sld [smem:[#allocation31_spill]]  ;;  %s5136_s16 = sld [smem:[#allocation34_spill]] }
 0x1ed   : > { %s1527_s9 = sshll.u32 %s5125_s1, 4  ;;  %s5137_s21 = sld [smem:[#allocation208_spill]]  ;;  %s1528_s9 = int_to_ptr.vmem [resolvable:$true] %s1527_s9 }
 0x1ee   : > { %s2183_s26 = smov 256   ;;  %s2184_s20 = smov 512  }
 0x1ef   : > { %s2185_s6 = smov 2   ;;  %s2186_s12 = smov 128  }
 0x1f0   : > { %s2187_s23 = smov 8   ;;  %s2188_s10 = smov [#allocation18]  }
 0x1f1   : > { %s2189_s24 = smov 0  }
 0x1f2   : > { %s1897_s11 = sshll.u32 %s5135_s15, 8  ;;  %p5138_p4 = scmp.ne.s32.totalorder %s5136_s16, 0 }
 0x1f3   : > { %s1510_s22 = scalar_lea.hbm %s5137_s21, %s1897_s11 }
 0x1f4   : > { %1931 = sst [smem:[#allocation19]] (%p5138_p4), %s2183_s26 }
 0x1f5   : > { %1932 = sst [smem:[#allocation19 + $0x1]] (%p5138_p4), %s2184_s20 }
 0x1f6   : > { %1933 = sst [smem:[#allocation19 + $0x2]] (%p5138_p4), %s2185_s6 }
 0x1f7   : > { %1934 = sst [smem:[#allocation19 + $0x3]] (%p5138_p4), %s2186_s12 }
 0x1f8   : > { %1935 = sst [smem:[#allocation19 + $0x4]] (%p5138_p4), %s2186_s12 }
 0x1f9   : > { %1936 = sst [smem:[#allocation19 + $0x5]] (%p5138_p4), %s2187_s23 }
 0x1fa   : > { %1937 = dma.general (%p5138_p4), %s1528_s9, 512, %s1510_s22, %s1498_s3, %s2188_s10, [#allocation19], %s2189_s24, 0  }
 0x1fb PF: > { %s5139_s14 = sld [smem:[#allocation27_spill]]  ;;  %s5140_s7 = sld [smem:[#allocation35_spill]] }
 0x201   : > { %s1555_s29 = sand.u32 1, %s5139_s14   ;;  %p5142_p11 = scmp.ne.s32.totalorder %s5140_s7, 0 }
 0x202   : > { %s1556_s4 = scalar_lea.sflag [#allocation4], %s1555_s29 }
 0x203   : > { %p1959_p0 = pnand %p1687_p12, %p5142_p11 }
 0x205   : > { %2152 = dma.done.wait (!%p1959_p0), %s1556_s4, 512  }
 0x206   : > { %2154 = vsyncadd (!%p1959_p0), %s1556_s4, 4294966784  ;;  %s5143_s27 = sld [smem:[#allocation32_spill]]  ;;  %s5144_s24 = sld [smem:[#allocation28_spill]] }
 0x207   : > { %s5145_s25 = sld [smem:[#allocation29_spill]]  ;;  %s5146_s26 = sld [smem:[#allocation33_spill]] }
 0x20c   : > { %p24_p3 = scmp.ge.s32.totalorder %s5143_s27, 4  }
 0x20e   :  { %26 = sbr.rel (!%p24_p3) target bundleno = 18 (0x12), region = 135 }
 0x215   :  { %1561 = vsyncpa [#allocation3], 1 }
 0x216   :  { %1563 = vsyncpa [#allocation3 + $0x1], 1 }
 0x217   :  { %1564 = vsyncpa [#allocation4], 1 }
 0x218   :  { %1566 = vsyncpa [#allocation4 + $0x1], 1 }
 0x219   :  { %1567 = vsyncpa [#allocation5], 1 }
 0x21a   :  { %1569 = vsyncpa [#allocation5 + $0x1], 1 }
 0x21b   :  { %1570 = vsyncpa [#allocation6], 1 }
 0x21c   :  { %1572 = vsyncpa [#allocation6 + $0x1], 1 }
 0x21d   :  { %1573 = vsyncpa [#allocation9], 1 }
 0x21e   :  { %1574 = vsyncpa [#allocation12], 1 }

</bundles_post_ra>
